<compile_context>
chip_gen: v7x
topology: tpu7x:2x2x1
jax: 0.10.0
libtpu: 0.0.40
codegen_flags: <defaults>
</compile_context>

<pallas_src>
import jax
import jax.numpy as jnp
import numpy as np
from jax import lax
from jax.experimental import pallas as pl
from jax.experimental.pallas import tpu as pltpu


# ---------------------------------------------------------------------------
# Model hyper-parameters (match the PyTorch module defaults)
# ---------------------------------------------------------------------------
IN_CHANNEL = 4
INPUT_LENGTH = 32          # must be a multiple of 8 (sublane tile) for the folded layout
FILTERS = [32, 64, 96]
KERNELS = [4, 6, 8]
OUTPUT_FEATS = 256
BATCH = 2

L1 = INPUT_LENGTH - KERNELS[0] + 1   # 29
L2 = L1 - KERNELS[1] + 1             # 24
L3 = L2 - KERNELS[2] + 1             # 17
N_SIZE = FILTERS[2]                  # 96  (adaptive_max_pool1d(1) -> flatten)

_PREC = lax.Precision.HIGHEST        # keep f32 accuracy in kernel and reference


# ---------------------------------------------------------------------------
# Pallas kernel: full forward pass for the whole batch in one grid step.
# ---------------------------------------------------------------------------
def _conv_relu(h, w_ref, b_ref, ksize):
    """Fused Conv1d + ReLU on a batch-folded (B*32, C_in) slab.

    Builds the im2col patch matrix from `ksize` shifted row views and performs a
    single (B*32, K*C_in) @ (K*C_in, C_out) MXU matmul.  Rows past the valid
    length of each 32-row batch chunk hold garbage; they only ever produce other
    garbage rows and are discarded before the max-pool.
    """
    rows, c_in = h.shape
    # 8-row zero tail: the concat offset (`rows`) is a multiple of 8, so this is
    # a tile-aligned concat, and every shifted view below is a plain in-bounds
    # static slice (k <= 7 < 8).
    hp = jnp.concatenate([h, jnp.zeros((8, c_in), h.dtype)], axis=0)
    patches = jnp.concatenate([hp[k:k + rows, :] for k in range(ksize)], axis=1)
    w = w_ref[...].astype(jnp.float32)            # bf16 storage -> f32 compute
    acc = jnp.dot(patches, w, preferred_element_type=jnp.float32, precision=_PREC)
    return jnp.maximum(acc + b_ref[...], 0.0)


def cnn_kernel(x_ref,                 # (B*32, C_in)          f32
               w1_ref, b1_ref,        # (K1*C_in, F1) bf16,  (1, F1) f32
               w2_ref, b2_ref,        # (K2*F1,  F2) bf16,  (1, F2) f32
               w3_ref, b3_ref,        # (K3*F2,  F3) bf16,  (1, F3) f32
               wfc_ref, bfc_ref,      # (F3, OUT)    bf16,  (1, OUT) f32
               out_ref):              # (B, OUT)              f32
    x = x_ref[...].astype(jnp.float32)

    h1 = _conv_relu(x,  w1_ref, b1_ref, KERNELS[0])   # (B*32, F1), valid rows [0, L1) per chunk
    h2 = _conv_relu(h1, w2_ref, b2_ref, KERNELS[1])   # (B*32, F2), valid rows [0, L2)
    h3 = _conv_relu(h2, w3_ref, b3_ref, KERNELS[2])   # (B*32, F3), valid rows [0, L3)

    # adaptive_max_pool1d(output_size=1): max over the L3 valid positions of each
    # batch chunk (chunk starts are multiples of 32 -> aligned static slices).
    batch = out_ref.shape[0]
    pooled = jnp.concatenate(
        [jnp.max(h3[b * INPUT_LENGTH:b * INPUT_LENGTH + L3, :],
                 axis=0, keepdims=True)
         for b in range(batch)],
        axis=0)                                       # (B, F3)

    wfc = wfc_ref[...].astype(jnp.float32)
    out = jnp.dot(pooled, wfc, preferred_element_type=jnp.float32,
                  precision=_PREC) + bfc_ref[...]
    out_ref[...] = out.astype(out_ref.dtype)          # one dense (B, 256) store


def cnn_forward(x_rows, kernel_params):
    """x_rows: (B*INPUT_LENGTH, IN_CHANNEL) f32, batch folded into matmul rows."""
    w1, b1, w2, b2, w3, b3, wfc, bfc = kernel_params
    assert x_rows.shape[0] % INPUT_LENGTH == 0
    batch = x_rows.shape[0] // INPUT_LENGTH

    def full(a):
        return pl.BlockSpec(a.shape, lambda i, _a=a: (0,) * _a.ndim)

    return pl.pallas_call(
        cnn_kernel,
        out_shape=jax.ShapeDtypeStruct((batch, OUTPUT_FEATS), jnp.float32),
        grid_spec=pltpu.PrefetchScalarGridSpec(
            num_scalar_prefetch=0,
            grid=(1,),                 # whole batch in a single (overhead-free) step
            in_specs=[
                full(x_rows),
                full(w1), full(b1),
                full(w2), full(b2),
                full(w3), full(b3),
                full(wfc), full(bfc),
            ],
            out_specs=pl.BlockSpec((batch, OUTPUT_FEATS), lambda i: (0, 0)),
        ),
        compiler_params=pltpu.CompilerParams(
            dimension_semantics=("arbitrary",)),
    )(x_rows, w1, b1, w2, b2, w3, b3, wfc, bfc)


# ---------------------------------------------------------------------------
# Deterministic parameter init (PyTorch-style uniform fan-in bounds).
# Conv weights are kept as (K, C_in, C_out); FC weight as (N_SIZE, OUT).
# ---------------------------------------------------------------------------
def init_params(key):
    keys = jax.random.split(key, 8)
    channels = [IN_CHANNEL] + FILTERS
    params = []
    for i in range(3):
        c_in, c_out, k = channels[i], channels[i + 1], KERNELS[i]
        bound = 1.0 / np.sqrt(c_in * k)
        w = jax.random.uniform(keys[2 * i], (k, c_in, c_out),
                               jnp.float32, -bound, bound)
        b = jax.random.uniform(keys[2 * i + 1], (1, c_out),
                               jnp.float32, -bound, bound)
        params += [w, b]
    bound = 1.0 / np.sqrt(N_SIZE)
    wfc = jax.random.uniform(keys[6], (N_SIZE, OUTPUT_FEATS),
                             jnp.float32, -bound, bound)
    bfc = jax.random.uniform(keys[7], (1, OUTPUT_FEATS),
                             jnp.float32, -bound, bound)
    params += [wfc, bfc]
    return tuple(params)


def pack_for_kernel(params):
    """Round weights to bf16 (halves weight DMA) and reshape conv weights to the
    im2col layout (K*C_in, C_out).  Returns (kernel_params, f32_ref_params);
    the reference uses the same bf16-rounded weight values so the comparison
    only measures kernel arithmetic, not the (shared) storage rounding."""
    w1, b1, w2, b2, w3, b3, wfc, bfc = params
    conv_k, conv_ref = [], []
    for w in (w1, w2, w3):
        k, c_in, c_out = w.shape
        w_bf16 = w.astype(jnp.bfloat16)
        conv_k.append(w_bf16.reshape(k * c_in, c_out))       # (K*C_in, C_out) bf16
        conv_ref.append(w_bf16.astype(jnp.float32))          # same values, f32
    wfc_bf16 = wfc.astype(jnp.bfloat16)
    kernel_params = (conv_k[0], b1, conv_k[1], b2, conv_k[2], b3, wfc_bf16, bfc)
    ref_params = (conv_ref[0], b1, conv_ref[1], b2, conv_ref[2], b3,
                  wfc_bf16.astype(jnp.float32), bfc)
    return kernel_params, ref_params


# ---------------------------------------------------------------------------
# Pure-JAX reference with PyTorch NCW conv semantics (for verification only).
# ---------------------------------------------------------------------------
def reference_forward(x_ncw, params):
    w1, b1, w2, b2, w3, b3, wfc, bfc = params
    h = x_ncw
    for w, b in ((w1, b1), (w2, b2), (w3, b3)):
        w_oik = jnp.transpose(w, (2, 1, 0))  # (C_out, C_in, K) like PyTorch
        h = lax.conv_general_dilated(
            h, w_oik, window_strides=(1,), padding="VALID",
            dimension_numbers=("NCW", "OIW", "NCW"), precision=_PREC)
        h = jax.nn.relu(h + b[0][None, :, None])
    pooled = jnp.max(h, axis=-1)             # (B, F3)
    return jnp.dot(pooled, wfc, precision=_PREC) + bfc[0][None, :]


if __name__ == "__main__":
    key = jax.random.PRNGKey(0)
    pkey, xkey = jax.random.split(key)
    kernel_params, ref_params = pack_for_kernel(init_params(pkey))

    # PyTorch-convention input: (N, C_in, L)
    x_ncw = jax.random.normal(xkey, (BATCH, IN_CHANNEL, INPUT_LENGTH), jnp.float32)
    # channels-last with batch folded into matmul rows: (B*L, C_in)
    x_rows = jnp.transpose(x_ncw, (0, 2, 1)).reshape(BATCH * INPUT_LENGTH, IN_CHANNEL)

    out = jax.block_until_ready(cnn_forward(x_rows, kernel_params))
    ref = jax.block_until_ready(reference_forward(x_ncw, ref_params))

    assert out.shape == (BATCH, OUTPUT_FEATS)
    # Weights are bf16-rounded identically on both paths; tolerance leaves margin
    # for MXU accumulation-order / pass differences only.
    np.testing.assert_allclose(np.asarray(out), np.asarray(ref),
                               rtol=1e-3, atol=1e-3)
    print("KERNEL_OK")
</pallas_src>

<mosaic_0001>
module attributes {stable_mosaic.version = 11 : i64} {
  func.func @cnn_kernel(%arg0: i32, %arg1: memref<64x4xf32, #tpu.memory_space<vmem>>, %arg2: memref<16x32xbf16, #tpu.memory_space<vmem>>, %arg3: memref<1x32xf32, #tpu.memory_space<vmem>>, %arg4: memref<192x64xbf16, #tpu.memory_space<vmem>>, %arg5: memref<1x64xf32, #tpu.memory_space<vmem>>, %arg6: memref<512x96xbf16, #tpu.memory_space<vmem>>, %arg7: memref<1x96xf32, #tpu.memory_space<vmem>>, %arg8: memref<96x256xbf16, #tpu.memory_space<vmem>>, %arg9: memref<1x256xf32, #tpu.memory_space<vmem>>, %arg10: memref<2x256xf32, #tpu.memory_space<vmem>>) attributes {dimension_semantics = [#tpu.dimension_semantics<arbitrary>], iteration_bounds = array<i64: 1>, scalar_prefetch = 0 : i64, scratch_operands = 0 : i64, tpu.core_type = #tpu.core_type<tc>, window_params = [{pipeline_mode = #tpu.pipeline_mode<synchronous>, transform_indices = @transform_0, window_bounds = array<i64: 64, 4>}, {pipeline_mode = #tpu.pipeline_mode<synchronous>, transform_indices = @transform_1, window_bounds = array<i64: 16, 32>}, {pipeline_mode = #tpu.pipeline_mode<synchronous>, transform_indices = @transform_2, window_bounds = array<i64: 1, 32>}, {pipeline_mode = #tpu.pipeline_mode<synchronous>, transform_indices = @transform_3, window_bounds = array<i64: 192, 64>}, {pipeline_mode = #tpu.pipeline_mode<synchronous>, transform_indices = @transform_4, window_bounds = array<i64: 1, 64>}, {pipeline_mode = #tpu.pipeline_mode<synchronous>, transform_indices = @transform_5, window_bounds = array<i64: 512, 96>}, {pipeline_mode = #tpu.pipeline_mode<synchronous>, transform_indices = @transform_6, window_bounds = array<i64: 1, 96>}, {pipeline_mode = #tpu.pipeline_mode<synchronous>, transform_indices = @transform_7, window_bounds = array<i64: 96, 256>}, {pipeline_mode = #tpu.pipeline_mode<synchronous>, transform_indices = @transform_8, window_bounds = array<i64: 1, 256>}, {pipeline_mode = #tpu.pipeline_mode<synchronous>, transform_indices = @transform_9, window_bounds = array<i64: 2, 256>}]} {
    %c0 = arith.constant 0 : index
    %c0_0 = arith.constant 0 : index
    %0 = vector.load %arg1[%c0, %c0_0] : memref<64x4xf32, #tpu.memory_space<vmem>>, vector<64x4xf32>
    %cst = arith.constant 0.000000e+00 : f32
    %1 = vector.broadcast %cst : f32 to vector<8x4xf32>
    %2 = tpu.concatenate %0, %1 in 0 : vector<64x4xf32>, vector<8x4xf32> -> vector<72x4xf32>
    %3 = vector.extract_strided_slice %2 {offsets = [0, 0], sizes = [64, 4], strides = [1, 1]} : vector<72x4xf32> to vector<64x4xf32>
    %4 = vector.extract_strided_slice %2 {offsets = [1, 0], sizes = [64, 4], strides = [1, 1]} : vector<72x4xf32> to vector<64x4xf32>
    %5 = vector.extract_strided_slice %2 {offsets = [2, 0], sizes = [64, 4], strides = [1, 1]} : vector<72x4xf32> to vector<64x4xf32>
    %6 = vector.extract_strided_slice %2 {offsets = [3, 0], sizes = [64, 4], strides = [1, 1]} : vector<72x4xf32> to vector<64x4xf32>
    %7 = tpu.concatenate %3, %4, %5, %6 in 1 : vector<64x4xf32>, vector<64x4xf32>, vector<64x4xf32>, vector<64x4xf32> -> vector<64x16xf32>
    %c0_1 = arith.constant 0 : index
    %c0_2 = arith.constant 0 : index
    %8 = vector.load %arg2[%c0_1, %c0_2] : memref<16x32xbf16, #tpu.memory_space<vmem>>, vector<16x32xbf16>
    %9 = arith.extf %8 : vector<16x32xbf16> to vector<16x32xf32>
    %cst_3 = arith.constant dense<0.000000e+00> : vector<64x32xf32>
    %10 = tpu.matmul %7, %9, %cst_3 {dimension_numbers = #tpu.dot_dimension_numbers<[1], [0], [0], [1], [0, 0, 1, 1], [], []>, precision = #tpu.contract_precision<fp32>} : vector<64x16xf32>, vector<16x32xf32>, vector<64x32xf32> -> vector<64x32xf32>
    %c0_4 = arith.constant 0 : index
    %c0_5 = arith.constant 0 : index
    %11 = vector.load %arg3[%c0_4, %c0_5] : memref<1x32xf32, #tpu.memory_space<vmem>>, vector<1x32xf32>
    %12 = vector.broadcast %11 : vector<1x32xf32> to vector<64x32xf32>
    %13 = arith.addf %10, %12 : vector<64x32xf32>
    %cst_6 = arith.constant 0.000000e+00 : f32
    %14 = vector.broadcast %cst_6 : f32 to vector<64x32xf32>
    %15 = arith.maximumf %13, %14 : vector<64x32xf32>
    %cst_7 = arith.constant 0.000000e+00 : f32
    %16 = vector.broadcast %cst_7 : f32 to vector<8x32xf32>
    %17 = tpu.concatenate %15, %16 in 0 : vector<64x32xf32>, vector<8x32xf32> -> vector<72x32xf32>
    %18 = vector.extract_strided_slice %17 {offsets = [0, 0], sizes = [64, 32], strides = [1, 1]} : vector<72x32xf32> to vector<64x32xf32>
    %19 = vector.extract_strided_slice %17 {offsets = [1, 0], sizes = [64, 32], strides = [1, 1]} : vector<72x32xf32> to vector<64x32xf32>
    %20 = vector.extract_strided_slice %17 {offsets = [2, 0], sizes = [64, 32], strides = [1, 1]} : vector<72x32xf32> to vector<64x32xf32>
    %21 = vector.extract_strided_slice %17 {offsets = [3, 0], sizes = [64, 32], strides = [1, 1]} : vector<72x32xf32> to vector<64x32xf32>
    %22 = vector.extract_strided_slice %17 {offsets = [4, 0], sizes = [64, 32], strides = [1, 1]} : vector<72x32xf32> to vector<64x32xf32>
    %23 = vector.extract_strided_slice %17 {offsets = [5, 0], sizes = [64, 32], strides = [1, 1]} : vector<72x32xf32> to vector<64x32xf32>
    %24 = tpu.concatenate %18, %19, %20, %21, %22, %23 in 1 : vector<64x32xf32>, vector<64x32xf32>, vector<64x32xf32>, vector<64x32xf32>, vector<64x32xf32>, vector<64x32xf32> -> vector<64x192xf32>
    %c0_8 = arith.constant 0 : index
    %c0_9 = arith.constant 0 : index
    %25 = vector.load %arg4[%c0_8, %c0_9] : memref<192x64xbf16, #tpu.memory_space<vmem>>, vector<192x64xbf16>
    %26 = arith.extf %25 : vector<192x64xbf16> to vector<192x64xf32>
    %cst_10 = arith.constant dense<0.000000e+00> : vector<64x64xf32>
    %27 = tpu.matmul %24, %26, %cst_10 {dimension_numbers = #tpu.dot_dimension_numbers<[1], [0], [0], [1], [0, 0, 1, 1], [], []>, precision = #tpu.contract_precision<fp32>} : vector<64x192xf32>, vector<192x64xf32>, vector<64x64xf32> -> vector<64x64xf32>
    %c0_11 = arith.constant 0 : index
    %c0_12 = arith.constant 0 : index
    %28 = vector.load %arg5[%c0_11, %c0_12] : memref<1x64xf32, #tpu.memory_space<vmem>>, vector<1x64xf32>
    %29 = vector.broadcast %28 : vector<1x64xf32> to vector<64x64xf32>
    %30 = arith.addf %27, %29 : vector<64x64xf32>
    %cst_13 = arith.constant 0.000000e+00 : f32
    %31 = vector.broadcast %cst_13 : f32 to vector<64x64xf32>
    %32 = arith.maximumf %30, %31 : vector<64x64xf32>
    %cst_14 = arith.constant 0.000000e+00 : f32
    %33 = vector.broadcast %cst_14 : f32 to vector<8x64xf32>
    %34 = tpu.concatenate %32, %33 in 0 : vector<64x64xf32>, vector<8x64xf32> -> vector<72x64xf32>
    %35 = vector.extract_strided_slice %34 {offsets = [0, 0], sizes = [64, 64], strides = [1, 1]} : vector<72x64xf32> to vector<64x64xf32>
    %36 = vector.extract_strided_slice %34 {offsets = [1, 0], sizes = [64, 64], strides = [1, 1]} : vector<72x64xf32> to vector<64x64xf32>
    %37 = vector.extract_strided_slice %34 {offsets = [2, 0], sizes = [64, 64], strides = [1, 1]} : vector<72x64xf32> to vector<64x64xf32>
    %38 = vector.extract_strided_slice %34 {offsets = [3, 0], sizes = [64, 64], strides = [1, 1]} : vector<72x64xf32> to vector<64x64xf32>
    %39 = vector.extract_strided_slice %34 {offsets = [4, 0], sizes = [64, 64], strides = [1, 1]} : vector<72x64xf32> to vector<64x64xf32>
    %40 = vector.extract_strided_slice %34 {offsets = [5, 0], sizes = [64, 64], strides = [1, 1]} : vector<72x64xf32> to vector<64x64xf32>
    %41 = vector.extract_strided_slice %34 {offsets = [6, 0], sizes = [64, 64], strides = [1, 1]} : vector<72x64xf32> to vector<64x64xf32>
    %42 = vector.extract_strided_slice %34 {offsets = [7, 0], sizes = [64, 64], strides = [1, 1]} : vector<72x64xf32> to vector<64x64xf32>
    %43 = tpu.concatenate %35, %36, %37, %38, %39, %40, %41, %42 in 1 : vector<64x64xf32>, vector<64x64xf32>, vector<64x64xf32>, vector<64x64xf32>, vector<64x64xf32>, vector<64x64xf32>, vector<64x64xf32>, vector<64x64xf32> -> vector<64x512xf32>
    %c0_15 = arith.constant 0 : index
    %c0_16 = arith.constant 0 : index
    %44 = vector.load %arg6[%c0_15, %c0_16] : memref<512x96xbf16, #tpu.memory_space<vmem>>, vector<512x96xbf16>
    %45 = arith.extf %44 : vector<512x96xbf16> to vector<512x96xf32>
    %cst_17 = arith.constant dense<0.000000e+00> : vector<64x96xf32>
    %46 = tpu.matmul %43, %45, %cst_17 {dimension_numbers = #tpu.dot_dimension_numbers<[1], [0], [0], [1], [0, 0, 1, 1], [], []>, precision = #tpu.contract_precision<fp32>} : vector<64x512xf32>, vector<512x96xf32>, vector<64x96xf32> -> vector<64x96xf32>
    %c0_18 = arith.constant 0 : index
    %c0_19 = arith.constant 0 : index
    %47 = vector.load %arg7[%c0_18, %c0_19] : memref<1x96xf32, #tpu.memory_space<vmem>>, vector<1x96xf32>
    %48 = vector.broadcast %47 : vector<1x96xf32> to vector<64x96xf32>
    %49 = arith.addf %46, %48 : vector<64x96xf32>
    %cst_20 = arith.constant 0.000000e+00 : f32
    %50 = vector.broadcast %cst_20 : f32 to vector<64x96xf32>
    %51 = arith.maximumf %49, %50 : vector<64x96xf32>
    %52 = vector.extract_strided_slice %51 {offsets = [0, 0], sizes = [17, 96], strides = [1, 1]} : vector<64x96xf32> to vector<17x96xf32>
    %cst_21 = arith.constant dense<0xFF800000> : vector<96xf32>
    %53 = vector.multi_reduction <maximumf>, %52, %cst_21 [0] : vector<17x96xf32> to vector<96xf32>
    %54 = vector.shape_cast %53 : vector<96xf32> to vector<1x96xf32>
    %55 = vector.extract_strided_slice %51 {offsets = [32, 0], sizes = [17, 96], strides = [1, 1]} : vector<64x96xf32> to vector<17x96xf32>
    %cst_22 = arith.constant dense<0xFF800000> : vector<96xf32>
    %56 = vector.multi_reduction <maximumf>, %55, %cst_22 [0] : vector<17x96xf32> to vector<96xf32>
    %57 = vector.shape_cast %56 : vector<96xf32> to vector<1x96xf32>
    %58 = tpu.concatenate %54, %57 in 0 : vector<1x96xf32>, vector<1x96xf32> -> vector<2x96xf32>
    %c0_23 = arith.constant 0 : index
    %c0_24 = arith.constant 0 : index
    %59 = vector.load %arg8[%c0_23, %c0_24] : memref<96x256xbf16, #tpu.memory_space<vmem>>, vector<96x256xbf16>
    %60 = arith.extf %59 : vector<96x256xbf16> to vector<96x256xf32>
    %cst_25 = arith.constant dense<0.000000e+00> : vector<2x256xf32>
    %61 = tpu.matmul %58, %60, %cst_25 {dimension_numbers = #tpu.dot_dimension_numbers<[1], [0], [0], [1], [0, 0, 1, 1], [], []>, precision = #tpu.contract_precision<fp32>} : vector<2x96xf32>, vector<96x256xf32>, vector<2x256xf32> -> vector<2x256xf32>
    %c0_26 = arith.constant 0 : index
    %c0_27 = arith.constant 0 : index
    %62 = vector.load %arg9[%c0_26, %c0_27] : memref<1x256xf32, #tpu.memory_space<vmem>>, vector<1x256xf32>
    %63 = vector.broadcast %62 : vector<1x256xf32> to vector<2x256xf32>
    %64 = arith.addf %61, %63 : vector<2x256xf32>
    %c0_28 = arith.constant 0 : index
    %c0_29 = arith.constant 0 : index
    %65 = vector.load %arg10[%c0_28, %c0_29] : memref<2x256xf32, #tpu.memory_space<vmem>>, vector<2x256xf32>
    tpu.vector_store %arg10[%c0_28, %c0_29], %64 {strides = array<i32>} : memref<2x256xf32, #tpu.memory_space<vmem>>, vector<2x256xf32>,
    return
  }
  func.func @transform_0(%arg0: i32) -> (i32, i32) {
    %c0_i32 = arith.constant 0 : i32
    %c0_i32_0 = arith.constant 0 : i32
    %c0_i32_1 = arith.constant 0 : i32
    return %c0_i32, %c0_i32_0 : i32, i32
  }
  func.func @transform_1(%arg0: i32) -> (i32, i32) {
    %c0_i32 = arith.constant 0 : i32
    %c0_i32_0 = arith.constant 0 : i32
    %c0_i32_1 = arith.constant 0 : i32
    return %c0_i32, %c0_i32_0 : i32, i32
  }
  func.func @transform_2(%arg0: i32) -> (i32, i32) {
    %c0_i32 = arith.constant 0 : i32
    %c0_i32_0 = arith.constant 0 : i32
    %c0_i32_1 = arith.constant 0 : i32
    return %c0_i32, %c0_i32_0 : i32, i32
  }
  func.func @transform_3(%arg0: i32) -> (i32, i32) {
    %c0_i32 = arith.constant 0 : i32
    %c0_i32_0 = arith.constant 0 : i32
    %c0_i32_1 = arith.constant 0 : i32
    return %c0_i32, %c0_i32_0 : i32, i32
  }
  func.func @transform_4(%arg0: i32) -> (i32, i32) {
    %c0_i32 = arith.constant 0 : i32
    %c0_i32_0 = arith.constant 0 : i32
    %c0_i32_1 = arith.constant 0 : i32
    return %c0_i32, %c0_i32_0 : i32, i32
  }
  func.func @transform_5(%arg0: i32) -> (i32, i32) {
    %c0_i32 = arith.constant 0 : i32
    %c0_i32_0 = arith.constant 0 : i32
    %c0_i32_1 = arith.constant 0 : i32
    return %c0_i32, %c0_i32_0 : i32, i32
  }
  func.func @transform_6(%arg0: i32) -> (i32, i32) {
    %c0_i32 = arith.constant 0 : i32
    %c0_i32_0 = arith.constant 0 : i32
    %c0_i32_1 = arith.constant 0 : i32
    return %c0_i32, %c0_i32_0 : i32, i32
  }
  func.func @transform_7(%arg0: i32) -> (i32, i32) {
    %c0_i32 = arith.constant 0 : i32
    %c0_i32_0 = arith.constant 0 : i32
    %c0_i32_1 = arith.constant 0 : i32
    return %c0_i32, %c0_i32_0 : i32, i32
  }
  func.func @transform_8(%arg0: i32) -> (i32, i32) {
    %c0_i32 = arith.constant 0 : i32
    %c0_i32_0 = arith.constant 0 : i32
    %c0_i32_1 = arith.constant 0 : i32
    return %c0_i32, %c0_i32_0 : i32, i32
  }
  func.func @transform_9(%arg0: i32) -> (i32, i32) {
    %c0_i32 = arith.constant 0 : i32
    %c0_i32_0 = arith.constant 0 : i32
    %c0_i32_1 = arith.constant 0 : i32
    return %c0_i32, %c0_i32_0 : i32, i32
  }
}

</mosaic_0001>

<bundles_post_ra>
// kernel: tpu_custom_call.1
= control target key start
LH: loop header
LB: loop body
LE: loop exit
PB: predicated region body
PF: predicated region fallthrough
CT: control target
= control target key end

     0   :  { %vm92_vm0 = vcmask 1045504   ;;  %vm50_vm1 = vcmask 1046528   ;;  %s7639_s15 = smov 8   ;;  %s7640_s16 = smov 4   ;;  %s11340_s0 = inlined_call_operand.vmem [shape: f32[64,4], index: 0, kind: input, shape index: {}]   ;;  %s11341_s1 = inlined_call_operand.vmem [shape: bf16[16,32], index: 1, kind: input, shape index: {}]   ;;  %s11342_s2 = inlined_call_operand.vmem [shape: f32[1,32], index: 2, kind: input, shape index: {}]   ;;  %s11343_s3 = inlined_call_operand.vmem [shape: bf16[192,64], index: 3, kind: input, shape index: {}]   ;;  %s11344_s4 = inlined_call_operand.vmem [shape: f32[1,64], index: 4, kind: input, shape index: {}]   ;;  %s11345_s5 = inlined_call_operand.vmem [shape: bf16[512,96], index: 5, kind: input, shape index: {}]   ;;  %s11346_s6 = inlined_call_operand.vmem [shape: f32[1,96], index: 6, kind: input, shape index: {}]   ;;  %s11347_s7 = inlined_call_operand.vmem [shape: bf16[96,256], index: 7, kind: input, shape index: {}]   ;;  %s11348_s8 = inlined_call_operand.vmem [shape: f32[1,256], index: 8, kind: input, shape index: {}]   ;;  %s11349_s9 = inlined_call_operand.hbm [shape: f32[2,256], index: 9, kind: output, shape index: {}]  }
   0x1   :  { %v7701_v0 = vld [vmem:[%s11340_s0] sm:$0xff]  ;;  %v7706_v1 = vld [vmem:[%s11340_s0 + $0x8] sm:$0xff]  ;;  %v7715_v6 = vld [vmem:[%s11340_s0 + $0x10] sm:$0xff] }
   0x2   :  { %v93_v2 = vrot.slane %v7701_v0, 2  ;;  %v94_v3 = vrot.slane %v7706_v1, 2  ;;  %v51_v4 = vrot.slane %v7701_v0, 1  ;;  %v52_v5 = vrot.slane %v7706_v1, 1  ;;  %v7727_v12 = vld [vmem:[%s11341_s1] sm:$0xff]  }
   0x3   :  { %v96_v7 = vrot.slane %v7715_v6, 2  ;;  %v54_v8 = vrot.slane %v7715_v6, 1  ;;  %v136_v11 = vrot.slane %v7706_v1, 3 }
   0x4   :  { %v95_v9 = vsel %vm92_vm0, %v93_v2, %v94_v3  ;;  %v53_v10 = vsel %vm50_vm1, %v51_v4, %v52_v5 }
   0x5   :  { %110 = vrot.lane.b32.xlu1 %v95_v9, %s7639_s15  ;;  %68 = vrot.lane.b32.xlu0 %v53_v10, %s7640_s16 }
   0x6   :  { %14 = vsyncpa [#allocation3], 0  ;;  %v97_v13 = vsel %vm92_vm0, %v94_v3, %v96_v7  ;;  %v55_v14 = vsel %vm50_vm1, %v52_v5, %v54_v8  ;;  %v138_v15 = vrot.slane %v7715_v6, 3  ;;  %v135_v16 = vrot.slane %v7701_v0, 3  ;;  %6599 = vmatprep.subr.bf16.mxu1 %v7727_v12  ;;  %v7737_v17 = vld [vmem:[%s11340_s0 + $0x18] sm:$0xff]  ;;  %v7742_v18 = vld [vmem:[%s11340_s0 + $0x20] sm:$0xff] }
   0x7   :  { %vm134_vm2 = vcmask 1044480   ;;  %6601 = vmatpush3.bf16.msra.mxu1 %v7727_v12  ;;  %v56_v21 = vrot.slane %v7737_v17, 1  ;;  %v58_v22 = vrot.slane %v7742_v18, 1  ;;  %s7641_s22 = smov 12   ;;  %v98_v25 = vrot.slane %v7737_v17, 2  ;;  %v7768_v33 = vld [vmem:[%s11340_s0 + $0x28] sm:$0xff] }
   0x8   :  { %v139_v19 = vsel %vm134_vm2, %v136_v11, %v138_v15  ;;  %v137_v20 = vsel %vm134_vm2, %v135_v16, %v136_v11  ;;  %v100_v26 = vrot.slane %v7742_v18, 2  ;;  %v5550_v27 = vunpack.c.l.bf16 %v7727_v12  ;;  %v7773_v34 = vld [vmem:[%s11340_s0 + $0x30] sm:$0xff]  ;;  %v7798_v57 = vld [vmem:[%s11340_s0 + $0x38] sm:$0xff]  ;;  %s7645_s29 = smov 96   ;;  %s7646_s30 = smov 64  }
   0x9   :  { %112 = vrot.lane.b32.xlu1 %v97_v13, %s7639_s15  ;;  %70 = vrot.lane.b32.xlu0 %v55_v14, %s7640_s16  ;;  %v59_v23 = vsel %vm50_vm1, %v56_v21, %v58_v22  ;;  %v57_v24 = vsel %vm50_vm1, %v54_v8, %v56_v21  ;;  %v5551_v28 = vunpack.c.h.bf16 %v7727_v12  ;;  %v140_v29 = vrot.slane %v7737_v17, 3  ;;  %s7647_s13 = smov [#allocation2]  }
   0xa   :  { %v142_v30 = vrot.slane %v7742_v18, 3  ;;  %v101_v31 = vsel %vm92_vm0, %v98_v25, %v100_v26  ;;  %v99_v32 = vsel %vm92_vm0, %v96_v7, %v98_v25  ;;  %v385_v35 = vsub.f32 %v5550_v27, %v5550_v27 }
   0xb   :  { %v391_v36 = vsub.f32 %v5551_v28, %v5551_v28  ;;  %v60_v39 = vrot.slane %v7768_v33, 1  ;;  %v62_v40 = vrot.slane %v7773_v34, 1  ;;  %v141_v42 = vsel %vm134_vm2, %v138_v15, %v140_v29 }
   0xc   :  { %v386_v37 = vand.u32 4294901760, %v385_v35  ;;  %v143_v41 = vsel %vm134_vm2, %v140_v29, %v142_v30  ;;  %v102_v47 = vrot.slane %v7768_v33, 2  ;;  %v104_v50 = vrot.slane %v7773_v34, 2 }
   0xd   :  { %154 = vrot.lane.b32.xlu1 %v139_v19, %s7641_s22  ;;  %152 = vrot.lane.b32.xlu0 %v137_v20, %s7641_s22  ;;  %v392_v38 = vand.u32 4294901760, %v391_v36  ;;  %v63_v48 = vsel %vm50_vm1, %v60_v39, %v62_v40  ;;  %v61_v49 = vsel %vm50_vm1, %v58_v22, %v60_v39  ;;  %v7787_v52 = vpack.c.bf16 %v391_v36, %v385_v35 }
   0xe   :  { %v387_v43 = vsub.f32 %v385_v35, %v386_v37  ;;  %v105_v53 = vsel %vm92_vm0, %v102_v47, %v104_v50  ;;  %v103_v54 = vsel %vm92_vm0, %v100_v26, %v102_v47  ;;  %v144_v55 = vrot.slane %v7768_v33, 3 }
   0xf   :  { %v393_v44 = vsub.f32 %v391_v36, %v392_v38  ;;  %v146_v56 = vrot.slane %v7773_v34, 3  ;;  %v64_v60 = vrot.slane %v7798_v57, 1  ;;  %v11358_v61 = vmov 0.0  }
  0x10   :  { %v388_v45 = vand.u32 4294901760, %v387_v43  ;;  %v145_v59 = vsel %vm134_vm2, %v142_v30, %v144_v55  ;;  %v7807_v62 = vrot.slane %v11358_v61, 1  ;;  %v106_v3 = vrot.slane %v7798_v57, 2 }
  0x11   :  { %74 = vrot.lane.b32.xlu1 %v59_v23, %s7640_s16  ;;  %72 = vrot.lane.b32.xlu0 %v57_v24, %s7640_s16  ;;  %v394_v46 = vand.u32 4294901760, %v393_v44  ;;  %v147_v58 = vsel %vm134_vm2, %v144_v55, %v146_v56  ;;  %v65_v2 = vsel %vm50_vm1, %v62_v40, %v64_v60  ;;  %v7816_v4 = vrot.slane %v11358_v61, 2 }
  0x12   :  { %11705 = vst [vmem:[#allocation5_spill] sm:$0xff] %v7807_v62  ;;  %v67_v63 = vsel %vm50_vm1, %v64_v60, %v7807_v62  ;;  %v107_v7 = vsel %vm92_vm0, %v104_v50, %v106_v3  ;;  %v148_v8 = vrot.slane %v7798_v57, 3  ;;  %v7825_v9 = vrot.slane %v11358_v61, 3 }
  0x13   :  { %v6602_v51 = vpack.c.bf16 %v394_v46, %v388_v45  ;;  %11706 = vst [vmem:[#allocation6_spill] sm:$0xff] %v7816_v4  ;;  %v109_v5 = vsel %vm92_vm0, %v106_v3, %v7816_v4  ;;  %v7834_v13 = vpack.c.bf16 %v392_v38, %v386_v37  ;;  %vm176_vm3 = vcmask 31744  }
  0x14   :  { %11707 = vst [vmem:[#allocation7_spill] sm:$0xff] %v7825_v9  ;;  %v151_v10 = vsel %vm134_vm2, %v148_v8, %v7825_v9  ;;  %v149_v11 = vsel %vm134_vm2, %v146_v56, %v148_v8  ;;  %vm185_vm4 = vcmask 64512   ;;  %vm194_vm5 = vcmask 97280  }
  0x15   :  { %116 = vrot.lane.b32.xlu1 %v101_v31, %s7639_s15  ;;  %114 = vrot.lane.b32.xlu0 %v99_v32, %s7639_s15  ;;  %vm214_vm6 = vcmask 130048   ;;  %vm1149_vm7 = vcmask 1042432   ;;  %vm1123_vm8 = vcmask 1043456   ;;  %vm1191_vm9 = vcmask 261120  }
  0x16   :  { %6603 = vmatprep.subr.bf16.mxu0 %v6602_v51  ;;  %vm1200_vm10 = vcmask 523264   ;;  %vm1209_vm11 = vcmask 785408   ;;  %vm2521_vm12 = vcmask 1040384   ;;  %vm2495_vm13 = vcmask 1041408  }
  0x17   :  { %6605 = vmatpush3.bf16.msra.mxu0 %v6602_v51  ;;  %vm4838_vm14 = vcmask 778240  }
  0x18   :  { %6607 = vmatprep.subr.bf16.mxu0 %v7787_v52 }
  0x19   :  { %158 = vrot.lane.b32.xlu1 %v143_v41, %s7641_s22  ;;  %156 = vrot.lane.b32.xlu0 %v141_v42, %s7641_s22 }
  0x1d   :  { %78 = vrot.lane.b32.xlu1 %v63_v48, %s7640_s16  ;;  %76 = vrot.lane.b32.xlu0 %v61_v49, %s7640_s16 }
  0x21   :  { %120 = vrot.lane.b32.xlu1 %v105_v53, %s7639_s15  ;;  %118 = vrot.lane.b32.xlu0 %v103_v54, %s7639_s15 }
  0x25   :  { %162 = vrot.lane.b32.xlu1 %v147_v58, %s7641_s22  ;;  %160 = vrot.lane.b32.xlu0 %v145_v59, %s7641_s22 }
  0x29   :  { %82 = vrot.lane.b32.xlu1 %v67_v63, %s7640_s16  ;;  %80 = vrot.lane.b32.xlu0 %v65_v2, %s7640_s16 }
  0x2d   :  { %124 = vrot.lane.b32.xlu1 %v109_v5, %s7639_s15  ;;  %122 = vrot.lane.b32.xlu0 %v107_v7, %s7639_s15 }
  0x31   :  { %166 = vrot.lane.b32.xlu1 %v151_v10, %s7641_s22  ;;  %164 = vrot.lane.b32.xlu0 %v149_v11, %s7641_s22 }
  0x77   :  { %v111_v14 = vpop.permute.xlu1 %110  ;;  %v69_v15 = vpop.permute.xlu0 %68 }
  0x78   :  { %v177_v20 = vsel %vm176_vm3, %v7701_v0, %v69_v15 }
  0x79   :  { %v186_v24 = vsel %vm185_vm4, %v177_v20, %v111_v14 }
  0x7b   :  { %v113_v16 = vpop.permute.xlu1 %112  ;;  %v71_v19 = vpop.permute.xlu0 %70 }
  0x7c   :  { %v178_v21 = vsel %vm176_vm3, %v7706_v1, %v71_v19 }
  0x7d   :  { %v187_v23 = vsel %vm185_vm4, %v178_v21, %v113_v16 }
  0x7f   :  { %v155_v22 = vpop.permute.xlu1 %154  ;;  %v153_v25 = vpop.permute.xlu0 %152 }
  0x80   :  { %v196_v26 = vsel %vm194_vm5, %v187_v23, %v155_v22  ;;  %v195_v27 = vsel %vm194_vm5, %v186_v24, %v153_v25 }
  0x81   :  { %v219_v28 = vsel %vm214_vm6, %v196_v26, 0  ;;  %v216_v0 = vsel %vm214_vm6, %v195_v27, 0 }
  0x82   :  { %v7846_v29 = vand.u32 4294901760, %v219_v28  ;;  %v7848_v1 = vand.u32 4294901760, %v216_v0 }
  0x83   :  { %v75_v30 = vpop.permute.xlu1 %74  ;;  %v73_v31 = vpop.permute.xlu0 %72 }
  0x84   :  { %v7851_v32 = vsub.f32 %v219_v28, %v7846_v29  ;;  %v7854_v35 = vsub.f32 %v216_v0, %v7848_v1  ;;  %6522 = vmatprep.mubr.f32.mxu0 %v7848_v1  ;;  %v180_v42 = vsel %vm176_vm3, %v7737_v17, %v75_v30  ;;  %v179_v43 = vsel %vm176_vm3, %v7715_v6, %v73_v31 }
  0x85   :  { %6523 = vmatmul.mubr.f32.vlgmr.msra.gmra.mrb[0].mxu0 %v7846_v29 }
  0x86   :  { %v306_v36 = vand.u32 4294901760, %v7854_v35  ;;  %v316_v37 = vand.u32 4294901760, %v7851_v32  ;;  %6609 = vmatpush3.bf16.msra.mxu0 %v7787_v52 }
  0x87   :  { %v117_v38 = vpop.permute.xlu1 %116  ;;  %v115_v39 = vpop.permute.xlu0 %114  ;;  %6611 = vmatprep.subr.bf16.mxu0 %v7727_v12 }
  0x88   :  { %v307_v40 = vsub.f32 %v7854_v35, %v306_v36  ;;  %v317_v41 = vsub.f32 %v7851_v32, %v316_v37  ;;  %v189_v46 = vsel %vm185_vm4, %v180_v42, %v117_v38  ;;  %v188_v47 = vsel %vm185_vm4, %v179_v43, %v115_v39 }
  0x8a   :  { %v308_v44 = vand.u32 4294901760, %v307_v40  ;;  %v318_v45 = vand.u32 4294901760, %v317_v41 }
  0x8b   :  { %v159_v48 = vpop.permute.xlu1 %158  ;;  %v157_v49 = vpop.permute.xlu0 %156 }
  0x8c   :  { %v198_v50 = vsel %vm194_vm5, %v189_v46, %v159_v48  ;;  %v197_v51 = vsel %vm194_vm5, %v188_v47, %v157_v49  ;;  %6506 = vmatprep.mubr.f32.mxu1 %v308_v44 }
  0x8d   :  { %v225_v52 = vsel %vm214_vm6, %v198_v50, 0  ;;  %v222_v17 = vsel %vm214_vm6, %v197_v51, 0  ;;  %6507 = vmatmul.mubr.f32.vlgmr.msra.gmra.mrb[0].mxu1 %v318_v45 }
  0x8e   :  { %v7878_v53 = vand.u32 4294901760, %v225_v52  ;;  %v7880_v6 = vand.u32 4294901760, %v222_v17 }
  0x8f   :  { %v79_v54 = vpop.permute.xlu1 %78  ;;  %v77_v55 = vpop.permute.xlu0 %76 }
  0x90   :  { %v7883_v56 = vsub.f32 %v225_v52, %v7878_v53  ;;  %v7886_v58 = vsub.f32 %v222_v17, %v7880_v6  ;;  %6525 = vmatprep.mubr.f32.mxu0 %v7880_v6  ;;  %v182_v7 = vsel %vm176_vm3, %v7768_v33, %v79_v54  ;;  %v181_v8 = vsel %vm176_vm3, %v7742_v18, %v77_v55 }
  0x91   :  { %6526 = vmatmul.mubr.f32.gmra.mrb[2].mxu0 %v7878_v53 }
  0x92   :  { %v326_v59 = vand.u32 4294901760, %v7886_v58  ;;  %v336_v60 = vand.u32 4294901760, %v7883_v56 }
  0x93   :  { %v121_v63 = vpop.permute.xlu1 %120  ;;  %v119_v2 = vpop.permute.xlu0 %118 }
  0x94   :  { %v327_v3 = vsub.f32 %v7886_v58, %v326_v59  ;;  %v337_v5 = vsub.f32 %v7883_v56, %v336_v60  ;;  %v191_v14 = vsel %vm185_vm4, %v182_v7, %v121_v63  ;;  %v190_v15 = vsel %vm185_vm4, %v181_v8, %v119_v2  ;;  %v7994_v7 = vld [vmem:[%s11343_s3 + $0x28] sm:$0xff]   ;;  %v8001_v8 = vld [vmem:[%s11343_s3 + $0x30] sm:$0xff]  }
  0x96   :  { %v328_v10 = vand.u32 4294901760, %v327_v3  ;;  %v338_v11 = vand.u32 4294901760, %v337_v5 }
  0x97   :  { %v163_v16 = vpop.permute.xlu1 %162  ;;  %v161_v19 = vpop.permute.xlu0 %160 }
  0x98   :  { %v200_v20 = vsel %vm194_vm5, %v191_v14, %v163_v16  ;;  %v199_v21 = vsel %vm194_vm5, %v190_v15, %v161_v19  ;;  %6509 = vmatprep.mubr.f32.mxu1 %v328_v10  ;;  %v8008_v10 = vld [vmem:[%s11343_s3 + $0x38] sm:$0xff]   ;;  %v8018_v19 = vld [vmem:[%s11343_s3 + $0x40] sm:$0xff]  }
  0x99   :  { %v231_v22 = vsel %vm214_vm6, %v200_v20, 0  ;;  %v228_v33 = vsel %vm214_vm6, %v199_v21, 0  ;;  %6510 = vmatmul.mubr.f32.gmra.mrb[2].mxu1 %v338_v11  ;;  %v5544_v11 = vld [vmem:[%s11342_s2] ss:$0 sm:$0xff]  ;;  %s7644_s2 = smov 32  }
  0x9a   :  { %v7908_v23 = vand.u32 4294901760, %v231_v22  ;;  %v7910_v18 = vand.u32 4294901760, %v228_v33 }
  0x9b   :  { %v83_v24 = vpop.permute.xlu1 %82  ;;  %v81_v25 = vpop.permute.xlu0 %80 }
  0x9c   :  { %v355_v26 = vsub.f32 %v231_v22, %v7908_v23  ;;  %v345_v27 = vsub.f32 %v228_v33, %v7910_v18  ;;  %6528 = vmatprep.mubr.f32.mxu0 %v7910_v18  ;;  %v184_v40 = vsel %vm176_vm3, %v7798_v57, %v83_v24  ;;  %v183_v41 = vsel %vm176_vm3, %v7773_v34, %v81_v25 }
  0x9d   :  { %6529 = vmatmul.mubr.f32.gmra.mrb[4].mxu0 %v7908_v23 }
  0x9e   :  { %v346_v28 = vand.u32 4294901760, %v345_v27  ;;  %v356_v0 = vand.u32 4294901760, %v355_v26 }
  0x9f   :  { %v125_v30 = vpop.permute.xlu1 %124  ;;  %v123_v31 = vpop.permute.xlu0 %122 }
  0xa0   :  { %v347_v38 = vsub.f32 %v345_v27, %v346_v28  ;;  %v357_v39 = vsub.f32 %v355_v26, %v356_v0  ;;  %v193_v44 = vsel %vm185_vm4, %v184_v40, %v125_v30  ;;  %v192_v45 = vsel %vm185_vm4, %v183_v41, %v123_v31 }
  0xa2   :  { %v348_v42 = vand.u32 4294901760, %v347_v38  ;;  %v358_v43 = vand.u32 4294901760, %v357_v39 }
  0xa3   :  { %v167_v46 = vpop.permute.xlu1 %166  ;;  %v165_v47 = vpop.permute.xlu0 %164 }
  0xa4   :  { %v202_v48 = vsel %vm194_vm5, %v193_v44, %v167_v46  ;;  %v201_v49 = vsel %vm194_vm5, %v192_v45, %v165_v47  ;;  %6512 = vmatprep.mubr.f32.mxu1 %v348_v42 }
  0xa5   :  { %v237_v50 = vsel %vm214_vm6, %v202_v48, 0  ;;  %v234_v57 = vsel %vm214_vm6, %v201_v49, 0  ;;  %6513 = vmatmul.mubr.f32.gmra.mrb[4].mxu1 %v358_v43 }
  0xa6   :  { %v374_v51 = vand.u32 4294901760, %v237_v50  ;;  %v364_v34 = vand.u32 4294901760, %v234_v57 }
  0xa8   :  { %v375_v52 = vsub.f32 %v237_v50, %v374_v51  ;;  %v365_v17 = vsub.f32 %v234_v57, %v364_v34  ;;  %6531 = vmatprep.mubr.f32.mxu0 %v364_v34 }
  0xa9   :  { %6532 = vmatmul.mubr.f32.gmra.mrb[6].mxu0 %v374_v51 }
  0xaa   :  { %6538 = vmatprep.mubr.f32.mxu0 %v7854_v35  ;;  %v366_v54 = vand.u32 4294901760, %v365_v17  ;;  %v376_v55 = vand.u32 4294901760, %v375_v52 }
  0xac   :  { %v367_v63 = vsub.f32 %v365_v17, %v366_v54  ;;  %v377_v2 = vsub.f32 %v375_v52, %v376_v55 }
  0xad   :  { %6539 = vmatmul.mubr.f32.vlgmr.msra.gmra.mrb[0].mxu0 %v7851_v32 }
  0xae   :  { %6613 = vmatpush3.bf16.msra.mxu0 %v7727_v12  ;;  %6541 = vmatprep.mubr.f32.mxu0 %v7886_v58  ;;  %v368_v3 = vand.u32 4294901760, %v367_v63  ;;  %v378_v5 = vand.u32 4294901760, %v377_v2 }
  0xaf   :  { %6615 = vmatprep.subr.bf16.mxu0 %v7834_v13 }
  0xb0   :  { %6515 = vmatprep.mubr.f32.mxu1 %v368_v3  ;;  %v8054_v3 = vld [vmem:[%s11343_s3 + $0x50] sm:$0xff]  }
  0xb1   :  { %6516 = vmatmul.mubr.f32.gmra.mrb[6].mxu1 %v378_v5  ;;  %6542 = vmatmul.mubr.f32.gmra.mrb[2].mxu0 %v7883_v56  ;;  %v7980_v56 = vld [vmem:[%s11343_s3 + $0x18] sm:$0xff]  }
  0xb2   :  { %6544 = vmatprep.mubr.f32.mxu0 %v345_v27 }
  0xb5   :  { %6545 = vmatmul.mubr.f32.gmra.mrb[4].mxu0 %v355_v26 }
  0xb6   :  { %6547 = vmatprep.mubr.f32.mxu0 %v365_v17 }
  0xb9   :  { %6548 = vmatmul.mubr.f32.gmra.mrb[6].mxu0 %v375_v52 }
  0xba   :  { %6554 = vmatprep.mubr.f32.mxu0 %v306_v36 }
  0xbd   :  { %6555 = vmatmul.mubr.f32.vlgmr.msra.gmra.mrb[0].mxu0 %v316_v37  ;;  %v7966_v37 = vld [vmem:[%s11343_s3 + $0x8] sm:$0xff]  }
  0xbe   :  { %6617 = vmatpush3.bf16.msra.mxu0 %v7834_v13  ;;  %6557 = vmatprep.mubr.f32.mxu0 %v326_v59  ;;  %v7987_v59 = vld [vmem:[%s11343_s3 + $0x20] sm:$0xff]  }
  0xbf   :  { %6619 = vmatprep.subr.bf16.mxu0 %v7727_v12 }
  0xc1   :  { %6558 = vmatmul.mubr.f32.gmra.mrb[2].mxu0 %v336_v60 }
  0xc2   :  { %6560 = vmatprep.mubr.f32.mxu0 %v346_v28 }
  0xc5   :  { %6561 = vmatmul.mubr.f32.gmra.mrb[4].mxu0 %v356_v0 }
  0xc6   :  { %6563 = vmatprep.mubr.f32.mxu0 %v366_v54 }
  0xc9   :  { %6564 = vmatmul.mubr.f32.gmra.mrb[6].mxu0 %v376_v55 }
  0xca   :  { %6570 = vmatprep.mubr.f32.mxu0 %v7848_v1 }
  0xcd   :  { %6571 = vmatmul.mubr.f32.vlgmr.msra.gmra.mrb[0].mxu0 %v7846_v29 }
  0xce   :  { %6621 = vmatpush3.bf16.msra.mxu0 %v7727_v12  ;;  %6573 = vmatprep.mubr.f32.mxu0 %v7880_v6 }
  0xd1   :  { %6574 = vmatmul.mubr.f32.gmra.mrb[2].mxu0 %v7878_v53 }
  0xd2   :  { %6576 = vmatprep.mubr.f32.mxu0 %v7910_v18 }
  0xd5   :  { %6577 = vmatmul.mubr.f32.gmra.mrb[4].mxu0 %v7908_v23 }
  0xd6   :  { %6579 = vmatprep.mubr.f32.mxu0 %v364_v34 }
  0xd9   :  { %6580 = vmatmul.mubr.f32.gmra.mrb[6].mxu0 %v374_v51 }
  0xda   :  { %6586 = vmatprep.mubr.f32.mxu0 %v7848_v1  ;;  %v7958_v1 = vld [vmem:[%s11343_s3] sm:$0xff]  }
  0xdd   :  { %6587 = vmatmul.mubr.f32.vlgmr.msra.gmra.mrb[0].mxu0 %v7846_v29  ;;  %v11360_v29 = vmov 0.0|0.0  }
  0xde   :  { %6589 = vmatprep.mubr.f32.mxu0 %v7880_v6  ;;  %6622 = vmatprep.subr.bf16.mxu1 %v11360_v29  ;;  %v7973_v6 = vld [vmem:[%s11343_s3 + $0x10] sm:$0xff]  }
  0xdf   :  { %6624 = vmatpush1.bf16.msra.mxu1 %v7958_v1 }
  0xe0   :  { %6625 = vmatprep.subr.bf16.mxu1 %v11360_v29 }
  0xe1   :  { %6590 = vmatmul.mubr.f32.gmra.mrb[2].mxu0 %v7878_v53 }
  0xe2   :  { %6592 = vmatprep.mubr.f32.mxu0 %v7910_v18 }
  0xe3   :  { %6627 = vmatpush1.bf16.msra.mxu1 %v7966_v37 }
  0xe4   :  { %6628 = vmatprep.subr.bf16.mxu1 %v11360_v29 }
  0xe5   :  { %6593 = vmatmul.mubr.f32.gmra.mrb[4].mxu0 %v7908_v23 }
  0xe6   :  { %6595 = vmatprep.mubr.f32.mxu0 %v364_v34 }
  0xe7   :  { %6630 = vmatpush1.bf16.msra.mxu1 %v7973_v6 }
  0xe8   :  { %6631 = vmatprep.subr.bf16.mxu1 %v11360_v29 }
  0xe9   :  { %6596 = vmatmul.mubr.f32.gmra.mrb[6].mxu0 %v374_v51  ;;  %v8043_v51 = vld [vmem:[%s11343_s3 + $0x48] sm:$0xff]  }
  0xeb   :  { %6633 = vmatpush1.bf16.msra.mxu1 %v7980_v56 }
  0xec   :  { %6634 = vmatprep.subr.bf16.mxu1 %v11360_v29 }
  0xef   :  { %6636 = vmatpush1.bf16.msra.mxu1 %v7987_v59 }
  0xf0   :  { %6637 = vmatprep.subr.bf16.mxu1 %v11360_v29 }
  0xf3   :  { %6639 = vmatpush1.bf16.msra.mxu1 %v7994_v7 }
  0xf4   :  { %6640 = vmatprep.subr.bf16.mxu1 %v11360_v29 }
  0xf7   :  { %6642 = vmatpush1.bf16.msra.mxu1 %v8001_v8 }
  0xf8   :  { %6643 = vmatprep.subr.bf16.mxu1 %v11360_v29 }
  0xfb   :  { %6645 = vmatpush1.bf16.msra.mxu1 %v8008_v10 }
  0xfc   :  { %6646 = vmatprep.subr.bf16.mxu1 %v11360_v29 }
  0xff   :  { %6648 = vmatpush1.bf16.msra.mxu1 %v8018_v19 }
 0x100   :  { %6649 = vmatprep.subr.bf16.mxu1 %v11360_v29 }
 0x103   :  { %6651 = vmatpush1.bf16.msra.mxu1 %v8043_v51 }
 0x104   :  { %6652 = vmatprep.subr.bf16.mxu1 %v11360_v29 }
 0x107   :  { %6654 = vmatpush1.bf16.msra.mxu1 %v8054_v3 }
 0x108   :  { %6655 = vmatprep.subr.bf16.mxu1 %v11360_v29 }
 0x160   :  { %v6508_v12 = vpop.f32.mrb[0].mxu1 }
 0x161   :  { %v310_v13 = vpop.f32.mrb[1].mxu1  ;;  %v321_v14 = vadd.f32 %v6508_v12, %v5544_v11 }
 0x162   :  { %v311_v15 = vadd.f32 %v5544_v11, %v310_v13 }
 0x16c   :  { %v6511_v32 = vpop.f32.mrb[2].mxu1 }
 0x16d   :  { %v330_v35 = vpop.f32.mrb[3].mxu1  ;;  %v341_v33 = vadd.f32 %v6511_v32, %v5544_v11 }
 0x16e   :  { %v331_v18 = vadd.f32 %v5544_v11, %v330_v35 }
 0x178   :  { %v6514_v36 = vpop.f32.mrb[4].mxu1 }
 0x179   :  { %v350_v53 = vpop.f32.mrb[5].mxu1  ;;  %v361_v30 = vadd.f32 %v6514_v36, %v5544_v11 }
 0x17a   :  { %v351_v40 = vadd.f32 %v5544_v11, %v350_v53 }
 0x184   :  { %v6517_v58 = vpop.f32.mrb[6].mxu1 }
 0x185   :  { %v370_v60 = vpop.f32.mrb[7].mxu1  ;;  %v381_v34 = vadd.f32 %v6517_v58, %v5544_v11 }
 0x186   :  { %v371_v52 = vadd.f32 %v5544_v11, %v370_v60  ;;  %v8069_v60 = vld [vmem:[%s11343_s3 + $0x58] sm:$0xff]  }
 0x187   :  { %6657 = vmatpush1.bf16.msra.mxu1 %v8069_v60 }
 0x188   :  { %6658 = vmatprep.subr.bf16.mxu1 %v11360_v29 }
 0x1b0   :  { %v6588_v16 = vpop.f32.mrb[0].mxu0 }
 0x1b1   :  { %v7367_v20 = vadd.f32 %v6588_v16, %v321_v14  ;;  %v941_v21 = vpop.f32.mrb[1].mxu0 }
 0x1b2   :  { %v7369_v22 = vadd.f32 %v941_v21, %v311_v15 }
 0x1b3   :  { %v8022_v23 = vmax.f32 %v7367_v20, 0.0 }
 0x1b4   :  { %v8024_v24 = vmax.f32 %v7369_v22, 0.0  ;;  %v6591_v25 = vpop.f32.mrb[2].mxu0 }
 0x1b5   :  { %v7371_v26 = vadd.f32 %v6591_v25, %v341_v33  ;;  %v953_v27 = vpop.f32.mrb[3].mxu0  ;;  %v1151_v28 = vrot.slane %v8022_v23, 5  ;;  %v1004_v0 = vrot.slane %v8022_v23, 1  ;;  %v1084_v42 = vrot.slane %v8022_v23, 3 }
 0x1b6   :  { %v7373_v31 = vadd.f32 %v953_v27, %v331_v18  ;;  %v1150_v38 = vrot.slane %v8024_v24, 5  ;;  %v1003_v39 = vrot.slane %v8024_v24, 1  ;;  %v1083_v41 = vrot.slane %v8024_v24, 3 }
 0x1b7   :  { %v1043_v43 = vrot.slane %v8024_v24, 2  ;;  %v1044_v48 = vrot.slane %v8022_v23, 2  ;;  %v8058_v32 = vmax.f32 %v7371_v26, 0.0 }
 0x1b8   :  { %v8033_v44 = vmax.f32 %v7373_v31, 0.0  ;;  %v6594_v45 = vpop.f32.mrb[4].mxu0  ;;  %v1152_v46 = vsel %vm1149_vm7, %v1150_v38, %v1151_v28  ;;  %v1005_v47 = vsel %vm50_vm1, %v1003_v39, %v1004_v0  ;;  %v1085_v54 = vsel %vm134_vm2, %v1083_v41, %v1084_v42 }
 0x1b9   :  { %v7375_v49 = vadd.f32 %v6594_v45, %v361_v30  ;;  %v965_v50 = vpop.f32.mrb[5].mxu0  ;;  %1167 = vrot.lane.b32.xlu1 %v1152_v46, %s7644_s2  ;;  %1019 = vrot.lane.b32.xlu0 %v1005_v47, %s7644_s2  ;;  %v1045_v55 = vsel %vm92_vm0, %v1043_v43, %v1044_v48  ;;  %v1155_v15 = vrot.slane %v8058_v32, 5  ;;  %v1008_v16 = vrot.slane %v8058_v32, 1 }
 0x1ba   :  { %v7377_v57 = vadd.f32 %v965_v50, %v351_v40  ;;  %v1153_v63 = vrot.slane %v8033_v44, 5  ;;  %v1006_v2 = vrot.slane %v8033_v44, 1  ;;  %v1086_v53 = vrot.slane %v8033_v44, 3 }
 0x1bb   :  { %v1046_v58 = vrot.slane %v8033_v44, 2  ;;  %v1088_v20 = vrot.slane %v8058_v32, 3  ;;  %v1048_v18 = vrot.slane %v8058_v32, 2 }
 0x1bc   :  { %v6597_v17 = vpop.f32.mrb[6].mxu0  ;;  %v1154_v35 = vsel %vm1149_vm7, %v1151_v28, %v1153_v63  ;;  %v1007_v36 = vsel %vm50_vm1, %v1004_v0, %v1006_v2  ;;  %v1087_v11 = vsel %vm134_vm2, %v1084_v42, %v1086_v53  ;;  %v8082_v21 = vmax.f32 %v7377_v57, 0.0 }
 0x1bd   :  { %v7379_v5 = vadd.f32 %v6597_v17, %v381_v34  ;;  %v977_v12 = vpop.f32.mrb[7].mxu0  ;;  %1099 = vrot.lane.b32.xlu1 %v1085_v54, %s7645_s29  ;;  %1059 = vrot.lane.b32.xlu0 %v1045_v55, %s7646_s30  ;;  %v1047_v14 = vsel %vm92_vm0, %v1044_v48, %v1046_v58  ;;  %v1156_v22 = vsel %vm1149_vm7, %v1153_v63, %v1155_v15  ;;  %v8095_v0 = vmax.f32 %v7375_v49, 0.0 }
 0x1be   :  { %v7381_v13 = vadd.f32 %v977_v12, %v371_v52  ;;  %v1009_v33 = vsel %vm50_vm1, %v1006_v2, %v1008_v16  ;;  %v1089_v25 = vsel %vm134_vm2, %v1086_v53, %v1088_v20  ;;  %v1049_v26 = vsel %vm92_vm0, %v1046_v58, %v1048_v18 }
 0x1bf   :  { %v1157_v27 = vrot.slane %v8082_v21, 5  ;;  %v1010_v28 = vrot.slane %v8082_v21, 1  ;;  %v1090_v38 = vrot.slane %v8082_v21, 3  ;;  %v1050_v39 = vrot.slane %v8082_v21, 2 }
 0x1c0   :  { %v1159_v42 = vrot.slane %v8095_v0, 5  ;;  %v1012_v43 = vrot.slane %v8095_v0, 1  ;;  %v8109_v45 = vmax.f32 %v7379_v5, 0.0  ;;  %v1092_v48 = vrot.slane %v8095_v0, 3 }
 0x1c1   :  { %1169 = vrot.lane.b32.xlu1 %v1154_v35, %s7644_s2  ;;  %1021 = vrot.lane.b32.xlu0 %v1007_v36, %s7644_s2  ;;  %v1158_v30 = vsel %vm1149_vm7, %v1155_v15, %v1157_v27  ;;  %v1011_v31 = vsel %vm50_vm1, %v1008_v16, %v1010_v28  ;;  %v1091_v40 = vsel %vm134_vm2, %v1088_v20, %v1090_v38  ;;  %v1052_v49 = vrot.slane %v8095_v0, 2 }
 0x1c2   :  { %v1051_v41 = vsel %vm92_vm0, %v1048_v18, %v1050_v39  ;;  %v1160_v46 = vsel %vm1149_vm7, %v1157_v27, %v1159_v42  ;;  %v1013_v47 = vsel %vm50_vm1, %v1010_v28, %v1012_v43  ;;  %v8117_v50 = vmax.f32 %v7381_v13, 0.0 }
 0x1c3   :  { %v8120_v57 = vrot.slane %v11358_v61, 5  ;;  %v1093_v34 = vsel %vm134_vm2, %v1090_v38, %v1092_v48  ;;  %v1053_v52 = vsel %vm92_vm0, %v1050_v39, %v1052_v49  ;;  %v1163_v17 = vrot.slane %v8109_v45, 5 }
 0x1c4   :  { %v1016_v54 = vrot.slane %v8109_v45, 1  ;;  %v1161_v2 = vrot.slane %v8117_v50, 5  ;;  %v1014_v5 = vrot.slane %v8117_v50, 1  ;;  %v1094_v35 = vrot.slane %v8117_v50, 3 }
 0x1c5   :  { %1101 = vrot.lane.b32.xlu1 %v1087_v11, %s7645_s29  ;;  %1061 = vrot.lane.b32.xlu0 %v1047_v14, %s7646_s30  ;;  %11708 = vst [vmem:[#allocation8_spill] sm:$0xff] %v8120_v57  ;;  %v1166_v55 = vsel %vm1149_vm7, %v1163_v17, %v8120_v57  ;;  %v1054_v36 = vrot.slane %v8117_v50, 2  ;;  %v1096_v15 = vrot.slane %v8109_v45, 3  ;;  %v1056_v16 = vrot.slane %v8109_v45, 2 }
 0x1c6   :  { %v1018_v63 = vsel %vm50_vm1, %v1016_v54, %v7807_v62  ;;  %v1162_v12 = vsel %vm1149_vm7, %v1159_v42, %v1161_v2  ;;  %v1015_v13 = vsel %vm50_vm1, %v1012_v43, %v1014_v5  ;;  %v1095_v53 = vsel %vm134_vm2, %v1092_v48, %v1094_v35 }
 0x1c7   :  { %v1055_v58 = vsel %vm92_vm0, %v1052_v49, %v1054_v36  ;;  %v1164_v11 = vsel %vm1149_vm7, %v1161_v2, %v1163_v17  ;;  %v1017_v14 = vsel %vm50_vm1, %v1014_v5, %v1016_v54  ;;  %v1097_v20 = vsel %vm134_vm2, %v1094_v35, %v1096_v15 }
 0x1c8   :  { %v5555_v18 = vunpack.c.h.bf16 %v7958_v1 }
 0x1c9   :  { %1171 = vrot.lane.b32.xlu1 %v1156_v22, %s7644_s2  ;;  %1023 = vrot.lane.b32.xlu0 %v1009_v33, %s7644_s2  ;;  %v1057_v22 = vsel %vm92_vm0, %v1054_v36, %v1056_v16  ;;  %v5554_v33 = vunpack.c.l.bf16 %v7958_v1 }
 0x1ca   :  { %v8166_v28 = vsub.f32 %v5555_v18, %v5555_v18  ;;  %v5591_v18 = vunpack.c.h.bf16 %v8043_v51 }
 0x1cb   :  { %v8164_v27 = vsub.f32 %v5554_v33, %v5554_v33  ;;  %v5590_v33 = vunpack.c.l.bf16 %v8043_v51 }
 0x1cd   :  { %1103 = vrot.lane.b32.xlu1 %v1089_v25, %s7645_s29  ;;  %1063 = vrot.lane.b32.xlu0 %v1049_v26, %s7646_s30  ;;  %v1098_v25 = vsel %vm134_vm2, %v1096_v15, %v7825_v9  ;;  %v1058_v26 = vsel %vm92_vm0, %v1056_v16, %v7816_v4 }
 0x1d1   :  { %1173 = vrot.lane.b32.xlu1 %v1158_v30, %s7644_s2  ;;  %1025 = vrot.lane.b32.xlu0 %v1011_v31, %s7644_s2  ;;  %v5558_v30 = vunpack.c.l.bf16 %v7966_v37  ;;  %v5559_v31 = vunpack.c.h.bf16 %v7966_v37  ;;  %v5566_v37 = vunpack.c.l.bf16 %v7980_v56 }
 0x1d3   :  { %v8172_v38 = vsub.f32 %v5558_v30, %v5558_v30  ;;  %v8174_v39 = vsub.f32 %v5559_v31, %v5559_v31  ;;  %v8188_v49 = vsub.f32 %v5566_v37, %v5566_v37  ;;  %v5594_v30 = vunpack.c.l.bf16 %v8054_v3 }
 0x1d4   :  { %v5595_v31 = vunpack.c.h.bf16 %v8054_v3  ;;  %v5598_v37 = vunpack.c.l.bf16 %v8069_v60 }
 0x1d5   :  { %1105 = vrot.lane.b32.xlu1 %v1091_v40, %s7645_s29  ;;  %1065 = vrot.lane.b32.xlu0 %v1051_v41, %s7646_s30  ;;  %v5562_v40 = vunpack.c.l.bf16 %v7973_v6  ;;  %v5563_v41 = vunpack.c.h.bf16 %v7973_v6  ;;  %v5570_v6 = vunpack.c.l.bf16 %v7987_v59 }
 0x1d6   :  { %v8246_v51 = vsub.f32 %v5595_v31, %v5595_v31 }
 0x1d7   :  { %v8180_v43 = vsub.f32 %v5562_v40, %v5562_v40  ;;  %v8196_v54 = vsub.f32 %v5570_v6, %v5570_v6 }
 0x1d9   :  { %1175 = vrot.lane.b32.xlu1 %v1160_v46, %s7644_s2  ;;  %1027 = vrot.lane.b32.xlu0 %v1013_v47, %s7644_s2  ;;  %v8182_v46 = vsub.f32 %v5563_v41, %v5563_v41  ;;  %v5567_v47 = vunpack.c.h.bf16 %v7980_v56  ;;  %v5574_v56 = vunpack.c.l.bf16 %v7994_v7  ;;  %v8244_v41 = vsub.f32 %v5594_v30, %v5594_v30 }
 0x1da   :  { %v1127_v30 = vrot.slane %v8033_v44, 4 }
 0x1db   :  { %v8204_v5 = vsub.f32 %v5574_v56, %v5574_v56 }
 0x1dd   :  { %1107 = vrot.lane.b32.xlu1 %v1093_v34, %s7645_s29  ;;  %1067 = vrot.lane.b32.xlu0 %v1053_v52, %s7646_s30  ;;  %v8190_v34 = vsub.f32 %v5567_v47, %v5567_v47  ;;  %v5571_v52 = vunpack.c.h.bf16 %v7987_v59  ;;  %v5578_v59 = vunpack.c.l.bf16 %v8001_v8  ;;  %v5599_v47 = vunpack.c.h.bf16 %v8069_v60 }
 0x1df   :  { %v8212_v36 = vsub.f32 %v5578_v59, %v5578_v59  ;;  %v8254_v56 = vsub.f32 %v5599_v47, %v5599_v47  ;;  %v1124_v59 = vrot.slane %v8024_v24, 4 }
 0x1e1   :  { %1181 = vrot.lane.b32.xlu1 %v1166_v55, %s7644_s2  ;;  %1033 = vrot.lane.b32.xlu0 %v1018_v63, %s7644_s2  ;;  %v8198_v55 = vsub.f32 %v5571_v52, %v5571_v52  ;;  %v5575_v63 = vunpack.c.h.bf16 %v7994_v7  ;;  %v5582_v7 = vunpack.c.l.bf16 %v8008_v10  ;;  %v8252_v52 = vsub.f32 %v5598_v37, %v5598_v37 }
 0x1e3   :  { %v8222_v16 = vsub.f32 %v5582_v7, %v5582_v7 }
 0x1e5   :  { %1177 = vrot.lane.b32.xlu1 %v1162_v12, %s7644_s2  ;;  %1029 = vrot.lane.b32.xlu0 %v1015_v13, %s7644_s2  ;;  %v8206_v12 = vsub.f32 %v5575_v63, %v5575_v63  ;;  %v5579_v13 = vunpack.c.h.bf16 %v8001_v8  ;;  %v1125_v63 = vrot.slane %v8022_v23, 4 }
 0x1e7   :  { %v1126_v7 = vsel %vm1123_vm8, %v1124_v59, %v1125_v63 }
 0x1e9   :  { %1109 = vrot.lane.b32.xlu1 %v1095_v53, %s7645_s29  ;;  %1069 = vrot.lane.b32.xlu0 %v1055_v58, %s7646_s30  ;;  %v8214_v53 = vsub.f32 %v5579_v13, %v5579_v13  ;;  %v5583_v58 = vunpack.c.h.bf16 %v8008_v10  ;;  %v11350_v13 = vand.u32 4294901760, %v8164_v27 }
 0x1eb   :  { %v8224_v8 = vsub.f32 %v5583_v58, %v5583_v58  ;;  %v1493_v31 = vsub.f32 %v8164_v27, %v11350_v13 }
 0x1ed   :  { %1179 = vrot.lane.b32.xlu1 %v1164_v11, %s7644_s2  ;;  %1031 = vrot.lane.b32.xlu0 %v1017_v14, %s7644_s2  ;;  %v5586_v11 = vunpack.c.l.bf16 %v8018_v19  ;;  %v5587_v14 = vunpack.c.h.bf16 %v8018_v19 }
 0x1f1   :  { %1111 = vrot.lane.b32.xlu1 %v1097_v20, %s7645_s29  ;;  %1071 = vrot.lane.b32.xlu0 %v1057_v22, %s7646_s30  ;;  %v8226_v20 = vsub.f32 %v5586_v11, %v5586_v11  ;;  %v8228_v22 = vsub.f32 %v5587_v14, %v5587_v14  ;;  %v11351_v11 = vand.u32 4294901760, %v8166_v28 }
 0x1f5   :  { %1113 = vrot.lane.b32.xlu1 %v1098_v25, %s7645_s29  ;;  %1073 = vrot.lane.b32.xlu0 %v1058_v26, %s7646_s30  ;;  %v8236_v25 = vsub.f32 %v5590_v33, %v5590_v33  ;;  %v8238_v26 = vsub.f32 %v5591_v18, %v5591_v18 }
 0x22b   :  { %v1168_v60 = vpop.permute.xlu1 %1167  ;;  %v1020_v58 = vpop.permute.xlu0 %1019 }
 0x22c   :  { %v1218_v14 = vsel %vm1191_vm9, %v1126_v7, %v1168_v60  ;;  %v1192_v37 = vsel %vm1191_vm9, %v8024_v24, %v1020_v58  ;;  %v1499_v60 = vsub.f32 %v8166_v28, %v11351_v11  ;;  %v11352_v7 = vand.u32 4294901760, %v8172_v38 }
 0x22d   :  { %v1282_v33 = vsel %vm1200_vm10, %v1218_v14, 0  ;;  %v11353_v14 = vand.u32 4294901760, %v8174_v39  ;;  %v1128_v24 = vsel %vm1123_vm8, %v1125_v63, %v1127_v30  ;;  %v1494_v11 = vand.u32 4294901760, %v1493_v31 }
 0x22e   :  { %v8265_v18 = vand.u32 4294901760, %v1282_v33  ;;  %v1500_v15 = vand.u32 4294901760, %v1499_v60  ;;  %v1505_v35 = vsub.f32 %v8172_v38, %v11352_v7  ;;  %v11355_v31 = vand.u32 4294901760, %v8180_v43 }
 0x22f   :  { %v1100_v47 = vpop.permute.xlu1 %1099  ;;  %v1060_v59 = vpop.permute.xlu0 %1059 }
 0x230   :  { %v8279_v3 = vsub.f32 %v1282_v33, %v8265_v18  ;;  %v1201_v6 = vsel %vm1200_vm10, %v1192_v37, %v1060_v59  ;;  %v1511_v33 = vsub.f32 %v8174_v39, %v11353_v14  ;;  %v11356_v59 = vand.u32 4294901760, %v8182_v46 }
 0x231   :  { %v1210_v13 = vsel %vm1209_vm11, %v1201_v6, %v1100_v47  ;;  %v6659_v17 = vpack.c.bf16 %v1500_v15, %v1494_v11  ;;  %v11362_v15 = vand.u32 4294901760, %v8188_v49 }
 0x232   :  { %v8283_v40 = vand.u32 4294901760, %v1210_v13  ;;  %v11354_v58 = vand.u32 4294901760, %v8279_v3  ;;  %v1512_v48 = vand.u32 4294901760, %v1511_v33 }
 0x233   :  { %v1170_v19 = vpop.permute.xlu1 %1169  ;;  %v1022_v10 = vpop.permute.xlu0 %1021 }
 0x234   :  { %v8294_v6 = vsub.f32 %v1210_v13, %v8283_v40  ;;  %v1219_v37 = vsel %vm1191_vm9, %v1128_v24, %v1170_v19  ;;  %v1372_v63 = vsub.f32 %v8279_v3, %v11354_v58  ;;  %v1129_v13 = vrot.slane %v8058_v32, 4 }
 0x235   :  { %v1285_v47 = vsel %vm1200_vm10, %v1219_v37, 0  ;;  %v1193_v19 = vsel %vm1191_vm9, %v8022_v23, %v1022_v10  ;;  %v1506_v58 = vand.u32 4294901760, %v1505_v35  ;;  %v1523_v35 = vsub.f32 %v8182_v46, %v11356_v59 }
 0x236   :  { %11709 = vst [vmem:[#allocation9_spill] sm:$0xff] %v8294_v6  ;;  %v11357_v60 = vand.u32 4294901760, %v8294_v6  ;;  %v8304_v7 = vand.u32 4294901760, %v1285_v47  ;;  %v1373_v14 = vand.u32 4294901760, %v1372_v63  ;;  %v1517_v63 = vsub.f32 %v8180_v43, %v11355_v31 }
 0x237   :  { %v1102_v24 = vpop.permute.xlu1 %1101  ;;  %v1062_v2 = vpop.permute.xlu0 %1061  ;;  %v11363_v10 = vand.u32 4294901760, %v8190_v34  ;;  %v11367_v59 = vand.u32 4294901760, %v8198_v55  ;;  %v1524_v29 = vand.u32 4294901760, %v1523_v35 }
 0x238   :  { %v1378_v37 = vsub.f32 %v8294_v6, %v11357_v60  ;;  %v8313_v42 = vsub.f32 %v1285_v47, %v8304_v7  ;;  %v1202_v1 = vsel %vm1200_vm10, %v1193_v19, %v1062_v2  ;;  %1374 = vmatprep.mubr.f32.mxu1 %v1373_v14  ;;  %v1130_v47 = vsel %vm1123_vm8, %v1127_v30, %v1129_v13 }
 0x239   :  { %v1211_v23 = vsel %vm1209_vm11, %v1202_v1, %v1102_v24  ;;  %v6662_v24 = vpack.c.bf16 %v1512_v48, %v1506_v58  ;;  %v1518_v14 = vand.u32 4294901760, %v1517_v63  ;;  %v1529_v48 = vsub.f32 %v8188_v49, %v11362_v15 }
 0x23a   :  { %11710 = vst [vmem:[#allocation10_spill] sm:$0xff] %v8313_v42  ;;  %v1379_v11 = vand.u32 4294901760, %v1378_v37  ;;  %v8325_v33 = vand.u32 4294901760, %v1211_v23  ;;  %v11364_v2 = vand.u32 4294901760, %v8313_v42  ;;  %v1535_v58 = vsub.f32 %v8190_v34, %v11363_v10 }
 0x23b   :  { %v1172_v19 = vpop.permute.xlu1 %1171  ;;  %v1024_v31 = vpop.permute.xlu0 %1023  ;;  %v11713_v63 = vand.u32 4294901760, %v8196_v54  ;;  %v1547_v10 = vsub.f32 %v8198_v55, %v11367_v59  ;;  %v6665_v4 = vpack.c.bf16 %v1524_v29, %v1518_v14  ;;  %v1530_v57 = vand.u32 4294901760, %v1529_v48 }
 0x23c   :  { %v8333_v60 = vsub.f32 %v1211_v23, %v8325_v33  ;;  %v1220_v37 = vsel %vm1191_vm9, %v1130_v47, %v1172_v19  ;;  %1380 = vmatmul.mubr.f32.vlgmr.msra.gmra.mrb[8].mxu1 %v1379_v11  ;;  %v1387_v61 = vsub.f32 %v8313_v42, %v11364_v2  ;;  %v11712_v19 = vmov 0.0|0.0  }
 0x23d   :  { %v1288_v30 = vsel %vm1200_vm10, %v1220_v37, 0  ;;  %6660 = vmatpush1.bf16.msra.mxu1 %v6659_v17  ;;  %v1541_v17 = vsub.f32 %v8196_v54, %v11713_v63  ;;  %v1194_v35 = vsel %vm1191_vm9, %v8033_v44, %v1024_v31  ;;  %v1536_v59 = vand.u32 4294901760, %v1535_v58 }
 0x23e   :  { %11711 = vst [vmem:[#allocation11_spill] sm:$0xff] %v8333_v60  ;;  %v8346_v23 = vand.u32 4294901760, %v1288_v30  ;;  %v1388_v11 = vand.u32 4294901760, %v1387_v61  ;;  %6661 = vmatprep.subr.bf16.mxu1 %v11712_v19  ;;  %v11715_v63 = vand.u32 4294901760, %v8333_v60  ;;  %v11716_v61 = vrot.slane %v8082_v21, 4 }
 0x23f   :  { %v1104_v37 = vpop.permute.xlu1 %1103  ;;  %v1064_v15 = vpop.permute.xlu0 %1063  ;;  %v1548_v9 = vand.u32 4294901760, %v1547_v10  ;;  %v11718_v14 = vand.u32 4294901760, %v8206_v12  ;;  %v11372_v10 = vand.u32 4294901760, %v8212_v36 }
 0x240   :  { %v8361_v1 = vsub.f32 %v1288_v30, %v8346_v23  ;;  %v1203_v47 = vsel %vm1200_vm10, %v1194_v35, %v1064_v15  ;;  %1389 = vmatprep.mubr.f32.mxu1 %v1388_v11  ;;  %v1393_v44 = vsub.f32 %v8333_v60, %v11715_v63  ;;  %v1132_v30 = vsel %vm1123_vm8, %v1129_v13, %v11716_v61 }
 0x241   :  { %v1212_v31 = vsel %vm1209_vm11, %v1203_v47, %v1104_v37  ;;  %6663 = vmatpush1.bf16.msra.mxu1 %v6662_v24  ;;  %v1542_v63 = vand.u32 4294901760, %v1541_v17  ;;  %v11717_v24 = vand.u32 4294901760, %v8204_v5  ;;  %v1559_v48 = vsub.f32 %v8206_v12, %v11718_v14 }
 0x242   :  { %11714 = vst [vmem:[#allocation12_spill] sm:$0xff] %v8361_v1  ;;  %v8368_v62 = vand.u32 4294901760, %v1212_v31  ;;  %v1394_v2 = vand.u32 4294901760, %v1393_v44  ;;  %v11370_v15 = vand.u32 4294901760, %v8361_v1  ;;  %6664 = vmatprep.subr.bf16.mxu1 %v11712_v19  ;;  %v6668_v37 = vpack.c.bf16 %v1536_v59, %v1530_v57 }
 0x243   :  { %v1174_v11 = vpop.permute.xlu1 %1173  ;;  %v1026_v35 = vpop.permute.xlu0 %1025  ;;  %v1553_v29 = vsub.f32 %v8204_v5, %v11717_v24  ;;  %v11371_v61 = vand.u32 4294901760, %v8214_v53 }
 0x244   :  { %v8382_v58 = vsub.f32 %v1212_v31, %v8368_v62  ;;  %v1221_v13 = vsel %vm1191_vm9, %v1132_v30, %v1174_v11  ;;  %1395 = vmatmul.mubr.f32.gmra.mrb[10].mxu1 %v1394_v2  ;;  %v1402_v47 = vsub.f32 %v8361_v1, %v11370_v15  ;;  %v1195_v2 = vsel %vm1191_vm9, %v8058_v32, %v1026_v35 }
 0x245   :  { %v1291_v17 = vsel %vm1200_vm10, %v1221_v13, 0  ;;  %6666 = vmatpush1.bf16.msra.mxu1 %v6665_v4  ;;  %v6671_v15 = vpack.c.bf16 %v1548_v9, %v1542_v63  ;;  %v1554_v13 = vand.u32 4294901760, %v1553_v29  ;;  %v1560_v4 = vand.u32 4294901760, %v1559_v48 }
 0x246   :  { %11719 = vst [vmem:[#allocation13_spill] sm:$0xff] %v8382_v58  ;;  %v8391_v44 = vand.u32 4294901760, %v1291_v17  ;;  %v1403_v24 = vand.u32 4294901760, %v1402_v47  ;;  %v11373_v30 = vand.u32 4294901760, %v8382_v58  ;;  %6667 = vmatprep.subr.bf16.mxu1 %v11712_v19  ;;  %v1565_v31 = vsub.f32 %v8212_v36, %v11372_v10 }
 0x247   :  { %v1106_v11 = vpop.permute.xlu1 %1105  ;;  %v1066_v14 = vpop.permute.xlu0 %1065  ;;  %v1571_v9 = vsub.f32 %v8214_v53, %v11371_v61  ;;  %v6674_v10 = vpack.c.bf16 %v1560_v4, %v1554_v13  ;;  %v11726_v13 = vand.u32 4294901760, %v8222_v16 }
 0x248   :  { %v8399_v57 = vsub.f32 %v1291_v17, %v8391_v44  ;;  %v1204_v59 = vsel %vm1200_vm10, %v1195_v2, %v1066_v14  ;;  %1404 = vmatprep.mubr.f32.mxu1 %v1403_v24  ;;  %v1408_v47 = vsub.f32 %v8382_v58, %v11373_v30  ;;  %v11721_v24 = vmov 0.0  }
 0x249   :  { %v1213_v32 = vsel %vm1209_vm11, %v1204_v59, %v1106_v11  ;;  %6669 = vmatpush1.bf16.msra.mxu1 %v6668_v37  ;;  %v8418_v2 = vrot.slane %v11721_v24, 4  ;;  %v11723_v37 = vrot.slane %v8095_v0, 4  ;;  %v11724_v11 = vrot.slane %v8082_v21, 4 }
 0x24a   :  { %11720 = vst [vmem:[#allocation14_spill] sm:$0xff] %v8399_v57  ;;  %v8414_v29 = vand.u32 4294901760, %v1213_v32  ;;  %v1409_v48 = vand.u32 4294901760, %v1408_v47  ;;  %v11376_v17 = vand.u32 4294901760, %v8399_v57  ;;  %6670 = vmatprep.subr.bf16.mxu1 %v11712_v19  ;;  %v1566_v58 = vand.u32 4294901760, %v1565_v31 }
 0x24b   :  { %11722 = vst [vmem:[#allocation15_spill] sm:$0xff] %v8418_v2  ;;  %v1134_v14 = vsel %vm1123_vm8, %v11724_v11, %v11723_v37  ;;  %v1176_v59 = vpop.permute.xlu1 %1175  ;;  %v1028_v61 = vpop.permute.xlu0 %1027  ;;  %v1572_v11 = vand.u32 4294901760, %v1571_v9  ;;  %v1577_v4 = vsub.f32 %v8222_v16, %v11726_v13  ;;  %v11727_v47 = vand.u32 4294901760, %v8224_v8 }
 0x24c   :  { %v8429_v63 = vsub.f32 %v1213_v32, %v8414_v29  ;;  %v1222_v35 = vsel %vm1191_vm9, %v1134_v14, %v1176_v59  ;;  %1410 = vmatmul.mubr.f32.gmra.mrb[12].mxu1 %v1409_v48  ;;  %v1417_v24 = vsub.f32 %v8399_v57, %v11376_v17  ;;  %v11728_v59 = vand.u32 4294901760, %v8226_v20 }
 0x24d   :  { %v1294_v37 = vsel %vm1200_vm10, %v1222_v35, 0  ;;  %6672 = vmatpush1.bf16.msra.mxu1 %v6671_v15  ;;  %v1583_v32 = vsub.f32 %v8224_v8, %v11727_v47  ;;  %v1196_v15 = vsel %vm1191_vm9, %v8082_v21, %v1028_v61  ;;  %v11729_v47 = vand.u32 4294901760, %v8228_v22 }
 0x24e   :  { %11725 = vst [vmem:[#allocation16_spill] sm:$0xff] %v8429_v63  ;;  %v8442_v30 = vand.u32 4294901760, %v1294_v37  ;;  %v1418_v48 = vand.u32 4294901760, %v1417_v24  ;;  %6673 = vmatprep.subr.bf16.mxu1 %v11712_v19  ;;  %v1589_v13 = vsub.f32 %v8226_v20, %v11728_v59  ;;  %v11731_v61 = vand.u32 4294901760, %v8429_v63 }
 0x24f   :  { %v1108_v9 = vpop.permute.xlu1 %1107  ;;  %v1068_v35 = vpop.permute.xlu0 %1067  ;;  %v1595_v17 = vsub.f32 %v8228_v22, %v11729_v47  ;;  %v6677_v1 = vpack.c.bf16 %v1572_v11, %v1566_v58  ;;  %v1578_v60 = vand.u32 4294901760, %v1577_v4  ;;  %v1584_v47 = vand.u32 4294901760, %v1583_v32 }
 0x250   :  { %v8457_v14 = vsub.f32 %v1294_v37, %v8442_v30  ;;  %v1205_v31 = vsel %vm1200_vm10, %v1196_v15, %v1068_v35  ;;  %1419 = vmatprep.mubr.f32.mxu1 %v1418_v48  ;;  %v1423_v57 = vsub.f32 %v8429_v63, %v11731_v61  ;;  %v1135_v37 = vrot.slane %v8117_v50, 4 }
 0x251   :  { %v1214_v59 = vsel %vm1209_vm11, %v1205_v31, %v1108_v9  ;;  %6675 = vmatpush1.bf16.msra.mxu1 %v6674_v10  ;;  %v1590_v21 = vand.u32 4294901760, %v1589_v13  ;;  %v1596_v61 = vand.u32 4294901760, %v1595_v17  ;;  %v11732_v31 = vand.u32 4294901760, %v8236_v25 }
 0x252   :  { %11730 = vst [vmem:[#allocation17_spill] sm:$0xff] %v8457_v14  ;;  %v8465_v42 = vand.u32 4294901760, %v1214_v59  ;;  %v1424_v24 = vand.u32 4294901760, %v1423_v57  ;;  %v11387_v15 = vand.u32 4294901760, %v8457_v14  ;;  %6676 = vmatprep.subr.bf16.mxu1 %v11712_v19  ;;  %v11733_v10 = vand.u32 4294901760, %v8238_v26 }
 0x253   :  { %v1182_v48 = vpop.permute.xlu1 %1181  ;;  %v8470_v35 = vpop.permute.xlu0 %1033  ;;  %v1601_v58 = vsub.f32 %v8236_v25, %v11732_v31  ;;  %v6680_v9 = vpack.c.bf16 %v1584_v47, %v1578_v60  ;;  %v11735_v13 = vrot.slane %v8109_v45, 4  ;;  %v11736_v63 = vrot.slane %v8095_v0, 4 }
 0x254   :  { %v1607_v11 = vsub.f32 %v8238_v26, %v11733_v10  ;;  %v8479_v57 = vsub.f32 %v1214_v59, %v8465_v42  ;;  %1425 = vmatmul.mubr.f32.gmra.mrb[14].mxu1 %v1424_v24  ;;  %v1432_v4 = vsub.f32 %v8457_v14, %v11387_v15  ;;  %v6683_v14 = vpack.c.bf16 %v1596_v61, %v1590_v21 }
 0x255   :  { %6678 = vmatpush1.bf16.msra.mxu1 %v6677_v1  ;;  %v1140_v31 = vsel %vm1123_vm8, %v11735_v13, %v8418_v2  ;;  %v1136_v15 = vsel %vm1123_vm8, %v11736_v63, %v1135_v37  ;;  %v1602_v17 = vand.u32 4294901760, %v1601_v58  ;;  %v11738_v2 = vand.u32 4294901760, %v8246_v51 }
 0x256   :  { %11734 = vst [vmem:[#allocation18_spill] sm:$0xff] %v8479_v57  ;;  %v1433_v10 = vand.u32 4294901760, %v1432_v4  ;;  %v11393_v59 = vand.u32 4294901760, %v8479_v57  ;;  %6679 = vmatprep.subr.bf16.mxu1 %v11712_v19  ;;  %v1608_v1 = vand.u32 4294901760, %v1607_v11  ;;  %v11737_v4 = vand.u32 4294901760, %v8244_v41 }
 0x257   :  { %v1178_v24 = vpop.permute.xlu1 %1177  ;;  %v1030_v32 = vpop.permute.xlu0 %1029  ;;  %v1619_v6 = vsub.f32 %v8246_v51, %v11738_v2  ;;  %v1225_v63 = vsel %vm1191_vm9, %v1140_v31, %v1182_v48  ;;  %v11394_v61 = vand.u32 4294901760, %v8254_v56 }
 0x258   :  { %v1223_v60 = vsel %vm1191_vm9, %v1136_v15, %v1178_v24  ;;  %1434 = vmatprep.mubr.f32.mxu1 %v1433_v10  ;;  %v1438_v47 = vsub.f32 %v8479_v57, %v11393_v59  ;;  %v1613_v13 = vsub.f32 %v8244_v41, %v11737_v4  ;;  %v11395_v15 = vand.u32 4294901760, %v8252_v52 }
 0x259   :  { %v1297_v21 = vsel %vm1200_vm10, %v1223_v60, 0  ;;  %6681 = vmatpush1.bf16.msra.mxu1 %v6680_v9  ;;  %v1197_v10 = vsel %vm1191_vm9, %v8095_v0, %v1030_v32  ;;  %v6686_v2 = vpack.c.bf16 %v1608_v1, %v1602_v17  ;;  %v1303_v48 = vsel %vm1200_vm10, %v1225_v63, 0 }
 0x25a   :  { %v8509_v58 = vand.u32 4294901760, %v1297_v21  ;;  %v1439_v11 = vand.u32 4294901760, %v1438_v47  ;;  %6682 = vmatprep.subr.bf16.mxu1 %v11712_v19  ;;  %v1614_v60 = vand.u32 4294901760, %v1613_v13  ;;  %v1620_v47 = vand.u32 4294901760, %v1619_v6 }
 0x25b   :  { %v1110_v24 = vpop.permute.xlu1 %1109  ;;  %v1070_v4 = vpop.permute.xlu0 %1069  ;;  %v1625_v0 = vsub.f32 %v8252_v52, %v11395_v15  ;;  %v1631_v32 = vsub.f32 %v8254_v56, %v11394_v61  ;;  %v8530_v63 = vand.u32 4294901760, %v1303_v48  ;;  %v11741_v13 = vrot.slane %v8109_v45, 4 }
 0x25c   :  { %v8516_v31 = vsub.f32 %v1297_v21, %v8509_v58  ;;  %v1206_v9 = vsel %vm1200_vm10, %v1197_v10, %v1070_v4  ;;  %1440 = vmatmul.mubr.f32.gmra.mrb[16].mxu1 %v1439_v11 }
 0x25d   :  { %v1215_v59 = vsel %vm1209_vm11, %v1206_v9, %v1110_v24  ;;  %6684 = vmatpush1.bf16.msra.mxu1 %v6683_v14  ;;  %11740 = vst [vmem:[#allocation20_spill] sm:$0xff] %v8530_v63  ;;  %v1138_v6 = vsel %vm1123_vm8, %v1135_v37, %v11741_v13  ;;  %v6689_v9 = vpack.c.bf16 %v1620_v47, %v1614_v60  ;;  %v1626_v61 = vand.u32 4294901760, %v1625_v0 }
 0x25e   :  { %v8526_v17 = vand.u32 4294901760, %v1215_v59  ;;  %v11398_v1 = vand.u32 4294901760, %v8516_v31  ;;  %6685 = vmatprep.subr.bf16.mxu1 %v11712_v19  ;;  %v1632_v15 = vand.u32 4294901760, %v1631_v32 }
 0x25f   :  { %v1180_v14 = vpop.permute.xlu1 %1179  ;;  %v1032_v21 = vpop.permute.xlu0 %1031 }
 0x260   :  { %11739 = vst [vmem:[#allocation19_spill] sm:$0xff] %v8526_v17  ;;  %v8536_v11 = vsub.f32 %v1215_v59, %v8526_v17  ;;  %v1224_v10 = vsel %vm1191_vm9, %v1138_v6, %v1180_v14  ;;  %v1447_v24 = vsub.f32 %v8516_v31, %v11398_v1  ;;  %v8548_v59 = vsub.f32 %v1303_v48, %v8530_v63 }
 0x261   :  { %v1300_v4 = vsel %vm1200_vm10, %v1224_v10, 0  ;;  %6687 = vmatpush1.bf16.msra.mxu1 %v6686_v2  ;;  %v1198_v6 = vsel %vm1191_vm9, %v8117_v50, %v1032_v21  ;;  %v6692_v48 = vpack.c.bf16 %v1632_v15, %v1626_v61 }
 0x262   :  { %v8543_v57 = vand.u32 4294901760, %v1300_v4  ;;  %v1448_v37 = vand.u32 4294901760, %v1447_v24  ;;  %v11403_v13 = vand.u32 4294901760, %v8536_v11  ;;  %6688 = vmatprep.subr.bf16.mxu1 %v11712_v19 }
 0x263   :  { %v1112_v14 = vpop.permute.xlu1 %1111  ;;  %v1072_v1 = vpop.permute.xlu0 %1071 }
 0x264   :  { %11742 = vst [vmem:[#allocation21_spill] sm:$0xff] %v8543_v57  ;;  %v8553_v2 = vsub.f32 %v1300_v4, %v8543_v57  ;;  %v1207_v60 = vsel %vm1200_vm10, %v1198_v6, %v1072_v1  ;;  %1449 = vmatprep.mubr.f32.mxu1 %v1448_v37  ;;  %v1453_v47 = vsub.f32 %v8536_v11, %v11403_v13  ;;  %v11400_v4 = vand.u32 4294901760, %v8548_v59  ;;  %v8717_v13 = vld [vmem:[%s11343_s3 + $0x30] sm:$0xff]  }
 0x265   :  { %v1216_v0 = vsel %vm1209_vm11, %v1207_v60, %v1112_v14  ;;  %6690 = vmatpush1.bf16.msra.mxu1 %v6689_v9  ;;  %v1199_v1 = vsel %vm1191_vm9, %v8109_v45, %v8470_v35 }
 0x266   :  { %v8560_v32 = vand.u32 4294901760, %v1216_v0  ;;  %v1454_v10 = vand.u32 4294901760, %v1453_v47  ;;  %v11402_v50 = vand.u32 4294901760, %v8553_v2  ;;  %6691 = vmatprep.subr.bf16.mxu1 %v11712_v19  ;;  %v1477_v14 = vsub.f32 %v8548_v59, %v11400_v4  ;;  %v11765_v4 = vld [vmem:[#allocation18_spill] sm:$0xff] }
 0x267   :  { %v1114_v21 = vpop.permute.xlu1 %1113  ;;  %v1074_v24 = vpop.permute.xlu0 %1073 }
 0x268   :  { %11743 = vst [vmem:[#allocation22_spill] sm:$0xff] %v8560_v32  ;;  %v8569_v37 = vsub.f32 %v1216_v0, %v8560_v32  ;;  %v1208_v15 = vsel %vm1200_vm10, %v1199_v1, %v1074_v24  ;;  %1455 = vmatmul.mubr.f32.gmra.mrb[18].mxu1 %v1454_v10  ;;  %v1462_v61 = vsub.f32 %v8553_v2, %v11402_v50  ;;  %v1478_v10 = vand.u32 4294901760, %v1477_v14  ;;  %v8708_v50 = vld [vmem:[%s11343_s3 + $0x28] sm:$0xff]  }
 0x269   :  { %v1217_v9 = vsel %vm1209_vm11, %v1208_v15, %v1114_v21  ;;  %6693 = vmatpush1.bf16.msra.mxu1 %v6692_v48  ;;  %v11745_v24 = vpack.c.bf16 %v8166_v28, %v8164_v27  ;;  %v11746_v15 = vpack.c.bf16 %v8174_v39, %v8172_v38  ;;  %v11750_v14 = vpack.c.bf16 %v8206_v12, %v8204_v5 }
 0x26a   :  { %v8576_v6 = vand.u32 4294901760, %v1217_v9  ;;  %v1463_v45 = vand.u32 4294901760, %v1462_v61  ;;  %v11401_v35 = vand.u32 4294901760, %v8569_v37  ;;  %6694 = vmatprep.subr.bf16.mxu1 %v11712_v19  ;;  %v11747_v61 = vpack.c.bf16 %v8182_v46, %v8180_v43 }
 0x26c   :  { %11744 = vst [vmem:[#allocation23_spill] sm:$0xff] %v8576_v6  ;;  %v8584_v60 = vsub.f32 %v1217_v9, %v8576_v6  ;;  %1464 = vmatprep.mubr.f32.mxu1 %v1463_v45  ;;  %v1468_v47 = vsub.f32 %v8569_v37, %v11401_v35  ;;  %v11748_v9 = vpack.c.bf16 %v8190_v34, %v8188_v49  ;;  %v8699_v35 = vld [vmem:[%s11343_s3 + $0x20] sm:$0xff]  }
 0x26d   :  { %v11749_v45 = vpack.c.bf16 %v8198_v55, %v8196_v54 }
 0x26e   :  { %v1469_v0 = vand.u32 4294901760, %v1468_v47  ;;  %v11399_v48 = vand.u32 4294901760, %v8584_v60  ;;  %v11751_v47 = vpack.c.bf16 %v8214_v53, %v8212_v36 }
 0x270   :  { %1470 = vmatmul.mubr.f32.gmra.mrb[20].mxu1 %v1469_v0  ;;  %v1483_v1 = vsub.f32 %v8584_v60, %v11399_v48  ;;  %v11752_v0 = vpack.c.bf16 %v8224_v8, %v8222_v16  ;;  %v8690_v48 = vld [vmem:[%s11343_s3 + $0x18] sm:$0xff]  }
 0x271   :  { %1479 = vmatprep.mubr.f32.mxu1 %v1478_v10  ;;  %v11753_v10 = vpack.c.bf16 %v8228_v22, %v8226_v20 }
 0x272   :  { %v1484_v21 = vand.u32 4294901760, %v1483_v1  ;;  %v11754_v1 = vpack.c.bf16 %v8238_v26, %v8236_v25 }
 0x274   :  { %1485 = vmatmul.mubr.f32.gmra.mrb[22].mxu1 %v1484_v21  ;;  %v11755_v21 = vpack.c.bf16 %v8246_v51, %v8244_v41 }
 0x275   :  { %1651 = vmatprep.mubr.f32.mxu1 %v8265_v18 }
 0x278   :  { %1653 = vmatmul.mubr.f32.vlgmr.msra.gmra.mrb[8].mxu1 %v8283_v40 }
 0x279   :  { %6696 = vmatpush1.bf16.msra.mxu1 %v11745_v24  ;;  %1658 = vmatprep.mubr.f32.mxu1 %v8304_v7  ;;  %v11756_v24 = vpack.c.bf16 %v8254_v56, %v8252_v52 }
 0x27a   :  { %6697 = vmatprep.subr.bf16.mxu1 %v11712_v19 }
 0x27c   :  { %1660 = vmatmul.mubr.f32.gmra.mrb[10].mxu1 %v8325_v33 }
 0x27d   :  { %6699 = vmatpush1.bf16.msra.mxu1 %v11746_v15  ;;  %1665 = vmatprep.mubr.f32.mxu1 %v8346_v23  ;;  %v11757_v15 = vld [vmem:[#allocation9_spill] sm:$0xff] }
 0x27e   :  { %6700 = vmatprep.subr.bf16.mxu1 %v11712_v19  ;;  %11766 = vst [vmem:[#allocation9_spill] sm:$0xff] %v8699_v35 }
 0x280   :  { %1667 = vmatmul.mubr.f32.gmra.mrb[12].mxu1 %v8368_v62 }
 0x281   :  { %6702 = vmatpush1.bf16.msra.mxu1 %v11747_v61  ;;  %1672 = vmatprep.mubr.f32.mxu1 %v8391_v44  ;;  %v11758_v61 = vld [vmem:[#allocation10_spill] sm:$0xff] }
 0x282   :  { %6703 = vmatprep.subr.bf16.mxu1 %v11712_v19  ;;  %11767 = vst [vmem:[#allocation10_spill] sm:$0xff] %v8708_v50 }
 0x284   :  { %1674 = vmatmul.mubr.f32.gmra.mrb[14].mxu1 %v8414_v29 }
 0x285   :  { %6705 = vmatpush1.bf16.msra.mxu1 %v11748_v9  ;;  %1679 = vmatprep.mubr.f32.mxu1 %v8442_v30  ;;  %v8663_v9 = vld [vmem:[%s11343_s3] sm:$0xff]  }
 0x286   :  { %6706 = vmatprep.subr.bf16.mxu1 %v11712_v19 }
 0x288   :  { %1681 = vmatmul.mubr.f32.gmra.mrb[16].mxu1 %v8465_v42 }
 0x289   :  { %6708 = vmatpush1.bf16.msra.mxu1 %v11749_v45  ;;  %1686 = vmatprep.mubr.f32.mxu1 %v8509_v58  ;;  %v11759_v45 = vld [vmem:[#allocation11_spill] sm:$0xff] }
 0x28a   :  { %6709 = vmatprep.subr.bf16.mxu1 %v11712_v19  ;;  %11768 = vst [vmem:[#allocation11_spill] sm:$0xff] %v8717_v13 }
 0x28c   :  { %1688 = vmatmul.mubr.f32.gmra.mrb[18].mxu1 %v8526_v17  ;;  %v11779_v17 = vand.u32 4294901760, %v8174_v39 }
 0x28d   :  { %6711 = vmatpush1.bf16.msra.mxu1 %v11750_v14  ;;  %1693 = vmatprep.mubr.f32.mxu1 %v8543_v57  ;;  %v11760_v14 = vld [vmem:[#allocation12_spill] sm:$0xff]  ;;  %v11778_v57 = vand.u32 4294901760, %v8172_v38 }
 0x28e   :  { %6712 = vmatprep.subr.bf16.mxu1 %v11712_v19 }
 0x290   :  { %1695 = vmatmul.mubr.f32.gmra.mrb[20].mxu1 %v8560_v32  ;;  %v8741_v32 = vld [vmem:[%s11343_s3 + $0x48] sm:$0xff]  }
 0x291   :  { %6714 = vmatpush1.bf16.msra.mxu1 %v11751_v47  ;;  %1700 = vmatprep.mubr.f32.mxu1 %v8530_v63  ;;  %v8672_v47 = vld [vmem:[%s11343_s3 + $0x8] sm:$0xff]   ;;  %v11770_v63 = vand.u32 4294901760, %v8279_v3 }
 0x292   :  { %6715 = vmatprep.subr.bf16.mxu1 %v11712_v19 }
 0x294   :  { %1702 = vmatmul.mubr.f32.gmra.mrb[22].mxu1 %v8576_v6  ;;  %v8725_v6 = vld [vmem:[%s11343_s3 + $0x38] sm:$0xff]  }
 0x295   :  { %6717 = vmatpush1.bf16.msra.mxu1 %v11752_v0  ;;  %1797 = vmatprep.mubr.f32.mxu1 %v8279_v3  ;;  %v11761_v0 = vld [vmem:[#allocation13_spill] sm:$0xff]  ;;  %11769 = vst [vmem:[#allocation12_spill] sm:$0xff] %v8725_v6  ;;  %v8748_v3 = vld [vmem:[%s11343_s3 + $0x50] sm:$0xff]  }
 0x296   :  { %6718 = vmatprep.subr.bf16.mxu1 %v11712_v19  ;;  %v11784_v38 = vand.u32 4294901760, %v11761_v0 }
 0x299   :  { %6720 = vmatpush1.bf16.msra.mxu1 %v11753_v10  ;;  %v11762_v10 = vld [vmem:[#allocation14_spill] sm:$0xff] }
 0x29a   :  { %6721 = vmatprep.subr.bf16.mxu1 %v11712_v19  ;;  %11772 = vst [vmem:[#allocation14_spill] sm:$0xff] %v8741_v32  ;;  %v11785_v39 = vand.u32 4294901760, %v11762_v10 }
 0x29d   :  { %6723 = vmatpush1.bf16.msra.mxu1 %v11754_v1  ;;  %v8681_v1 = vld [vmem:[%s11343_s3 + $0x10] sm:$0xff]  }
 0x29e   :  { %6724 = vmatprep.subr.bf16.mxu1 %v11712_v19 }
 0x2a1   :  { %6726 = vmatpush1.bf16.msra.mxu1 %v11755_v21  ;;  %v11763_v21 = vld [vmem:[#allocation16_spill] sm:$0xff] }
 0x2a2   :  { %6727 = vmatprep.subr.bf16.mxu1 %v11712_v19  ;;  %11773 = vst [vmem:[#allocation16_spill] sm:$0xff] %v8748_v3 }
 0x2a5   :  { %6729 = vmatpush1.bf16.msra.mxu1 %v11756_v24  ;;  %v11764_v24 = vld [vmem:[#allocation17_spill] sm:$0xff] }
 0x2a6   :  { %6730 = vmatprep.subr.bf16.mxu1 %v11712_v19 }
 0x2a8   :  { %1800 = vmatmul.mubr.f32.vlgmr.msra.gmra.mrb[8].mxu1 %v11757_v15 }
 0x2a9   :  { %1806 = vmatprep.mubr.f32.mxu1 %v11758_v61  ;;  %6732 = vmatpush1.bf16.msra.mxu1 %v8663_v9 }
 0x2aa   :  { %6733 = vmatprep.subr.bf16.mxu1 %v11712_v19 }
 0x2ac   :  { %1809 = vmatmul.mubr.f32.gmra.mrb[10].mxu1 %v11759_v45 }
 0x2ad   :  { %1815 = vmatprep.mubr.f32.mxu1 %v11760_v14  ;;  %6735 = vmatpush1.bf16.msra.mxu1 %v8672_v47 }
 0x2ae   :  { %6736 = vmatprep.subr.bf16.mxu1 %v11712_v19 }
 0x2b0   :  { %1818 = vmatmul.mubr.f32.gmra.mrb[12].mxu1 %v11761_v0 }
 0x2b1   :  { %1824 = vmatprep.mubr.f32.mxu1 %v11762_v10  ;;  %6738 = vmatpush1.bf16.msra.mxu1 %v8681_v1 }
 0x2b2   :  { %6739 = vmatprep.subr.bf16.mxu1 %v11712_v19 }
 0x2b4   :  { %1827 = vmatmul.mubr.f32.gmra.mrb[14].mxu1 %v11763_v21 }
 0x2b5   :  { %1833 = vmatprep.mubr.f32.mxu1 %v11764_v24  ;;  %6741 = vmatpush1.bf16.msra.mxu1 %v8690_v48 }
 0x2b6   :  { %6742 = vmatprep.subr.bf16.mxu1 %v11712_v19 }
 0x2b8   :  { %1836 = vmatmul.mubr.f32.gmra.mrb[16].mxu1 %v11765_v4 }
 0x2b9   :  { %1842 = vmatprep.mubr.f32.mxu1 %v8516_v31  ;;  %6744 = vmatpush1.bf16.msra.mxu1 %v8699_v35  ;;  %v6770_v35 = vpack.c.bf16 %v11779_v17, %v11778_v57  ;;  %v11786_v57 = vand.u32 4294901760, %v8188_v49  ;;  %v11787_v17 = vand.u32 4294901760, %v8190_v34  ;;  %v11792_v49 = vand.u32 4294901760, %v11765_v4 }
 0x2ba   :  { %6745 = vmatprep.subr.bf16.mxu1 %v11712_v19  ;;  %v11793_v34 = vand.u32 4294901760, %v8516_v31  ;;  %v11798_v4 = vand.u32 4294901760, %v8212_v36  ;;  %v11799_v31 = vand.u32 4294901760, %v8214_v53  ;;  %v11804_v36 = vand.u32 4294901760, %v8584_v60 }
 0x2bb   :  { %v11805_v53 = vand.u32 4294901760, %v8226_v20  ;;  %v11811_v20 = vand.u32 4294901760, %v8252_v52  ;;  %v11817_v52 = vld [vmem:[#allocation22_spill] sm:$0xff] }
 0x2bc   :  { %1845 = vmatmul.mubr.f32.gmra.mrb[18].mxu1 %v8536_v11  ;;  %v6785_v10 = vpack.c.bf16 %v11799_v31, %v11798_v4 }
 0x2bd   :  { %1851 = vmatprep.mubr.f32.mxu1 %v8553_v2  ;;  %6747 = vmatpush1.bf16.msra.mxu1 %v8708_v50  ;;  %v11776_v50 = vand.u32 4294901760, %v11757_v15  ;;  %v11791_v15 = vand.u32 4294901760, %v8198_v55  ;;  %v11797_v55 = vand.u32 4294901760, %v8553_v2  ;;  %v11803_v2 = vand.u32 4294901760, %v8224_v8 }
 0x2be   :  { %6748 = vmatprep.subr.bf16.mxu1 %v11712_v19  ;;  %v11808_v8 = vand.u32 4294901760, %v8238_v26  ;;  %v11814_v26 = vld [vmem:[#allocation19_spill] sm:$0xff] }
 0x2c0   :  { %1854 = vmatmul.mubr.f32.gmra.mrb[20].mxu1 %v8569_v37 }
 0x2c1   :  { %1860 = vmatprep.mubr.f32.mxu1 %v8548_v59  ;;  %6750 = vmatpush1.bf16.msra.mxu1 %v8717_v13  ;;  %v8734_v13 = vld [vmem:[%s11343_s3 + $0x40] sm:$0xff]  }
 0x2c2   :  { %6751 = vmatprep.subr.bf16.mxu1 %v11712_v19  ;;  %11771 = vst [vmem:[#allocation13_spill] sm:$0xff] %v8734_v13 }
 0x2c4   :  { %1863 = vmatmul.mubr.f32.gmra.mrb[22].mxu1 %v8584_v60  ;;  %v11809_v60 = vand.u32 4294901760, %v8244_v41  ;;  %v11815_v41 = vld [vmem:[#allocation21_spill] sm:$0xff] }
 0x2c5   :  { %6753 = vmatpush1.bf16.msra.mxu1 %v8725_v6  ;;  %1935 = vmatprep.mubr.f32.mxu1 %v11770_v63  ;;  %v8755_v63 = vld [vmem:[%s11343_s3 + $0x58] sm:$0xff]  }
 0x2c6   :  { %6754 = vmatprep.subr.bf16.mxu1 %v11712_v19 }
 0x2c9   :  { %6756 = vmatpush1.bf16.msra.mxu1 %v8734_v13  ;;  %v11775_v13 = vand.u32 4294901760, %v8166_v28  ;;  %v11781_v28 = vand.u32 4294901760, %v11760_v14  ;;  %v11795_v14 = vand.u32 4294901760, %v8206_v12  ;;  %v11801_v12 = vand.u32 4294901760, %v8548_v59 }
 0x2ca   :  { %6757 = vmatprep.subr.bf16.mxu1 %v11712_v19 }
 0x2cd   :  { %6759 = vmatpush1.bf16.msra.mxu1 %v8741_v32  ;;  %v11774_v32 = vand.u32 4294901760, %v8164_v27  ;;  %v11780_v27 = vand.u32 4294901760, %v11759_v45  ;;  %v11794_v45 = vand.u32 4294901760, %v8204_v5  ;;  %v11800_v5 = vand.u32 4294901760, %v8569_v37 }
 0x2ce   :  { %6760 = vmatprep.subr.bf16.mxu1 %v11712_v19  ;;  %v11806_v37 = vand.u32 4294901760, %v8228_v22  ;;  %v11812_v22 = vand.u32 4294901760, %v8254_v56  ;;  %v11818_v56 = vld [vmem:[#allocation20_spill] sm:$0xff] }
 0x2cf   :  { %v6767_v6 = vpack.c.bf16 %v11775_v13, %v11774_v32  ;;  %v11782_v13 = vand.u32 4294901760, %v8180_v43  ;;  %v11783_v32 = vand.u32 4294901760, %v8182_v46  ;;  %v11788_v43 = vand.u32 4294901760, %v11763_v21 }
 0x2d0   :  { %v11789_v46 = vand.u32 4294901760, %v11764_v24  ;;  %v6782_v0 = vpack.c.bf16 %v11795_v14, %v11794_v45  ;;  %v6791_v59 = vpack.c.bf16 %v11806_v37, %v11805_v53  ;;  %v5740_v37 = vld [vmem:[%s11345_s5 + $0x10] sm:$0xff]  }
 0x2d1   :  { %6762 = vmatpush1.bf16.msra.mxu1 %v8748_v3  ;;  %v11777_v3 = vand.u32 4294901760, %v11758_v61 }
 0x2d2   :  { %6763 = vmatprep.subr.bf16.mxu1 %v11712_v19 }
 0x2d5   :  { %6765 = vmatpush1.bf16.msra.mxu1 %v8755_v63 }
 0x2d6   :  { %6766 = vmatprep.subr.bf16.mxu1 %v11712_v19 }
 0x2d8   :  { %1939 = vmatmul.mubr.f32.vlgmr.msra.gmra.mrb[8].mxu1 %v11776_v50  ;;  %v6773_v50 = vpack.c.bf16 %v11783_v32, %v11782_v13  ;;  %v11823_v13 = vld [vmem:[#allocation14_spill] sm:$0xff]  ;;  %v11824_v32 = vld [vmem:[#allocation16_spill] sm:$0xff] }
 0x2d9   :  { %1946 = vmatprep.mubr.f32.mxu1 %v11777_v3  ;;  %6768 = vmatpush1.bf16.msra.mxu1 %v6767_v6  ;;  %v6776_v6 = vpack.c.bf16 %v11787_v17, %v11786_v57  ;;  %v11810_v3 = vand.u32 4294901760, %v8246_v51  ;;  %v11816_v51 = vld [vmem:[#allocation10_spill] sm:$0xff] }
 0x2da   :  { %6769 = vmatprep.subr.bf16.mxu1 %v11712_v19 }
 0x2dc   :  { %1950 = vmatmul.mubr.f32.gmra.mrb[10].mxu1 %v11780_v27  ;;  %v6797_v27 = vpack.c.bf16 %v11810_v3, %v11809_v60  ;;  %v5749_v60 = vld [vmem:[%s11345_s5 + $0x58] sm:$0xff]  }
 0x2dd   :  { %1957 = vmatprep.mubr.f32.mxu1 %v11781_v28  ;;  %6771 = vmatpush1.bf16.msra.mxu1 %v6770_v35  ;;  %v11790_v35 = vand.u32 4294901760, %v8196_v54  ;;  %v11796_v54 = vand.u32 4294901760, %v8536_v11  ;;  %v11802_v11 = vand.u32 4294901760, %v8222_v16  ;;  %v11807_v16 = vand.u32 4294901760, %v8236_v25  ;;  %v11813_v25 = vld [vmem:[#allocation9_spill] sm:$0xff] }
 0x2de   :  { %6772 = vmatprep.subr.bf16.mxu1 %v11712_v19  ;;  %v6800_v28 = vpack.c.bf16 %v11812_v22, %v11811_v20 }
 0x2df   :  { %v6779_v61 = vpack.c.bf16 %v11791_v15, %v11790_v35  ;;  %v6788_v21 = vpack.c.bf16 %v11803_v2, %v11802_v11  ;;  %v6794_v24 = vpack.c.bf16 %v11808_v8, %v11807_v16 }
 0x2e0   :  { %1961 = vmatmul.mubr.f32.gmra.mrb[12].mxu1 %v11784_v38 }
 0x2e1   :  { %1968 = vmatprep.mubr.f32.mxu1 %v11785_v39  ;;  %6774 = vmatpush1.bf16.msra.mxu1 %v6773_v50 }
 0x2e2   :  { %6775 = vmatprep.subr.bf16.mxu1 %v11712_v19 }
 0x2e4   :  { %1972 = vmatmul.mubr.f32.gmra.mrb[14].mxu1 %v11788_v43 }
 0x2e5   :  { %1979 = vmatprep.mubr.f32.mxu1 %v11789_v46  ;;  %6777 = vmatpush1.bf16.msra.mxu1 %v6776_v6 }
 0x2e6   :  { %6778 = vmatprep.subr.bf16.mxu1 %v11712_v19 }
 0x2e8   :  { %1983 = vmatmul.mubr.f32.gmra.mrb[16].mxu1 %v11792_v49 }
 0x2e9   :  { %1990 = vmatprep.mubr.f32.mxu1 %v11793_v34  ;;  %6780 = vmatpush1.bf16.msra.mxu1 %v6779_v61 }
 0x2ea   :  { %6781 = vmatprep.subr.bf16.mxu1 %v11712_v19 }
 0x2ec   :  { %1994 = vmatmul.mubr.f32.gmra.mrb[18].mxu1 %v11796_v54 }
 0x2ed   :  { %2001 = vmatprep.mubr.f32.mxu1 %v11797_v55  ;;  %6783 = vmatpush1.bf16.msra.mxu1 %v6782_v0  ;;  %v5748_v0 = vld [vmem:[%s11345_s5 + $0x50] sm:$0xff]  }
 0x2ee   :  { %6784 = vmatprep.subr.bf16.mxu1 %v11712_v19  ;;  %v5642_v20 = vunpack.c.l.bf16 %v5748_v0  ;;  %v5643_v22 = vunpack.c.h.bf16 %v5748_v0 }
 0x2f0   :  { %2005 = vmatmul.mubr.f32.gmra.mrb[20].mxu1 %v11800_v5 }
 0x2f1   :  { %2012 = vmatprep.mubr.f32.mxu1 %v11801_v12  ;;  %6786 = vmatpush1.bf16.msra.mxu1 %v6785_v10 }
 0x2f2   :  { %6787 = vmatprep.subr.bf16.mxu1 %v11712_v19 }
 0x2f4   :  { %2016 = vmatmul.mubr.f32.gmra.mrb[22].mxu1 %v11804_v36 }
 0x2f5   :  { %6789 = vmatpush1.bf16.msra.mxu1 %v6788_v21  ;;  %2134 = vmatprep.mubr.f32.mxu1 %v8265_v18 }
 0x2f6   :  { %6790 = vmatprep.subr.bf16.mxu1 %v11712_v19 }
 0x2f9   :  { %6792 = vmatpush1.bf16.msra.mxu1 %v6791_v59 }
 0x2fa   :  { %6793 = vmatprep.subr.bf16.mxu1 %v11712_v19 }
 0x2fd   :  { %6795 = vmatpush1.bf16.msra.mxu1 %v6794_v24 }
 0x2fe   :  { %6796 = vmatprep.subr.bf16.mxu1 %v11712_v19 }
 0x301   :  { %6798 = vmatpush1.bf16.msra.mxu1 %v6797_v27 }
 0x302   :  { %6799 = vmatprep.subr.bf16.mxu1 %v11712_v19 }
 0x305   :  { %6801 = vmatpush1.bf16.msra.mxu1 %v6800_v28  ;;  %v5741_v28 = vld [vmem:[%s11345_s5 + $0x18] sm:$0xff]  }
 0x306   :  { %6802 = vmatprep.subr.bf16.mxu1 %v11712_v19 }
 0x308   :  { %2136 = vmatmul.mubr.f32.vlgmr.msra.gmra.mrb[8].mxu1 %v8283_v40 }
 0x309   :  { %2141 = vmatprep.mubr.f32.mxu1 %v8304_v7  ;;  %6804 = vmatpush1.bf16.msra.mxu1 %v8663_v9  ;;  %v11820_v9 = vld [vmem:[#allocation23_spill] sm:$0xff] }
 0x30a   :  { %6805 = vmatprep.subr.bf16.mxu1 %v11712_v19 }
 0x30c   :  { %2143 = vmatmul.mubr.f32.gmra.mrb[10].mxu1 %v8325_v33 }
 0x30d   :  { %2148 = vmatprep.mubr.f32.mxu1 %v8346_v23  ;;  %6807 = vmatpush1.bf16.msra.mxu1 %v8672_v47  ;;  %v11821_v47 = vld [vmem:[#allocation12_spill] sm:$0xff] }
 0x30e   :  { %6808 = vmatprep.subr.bf16.mxu1 %v11712_v19 }
 0x310   :  { %2150 = vmatmul.mubr.f32.gmra.mrb[12].mxu1 %v8368_v62 }
 0x311   :  { %2155 = vmatprep.mubr.f32.mxu1 %v8391_v44  ;;  %6810 = vmatpush1.bf16.msra.mxu1 %v8681_v1  ;;  %v11822_v1 = vld [vmem:[#allocation13_spill] sm:$0xff] }
 0x312   :  { %6811 = vmatprep.subr.bf16.mxu1 %v11712_v19 }
 0x314   :  { %2157 = vmatmul.mubr.f32.gmra.mrb[14].mxu1 %v8414_v29 }
 0x315   :  { %2162 = vmatprep.mubr.f32.mxu1 %v8442_v30  ;;  %6813 = vmatpush1.bf16.msra.mxu1 %v8690_v48  ;;  %v11819_v48 = vld [vmem:[#allocation11_spill] sm:$0xff] }
 0x316   :  { %6814 = vmatprep.subr.bf16.mxu1 %v11712_v19 }
 0x318   :  { %2164 = vmatmul.mubr.f32.gmra.mrb[16].mxu1 %v8465_v42 }
 0x319   :  { %2169 = vmatprep.mubr.f32.mxu1 %v8509_v58  ;;  %6816 = vmatpush1.bf16.msra.mxu1 %v11813_v25 }
 0x31a   :  { %6817 = vmatprep.subr.bf16.mxu1 %v11712_v19 }
 0x31c   :  { %2171 = vmatmul.mubr.f32.gmra.mrb[18].mxu1 %v11814_v26 }
 0x31d   :  { %2176 = vmatprep.mubr.f32.mxu1 %v11815_v41  ;;  %6819 = vmatpush1.bf16.msra.mxu1 %v11816_v51  ;;  %v5611_v51 = vunpack.c.h.bf16 %v5740_v37 }
 0x31e   :  { %6820 = vmatprep.subr.bf16.mxu1 %v11712_v19 }
 0x320   :  { %2178 = vmatmul.mubr.f32.gmra.mrb[20].mxu1 %v11817_v52 }
 0x321   :  { %2183 = vmatprep.mubr.f32.mxu1 %v11818_v56  ;;  %6822 = vmatpush1.bf16.msra.mxu1 %v11819_v48  ;;  %v5646_v48 = vunpack.c.l.bf16 %v5749_v60 }
 0x322   :  { %6823 = vmatprep.subr.bf16.mxu1 %v11712_v19 }
 0x324   :  { %2185 = vmatmul.mubr.f32.gmra.mrb[22].mxu1 %v11820_v9 }
 0x325   :  { %6825 = vmatpush1.bf16.msra.mxu1 %v11821_v47  ;;  %2255 = vmatprep.mubr.f32.mxu1 %v8265_v18 }
 0x326   :  { %6826 = vmatprep.subr.bf16.mxu1 %v11712_v19 }
 0x329   :  { %6828 = vmatpush1.bf16.msra.mxu1 %v11822_v1  ;;  %v8982_v1 = vsub.f32 %v5611_v51, %v5611_v51 }
 0x32a   :  { %6829 = vmatprep.subr.bf16.mxu1 %v11712_v19 }
 0x32b   :  { %11828 = vst [vmem:[#allocation19_spill] sm:$0xff] %v8982_v1 }
 0x32d   :  { %6831 = vmatpush1.bf16.msra.mxu1 %v11823_v13  ;;  %v5614_v13 = vunpack.c.l.bf16 %v5741_v28 }
 0x32e   :  { %6832 = vmatprep.subr.bf16.mxu1 %v11712_v19 }
 0x331   :  { %6834 = vmatpush1.bf16.msra.mxu1 %v11824_v32  ;;  %v5615_v32 = vunpack.c.h.bf16 %v5741_v28 }
 0x332   :  { %6835 = vmatprep.subr.bf16.mxu1 %v11712_v19  ;;  %v5739_v19 = vld [vmem:[%s11345_s5 + $0x8] sm:$0xff]  }
 0x335   :  { %6837 = vmatpush1.bf16.msra.mxu1 %v8755_v63 }
 0x338   :  { %2257 = vmatmul.mubr.f32.vlgmr.msra.gmra.mrb[8].mxu1 %v8283_v40  ;;  %v5747_v40 = vld [vmem:[%s11345_s5 + $0x48] sm:$0xff]  }
 0x339   :  { %2262 = vmatprep.mubr.f32.mxu1 %v8304_v7 }
 0x33c   :  { %2264 = vmatmul.mubr.f32.gmra.mrb[10].mxu1 %v8325_v33 }
 0x33d   :  { %2269 = vmatprep.mubr.f32.mxu1 %v8346_v23 }
 0x340   :  { %2271 = vmatmul.mubr.f32.gmra.mrb[12].mxu1 %v8368_v62  ;;  %v5746_v62 = vld [vmem:[%s11345_s5 + $0x40] sm:$0xff]  }
 0x341   :  { %2276 = vmatprep.mubr.f32.mxu1 %v8391_v44  ;;  %v5634_v18 = vunpack.c.l.bf16 %v5746_v62  ;;  %v5635_v7 = vunpack.c.h.bf16 %v5746_v62  ;;  %6839 = vmatprep.subr.bf16.mxu1 %v5746_v62  ;;  %v5638_v44 = vunpack.c.l.bf16 %v5747_v40  ;;  %v5750_v62 = vld [vmem:[%s11345_s5 + $0x60] sm:$0xff]  }
 0x343   :  { %v8916_v63 = vsub.f32 %v5634_v18, %v5634_v18  ;;  %v8918_v50 = vsub.f32 %v5635_v7, %v5635_v7  ;;  %v8924_v57 = vsub.f32 %v5638_v44, %v5638_v44  ;;  %v8989_v18 = vsub.f32 %v5646_v48, %v5646_v48 }
 0x344   :  { %2278 = vmatmul.mubr.f32.gmra.mrb[14].mxu1 %v8414_v29  ;;  %v5606_v29 = vunpack.c.l.bf16 %v5739_v19  ;;  %v8997_v44 = vsub.f32 %v5615_v32, %v5615_v32 }
 0x345   :  { %2283 = vmatprep.mubr.f32.mxu1 %v8442_v30  ;;  %v5639_v30 = vunpack.c.h.bf16 %v5747_v40  ;;  %11825 = vst [vmem:[#allocation17_spill] sm:$0xff] %v8916_v63  ;;  %11826 = vst [vmem:[#allocation18_spill] sm:$0xff] %v8918_v50  ;;  %v11454_v46 = vand.u32 4294901760, %v8916_v63  ;;  %v11453_v35 = vand.u32 4294901760, %v8918_v50  ;;  %v11449_v49 = vand.u32 4294901760, %v8924_v57 }
 0x346   :  { %v8928_v6 = vsub.f32 %v5606_v29, %v5606_v29  ;;  %11829 = vst [vmem:[#allocation21_spill] sm:$0xff] %v8989_v18  ;;  %11832 = vst [vmem:[#allocation20_spill] sm:$0xff] %v8997_v44 }
 0x347   :  { %v8926_v17 = vsub.f32 %v5639_v30, %v5639_v30  ;;  %v3012_v54 = vsub.f32 %v8916_v63, %v11454_v46  ;;  %v3018_v55 = vsub.f32 %v8918_v50, %v11453_v35  ;;  %v3024_v10 = vsub.f32 %v8924_v57, %v11449_v49 }
 0x348   :  { %2285 = vmatmul.mubr.f32.gmra.mrb[16].mxu1 %v8465_v42  ;;  %v5601_v42 = vld [vmem:[%s11345_s5] sm:$0xff]   ;;  %v11446_v45 = vand.u32 4294901760, %v8928_v6 }
 0x349   :  { %2290 = vmatprep.mubr.f32.mxu1 %v8509_v58  ;;  %v5602_v33 = vunpack.c.l.bf16 %v5601_v42  ;;  %v5603_v23 = vunpack.c.h.bf16 %v5601_v42  ;;  %v5607_v58 = vunpack.c.h.bf16 %v5739_v19  ;;  %6841 = vmatpush3.bf16.msra.mxu1 %v5601_v42  ;;  %v11447_v34 = vand.u32 4294901760, %v8926_v17 }
 0x34a   :  { %6843 = vmatprep.subr.bf16.mxu1 %v5747_v40  ;;  %v2928_v12 = vsub.f32 %v8928_v6, %v11446_v45  ;;  %v3013_v2 = vand.u32 4294901760, %v3012_v54  ;;  %v3019_v21 = vand.u32 4294901760, %v3018_v55  ;;  %v3025_v59 = vand.u32 4294901760, %v3024_v10  ;;  %v5742_v54 = vld [vmem:[%s11345_s5 + $0x20] sm:$0xff]  }
 0x34b   :  { %v8920_v38 = vsub.f32 %v5602_v33, %v5602_v33  ;;  %v8922_v39 = vsub.f32 %v5603_v23, %v5603_v23  ;;  %v8930_v43 = vsub.f32 %v5607_v58, %v5607_v58  ;;  %v3030_v5 = vsub.f32 %v8926_v17, %v11447_v34 }
 0x34c   :  { %2292 = vmatmul.mubr.f32.gmra.mrb[18].mxu1 %v11814_v26  ;;  %v2929_v8 = vand.u32 4294901760, %v2928_v12  ;;  %v6870_v3 = vpack.c.bf16 %v3019_v21, %v3013_v2  ;;  %v11439_v23 = vand.u32 4294901760, %v8982_v1  ;;  %v11438_v58 = vand.u32 4294901760, %v8989_v18 }
 0x34d   :  { %2297 = vmatprep.mubr.f32.mxu1 %v11815_v41  ;;  %v11452_v15 = vand.u32 4294901760, %v8920_v38  ;;  %v11451_v61 = vand.u32 4294901760, %v8922_v39  ;;  %v11445_v14 = vand.u32 4294901760, %v8930_v43  ;;  %6845 = vmatpush3.bf16.msra.mxu1 %v5739_v19  ;;  %v3031_v16 = vand.u32 4294901760, %v3030_v5  ;;  %v5751_v5 = vld [vmem:[%s11345_s5 + $0x68] sm:$0xff]  }
 0x34e   :  { %6847 = vmatprep.subr.bf16.mxu1 %v5748_v0  ;;  %v5610_v41 = vunpack.c.l.bf16 %v5740_v37  ;;  %6871 = vmatprep.subr.bf16.mxu0 %v6870_v3  ;;  %v8995_v19 = vsub.f32 %v5614_v13, %v5614_v13  ;;  %v11435_v10 = vand.u32 4294901760, %v8997_v44  ;;  %v3048_v2 = vsub.f32 %v8989_v18, %v11438_v58  ;;  %v5743_v3 = vld [vmem:[%s11345_s5 + $0x28] sm:$0xff]  }
 0x34f   :  { %v2916_v4 = vsub.f32 %v8920_v38, %v11452_v15  ;;  %v2922_v31 = vsub.f32 %v8922_v39, %v11451_v61  ;;  %v2934_v11 = vsub.f32 %v8930_v43, %v11445_v14  ;;  %v6874_v25 = vpack.c.bf16 %v3031_v16, %v3025_v59 }
 0x350   :  { %2299 = vmatmul.mubr.f32.gmra.mrb[20].mxu1 %v11817_v52  ;;  %v8976_v52 = vsub.f32 %v5642_v20, %v5642_v20  ;;  %v8980_v47 = vsub.f32 %v5610_v41, %v5610_v41  ;;  %11831 = vst [vmem:[#allocation22_spill] sm:$0xff] %v8995_v19  ;;  %v2958_v59 = vsub.f32 %v8997_v44, %v11435_v10  ;;  %v5618_v51 = vunpack.c.l.bf16 %v5742_v54 }
 0x351   :  { %2304 = vmatprep.mubr.f32.mxu1 %v11818_v56  ;;  %v2917_v36 = vand.u32 4294901760, %v2916_v4  ;;  %v2923_v53 = vand.u32 4294901760, %v2922_v31  ;;  %v2935_v24 = vand.u32 4294901760, %v2934_v11  ;;  %6849 = vmatpush3.bf16.msra.mxu1 %v5740_v37  ;;  %v8978_v56 = vsub.f32 %v5643_v22, %v5643_v22 }
 0x352   :  { %6851 = vmatprep.subr.bf16.mxu1 %v5749_v60  ;;  %v11444_v42 = vand.u32 4294901760, %v8976_v52  ;;  %v11440_v33 = vand.u32 4294901760, %v8980_v47  ;;  %v2946_v4 = vsub.f32 %v8982_v1, %v11439_v23  ;;  %v11436_v31 = vand.u32 4294901760, %v8995_v19 }
 0x353   :  { %v6872_v27 = vpack.c.bf16 %v2923_v53, %v2917_v36  ;;  %v6876_v26 = vpack.c.bf16 %v2935_v24, %v2929_v8  ;;  %11827 = vst [vmem:[#allocation9_spill] sm:$0xff] %v8978_v56  ;;  %v11442_v40 = vand.u32 4294901760, %v8978_v56  ;;  %v3049_v8 = vand.u32 4294901760, %v3048_v2 }
 0x354   :  { %2306 = vmatmul.mubr.f32.gmra.mrb[22].mxu1 %v11820_v9  ;;  %v5647_v9 = vunpack.c.h.bf16 %v5749_v60  ;;  %v3036_v30 = vsub.f32 %v8976_v52, %v11444_v42  ;;  %v2940_v55 = vsub.f32 %v8980_v47, %v11440_v33  ;;  %v2947_v53 = vand.u32 4294901760, %v2946_v4 }
 0x355   :  { %6873 = vmatpush3.bf16.msra.mxu0 %v6872_v27  ;;  %6853 = vmatpush3.bf16.msra.mxu1 %v5741_v28  ;;  %v3042_v29 = vsub.f32 %v8978_v56, %v11442_v40  ;;  %v2952_v37 = vsub.f32 %v8995_v19, %v11436_v31  ;;  %v5650_v60 = vunpack.c.l.bf16 %v5750_v62  ;;  %v2959_v22 = vand.u32 4294901760, %v2958_v59 }
 0x356   :  { %6875 = vmatprep.subr.bf16.mxu0 %v6874_v25  ;;  %v8991_v7 = vsub.f32 %v5647_v9, %v5647_v9  ;;  %6855 = vmatprep.subr.bf16.mxu1 %v5750_v62  ;;  %v3037_v12 = vand.u32 4294901760, %v3036_v30  ;;  %v2941_v36 = vand.u32 4294901760, %v2940_v55  ;;  %v5651_v28 = vunpack.c.h.bf16 %v5750_v62  ;;  %v9039_v25 = vld [vmem:[%s11345_s5 + $0x70] sm:$0xff]  }
 0x357   :  { %v3043_v11 = vand.u32 4294901760, %v3042_v29  ;;  %v2953_v20 = vand.u32 4294901760, %v2952_v37  ;;  %v9041_v41 = vsub.f32 %v5650_v60, %v5650_v60  ;;  %v5619_v48 = vunpack.c.h.bf16 %v5742_v54 }
 0x358   :  { %11830 = vst [vmem:[#allocation10_spill] sm:$0xff] %v8991_v7  ;;  %v11437_v0 = vand.u32 4294901760, %v8991_v7  ;;  %v6880_v27 = vpack.c.bf16 %v2947_v53, %v2941_v36  ;;  %v9044_v13 = vsub.f32 %v5651_v28, %v5651_v28  ;;  %v5654_v32 = vunpack.c.l.bf16 %v5751_v5 }
 0x359   :  { %6877 = vmatpush3.bf16.msra.mxu0 %v6876_v26  ;;  %6857 = vmatpush3.bf16.msra.mxu1 %v5742_v54  ;;  %v6878_v16 = vpack.c.bf16 %v3043_v11, %v3037_v12  ;;  %11833 = vst [vmem:[#allocation11_spill] sm:$0xff] %v9041_v41  ;;  %v6884_v9 = vpack.c.bf16 %v2959_v22, %v2953_v20  ;;  %v5655_v62 = vunpack.c.h.bf16 %v5751_v5  ;;  %v11426_v30 = vand.u32 4294901760, %v9041_v41  ;;  %v5744_v54 = vld [vmem:[%s11345_s5 + $0x30] sm:$0xff]  }
 0x35a   :  { %v3054_v21 = vsub.f32 %v8991_v7, %v11437_v0  ;;  %6859 = vmatprep.subr.bf16.mxu1 %v5751_v5  ;;  %11834 = vst [vmem:[#allocation23_spill] sm:$0xff] %v9044_v13  ;;  %v9047_v29 = vsub.f32 %v5618_v51, %v5618_v51  ;;  %v9049_v55 = vsub.f32 %v5619_v48, %v5619_v48  ;;  %v5622_v4 = vunpack.c.l.bf16 %v5743_v3  ;;  %v5753_v5 = vld [vmem:[%s11345_s5 + $0x78] sm:$0xff]  }
 0x35b   :  { %6879 = vmatprep.subr.bf16.mxu0 %v6878_v16  ;;  %v11425_v12 = vand.u32 4294901760, %v9044_v13  ;;  %v9055_v11 = vsub.f32 %v5654_v32, %v5654_v32  ;;  %v9057_v2 = vsub.f32 %v5655_v62, %v5655_v62  ;;  %v3060_v36 = vsub.f32 %v9041_v41, %v11426_v30 }
 0x35c   :  { %v3055_v24 = vand.u32 4294901760, %v3054_v21  ;;  %11835 = vst [vmem:[#allocation12_spill] sm:$0xff] %v9047_v29  ;;  %11836 = vst [vmem:[#allocation13_spill] sm:$0xff] %v9049_v55  ;;  %v5623_v21 = vunpack.c.h.bf16 %v5743_v3  ;;  %v11423_v53 = vand.u32 4294901760, %v9047_v29  ;;  %v11422_v37 = vand.u32 4294901760, %v9049_v55 }
 0x35d   :  { %6861 = vmatpush3.bf16.msra.mxu1 %v5743_v3  ;;  %6881 = vmatpush3.bf16.msra.mxu0 %v6880_v27  ;;  %11837 = vst [vmem:[#allocation14_spill] sm:$0xff] %v9055_v11  ;;  %11838 = vst [vmem:[#allocation16_spill] sm:$0xff] %v9057_v2  ;;  %v9067_v59 = vsub.f32 %v5622_v4, %v5622_v4  ;;  %v3066_v16 = vsub.f32 %v9044_v13, %v11425_v12  ;;  %v3061_v3 = vand.u32 4294901760, %v3060_v36 }
 0x35e   :  { %v6882_v26 = vpack.c.bf16 %v3055_v24, %v3049_v8  ;;  %6863 = vmatprep.subr.bf16.mxu1 %v9039_v25  ;;  %v11421_v8 = vand.u32 4294901760, %v9055_v11  ;;  %v11424_v24 = vand.u32 4294901760, %v9057_v2  ;;  %v9074_v60 = vsub.f32 %v5623_v21, %v5623_v21 }
 0x35f   :  { %11839 = vst [vmem:[#allocation24_spill] sm:$0xff] %v9067_v59  ;;  %v2964_v27 = vsub.f32 %v9047_v29, %v11423_v53  ;;  %v2970_v20 = vsub.f32 %v9049_v55, %v11422_v37  ;;  %v11427_v22 = vand.u32 4294901760, %v9067_v59  ;;  %v3067_v28 = vand.u32 4294901760, %v3066_v16 }
 0x360   :  { %6883 = vmatprep.subr.bf16.mxu0 %v6882_v26  ;;  %11840 = vst [vmem:[#allocation25_spill] sm:$0xff] %v9074_v60  ;;  %v3072_v26 = vsub.f32 %v9055_v11, %v11421_v8  ;;  %v3078_v51 = vsub.f32 %v9057_v2, %v11424_v24  ;;  %v11428_v48 = vand.u32 4294901760, %v9074_v60  ;;  %v5658_v4 = vunpack.c.l.bf16 %v9039_v25 }
 0x361   :  { %6865 = vmatpush3.bf16.msra.mxu1 %v5744_v54  ;;  %6885 = vmatpush3.bf16.msra.mxu0 %v6884_v9  ;;  %v2965_v9 = vand.u32 4294901760, %v2964_v27  ;;  %v2971_v32 = vand.u32 4294901760, %v2970_v20  ;;  %v2976_v62 = vsub.f32 %v9067_v59, %v11427_v22  ;;  %v6886_v21 = vpack.c.bf16 %v3067_v28, %v3061_v3 }
 0x362   :  { %6867 = vmatprep.subr.bf16.mxu1 %v5753_v5  ;;  %v3073_v36 = vand.u32 4294901760, %v3072_v26  ;;  %v3079_v16 = vand.u32 4294901760, %v3078_v51  ;;  %v2982_v8 = vsub.f32 %v9074_v60, %v11428_v48  ;;  %v5659_v24 = vunpack.c.h.bf16 %v9039_v25 }
 0x363   :  { %v6888_v37 = vpack.c.bf16 %v2971_v32, %v2965_v9  ;;  %v2977_v53 = vand.u32 4294901760, %v2976_v62  ;;  %v9098_v12 = vsub.f32 %v5658_v4, %v5658_v4  ;;  %6887 = vmatprep.subr.bf16.mxu0 %v6886_v21  ;;  %v5626_v30 = vunpack.c.l.bf16 %v5744_v54 }
 0x364   :  { %v6890_v27 = vpack.c.bf16 %v3079_v16, %v3073_v36  ;;  %v2983_v20 = vand.u32 4294901760, %v2982_v8  ;;  %v5627_v22 = vunpack.c.h.bf16 %v5744_v54  ;;  %v9101_v28 = vsub.f32 %v5659_v24, %v5659_v24 }
 0x365   :  { %11841 = vst [vmem:[#allocation26_spill] sm:$0xff] %v9098_v12  ;;  %6889 = vmatpush3.bf16.msra.mxu0 %v6888_v37  ;;  %v11433_v3 = vand.u32 4294901760, %v9098_v12  ;;  %v5662_v26 = vunpack.c.l.bf16 %v5753_v5  ;;  %v5663_v51 = vunpack.c.h.bf16 %v5753_v5  ;;  %v9103_v9 = vsub.f32 %v5626_v30, %v5626_v30 }
 0x366   :  { %11842 = vst [vmem:[#allocation27_spill] sm:$0xff] %v9101_v28  ;;  %6891 = vmatprep.subr.bf16.mxu0 %v6890_v27  ;;  %v6892_v48 = vpack.c.bf16 %v2983_v20, %v2977_v53  ;;  %v9105_v32 = vsub.f32 %v5627_v22, %v5627_v22  ;;  %v11429_v8 = vand.u32 4294901760, %v9101_v28 }
 0x367   :  { %11843 = vst [vmem:[#allocation28_spill] sm:$0xff] %v9103_v9  ;;  %v3084_v25 = vsub.f32 %v9098_v12, %v11433_v3  ;;  %v9111_v54 = vsub.f32 %v5662_v26, %v5662_v26  ;;  %v9113_v37 = vsub.f32 %v5663_v51, %v5663_v51  ;;  %v11430_v24 = vand.u32 4294901760, %v9103_v9 }
 0x368   :  { %11844 = vst [vmem:[#allocation29_spill] sm:$0xff] %v9105_v32  ;;  %v11432_v5 = vand.u32 4294901760, %v9105_v32  ;;  %v3090_v30 = vsub.f32 %v9101_v28, %v11429_v8 }
 0x369   :  { %11845 = vst [vmem:[#allocation30_spill] sm:$0xff] %v9111_v54  ;;  %11846 = vst [vmem:[#allocation31_spill] sm:$0xff] %v9113_v37  ;;  %6893 = vmatpush3.bf16.msra.mxu0 %v6892_v48  ;;  %v3085_v53 = vand.u32 4294901760, %v3084_v25  ;;  %v11431_v22 = vand.u32 4294901760, %v9111_v54  ;;  %v11434_v62 = vand.u32 4294901760, %v9113_v37  ;;  %v2988_v4 = vsub.f32 %v9103_v9, %v11430_v24 }
 0x36a   :  { %v2994_v21 = vsub.f32 %v9105_v32, %v11432_v5  ;;  %v3091_v36 = vand.u32 4294901760, %v3090_v30  ;;  %v9137_v30 = vld [vmem:[%s11344_s4] ss:$0 sm:$0xff] }
 0x36b   :  { %v3096_v48 = vsub.f32 %v9111_v54, %v11431_v22  ;;  %v3102_v16 = vsub.f32 %v9113_v37, %v11434_v62  ;;  %v2989_v27 = vand.u32 4294901760, %v2988_v4 }
 0x36c   :  { %v2995_v20 = vand.u32 4294901760, %v2994_v21  ;;  %v6894_v26 = vpack.c.bf16 %v3091_v36, %v3085_v53 }
 0x36d   :  { %v3097_v51 = vand.u32 4294901760, %v3096_v48  ;;  %v3103_v25 = vand.u32 4294901760, %v3102_v16 }
 0x36e   :  { %v6896_v8 = vpack.c.bf16 %v2995_v20, %v2989_v27  ;;  %6895 = vmatprep.subr.bf16.mxu0 %v6894_v26 }
 0x36f   :  { %v6898_v24 = vpack.c.bf16 %v3103_v25, %v3097_v51 }
 0x370   :  { %6897 = vmatpush3.bf16.msra.mxu0 %v6896_v8  ;;  %v5745_v8 = vld [vmem:[%s11345_s5 + $0x38] sm:$0xff]  }
 0x371   :  { %6899 = vmatprep.subr.bf16.mxu0 %v6898_v24  ;;  %v5630_v24 = vunpack.c.l.bf16 %v5745_v8  ;;  %v5631_v36 = vunpack.c.h.bf16 %v5745_v8  ;;  %6869 = vmatpush3.bf16.msra.mxu1 %v5745_v8 }
 0x40b   :  { %v2258_v22 = vpop.f32.mrb[8].mxu1 }
 0x40c   :  { %v7382_v5 = vadd.f32 %v9137_v30, %v2258_v22  ;;  %v2260_v3 = vpop.f32.mrb[9].mxu1  ;;  %v9149_v22 = vsub.f32 %v5630_v24, %v5630_v24 }
 0x40d   :  { %v9151_v3 = vsub.f32 %v5631_v36, %v5631_v36 }
 0x40e   :  { %v9140_v62 = vmax.f32 %v7382_v5, 0.0  ;;  %11847 = vst [vmem:[#allocation32_spill] sm:$0xff] %v9149_v22  ;;  %v6902_v5 = vpack.c.bf16 %v8918_v50, %v8916_v63 }
 0x40f   :  { %v2265_v4 = vpop.f32.mrb[10].mxu1  ;;  %11848 = vst [vmem:[#allocation33_spill] sm:$0xff] %v9151_v3  ;;  %v11443_v8 = vand.u32 4294901760, %v9151_v3 }
 0x410   :  { %v7383_v53 = vadd.f32 %v9137_v30, %v2265_v4  ;;  %v2267_v21 = vpop.f32.mrb[11].mxu1  ;;  %v2391_v16 = vrot.slane %v9140_v62, 3  ;;  %v2327_v4 = vrot.slane %v9140_v62, 1  ;;  %v2367_v35 = vrot.slane %v9140_v62, 2 }
 0x411   :  { %v11441_v21 = vand.u32 4294901760, %v9149_v22 }
 0x412   :  { %v9146_v48 = vmax.f32 %v7383_v53, 0.0 }
 0x413   :  { %v2272_v27 = vpop.f32.mrb[12].mxu1 }
 0x414   :  { %v7384_v26 = vadd.f32 %v9137_v30, %v2272_v27  ;;  %v2274_v51 = vpop.f32.mrb[13].mxu1  ;;  %v2392_v25 = vrot.slane %v9146_v48, 3  ;;  %v2328_v53 = vrot.slane %v9146_v48, 1  ;;  %v3000_v27 = vsub.f32 %v9149_v22, %v11441_v21 }
 0x415   :  { %v2368_v61 = vrot.slane %v9146_v48, 2 }
 0x416   :  { %v9163_v24 = vmax.f32 %v7384_v26, 0.0  ;;  %v2393_v36 = vsel %vm134_vm2, %v2391_v16, %v2392_v25  ;;  %v2329_v10 = vsel %vm50_vm1, %v2327_v4, %v2328_v53  ;;  %v3001_v23 = vand.u32 4294901760, %v3000_v27 }
 0x417   :  { %v2279_v31 = vpop.f32.mrb[14].mxu1  ;;  %2407 = vrot.lane.b32.xlu0 %v2393_v36, %s7646_s30  ;;  %2343 = vrot.lane.b32.xlu1 %v2329_v10, %s7646_s30  ;;  %v3006_v16 = vsub.f32 %v9151_v3, %v11443_v8  ;;  %v9349_v20 = vsel %vm92_vm0, %v2367_v35, %v2368_v61 }
 0x418   :  { %v7385_v51 = vadd.f32 %v9137_v30, %v2279_v31  ;;  %v2281_v0 = vpop.f32.mrb[15].mxu1  ;;  %v2394_v58 = vrot.slane %v9163_v24, 3  ;;  %v2330_v26 = vrot.slane %v9163_v24, 1 }
 0x419   :  { %v3007_v0 = vand.u32 4294901760, %v3006_v16 }
 0x41a   :  { %v9178_v4 = vmax.f32 %v7385_v51, 0.0  ;;  %v2395_v10 = vsel %vm134_vm2, %v2392_v25, %v2394_v58  ;;  %v2331_v36 = vsel %vm50_vm1, %v2328_v53, %v2330_v26  ;;  %v5762_v51 = vld [vmem:[%s11345_s5 + $0xc0] sm:$0xff]  }
 0x41b   :  { %v2286_v33 = vpop.f32.mrb[16].mxu1  ;;  %2409 = vrot.lane.b32.xlu0 %v2395_v10, %s7646_s30  ;;  %2345 = vrot.lane.b32.xlu1 %v2331_v36, %s7646_s30  ;;  %v6900_v25 = vpack.c.bf16 %v3007_v0, %v3001_v23 }
 0x41c   :  { %v7386_v31 = vadd.f32 %v9137_v30, %v2286_v33  ;;  %v2288_v21 = vpop.f32.mrb[17].mxu1  ;;  %v2396_v27 = vrot.slane %v9178_v4, 3  ;;  %v2332_v40 = vrot.slane %v9178_v4, 1 }
 0x41d   :  { %v5698_v21 = vunpack.c.l.bf16 %v5762_v51  ;;  %6901 = vmatpush3.bf16.msra.mxu0 %v6900_v25 }
 0x41e   :  { %v9190_v8 = vmax.f32 %v7386_v31, 0.0  ;;  %v2397_v53 = vsel %vm134_vm2, %v2394_v58, %v2396_v27  ;;  %v2333_v10 = vsel %vm50_vm1, %v2330_v26, %v2332_v40  ;;  %6903 = vmatprep.subr.bf16.mxu0 %v6902_v5  ;;  %v5699_v26 = vunpack.c.h.bf16 %v5762_v51  ;;  %v9361_v58 = vld [vmem:[%s11345_s5 + $0x90] sm:$0xff]  }
 0x41f   :  { %v2293_v36 = vpop.f32.mrb[18].mxu1  ;;  %2411 = vrot.lane.b32.xlu0 %v2397_v53, %s7646_s30  ;;  %2347 = vrot.lane.b32.xlu1 %v2333_v10, %s7646_s30  ;;  %11870 = vst [vmem:[#allocation47_spill] sm:$0xff] %v9361_v58  ;;  %v5675_v50 = vunpack.c.h.bf16 %v9361_v58 }
 0x420   :  { %11849 = vst [vmem:[#allocation34_spill] sm:$0xff] %v9190_v8  ;;  %v7387_v16 = vadd.f32 %v9137_v30, %v2293_v36  ;;  %v2295_v42 = vpop.f32.mrb[19].mxu1  ;;  %v2398_v23 = vrot.slane %v9190_v8, 3  ;;  %v2334_v0 = vrot.slane %v9190_v8, 1  ;;  %v9215_v45 = vsub.f32 %v5699_v26, %v5699_v26 }
 0x421   :  { %v9209_v42 = vsub.f32 %v5698_v21, %v5698_v21 }
 0x422   :  { %v9203_v31 = vmax.f32 %v7387_v16, 0.0  ;;  %v2399_v53 = vsel %vm134_vm2, %v2396_v27, %v2398_v23  ;;  %v2335_v10 = vsel %vm50_vm1, %v2332_v40, %v2334_v0  ;;  %11852 = vst [vmem:[#allocation37_spill] sm:$0xff] %v9215_v45  ;;  %v11450_v21 = vand.u32 4294901760, %v9215_v45 }
 0x423   :  { %v2300_v14 = vpop.f32.mrb[20].mxu1  ;;  %2413 = vrot.lane.b32.xlu0 %v2399_v53, %s7646_s30  ;;  %2349 = vrot.lane.b32.xlu1 %v2335_v10, %s7646_s30  ;;  %11851 = vst [vmem:[#allocation36_spill] sm:$0xff] %v9209_v42  ;;  %v11448_v16 = vand.u32 4294901760, %v9209_v42 }
 0x424   :  { %11850 = vst [vmem:[#allocation35_spill] sm:$0xff] %v9203_v31  ;;  %v7388_v25 = vadd.f32 %v9137_v30, %v2300_v14  ;;  %v2302_v5 = vpop.f32.mrb[21].mxu1  ;;  %v2400_v36 = vrot.slane %v9203_v31, 3  ;;  %v2336_v51 = vrot.slane %v9203_v31, 1  ;;  %v2376_v35 = vrot.slane %v9203_v31, 2 }
 0x425   :  { %v4062_v14 = vsub.f32 %v9209_v42, %v11448_v16 }
 0x426   :  { %v9217_v27 = vmax.f32 %v7388_v25, 0.0  ;;  %v2401_v40 = vsel %vm134_vm2, %v2398_v23, %v2400_v36  ;;  %v2337_v53 = vsel %vm50_vm1, %v2334_v0, %v2336_v51  ;;  %v4068_v0 = vsub.f32 %v9215_v45, %v11450_v21 }
 0x427   :  { %v2307_v10 = vpop.f32.mrb[22].mxu1  ;;  %2415 = vrot.lane.b32.xlu0 %v2401_v40, %s7646_s30  ;;  %2351 = vrot.lane.b32.xlu1 %v2337_v53, %s7646_s30  ;;  %v4063_v34 = vand.u32 4294901760, %v4062_v14 }
 0x428   :  { %11853 = vst [vmem:[#allocation38_spill] sm:$0xff] %v9217_v27  ;;  %v7389_v26 = vadd.f32 %v9137_v30, %v2307_v10  ;;  %v2309_v5 = vpop.f32.mrb[23].mxu1  ;;  %v2402_v25 = vrot.slane %v9217_v27, 3  ;;  %v2338_v23 = vrot.slane %v9217_v27, 1  ;;  %v4069_v30 = vand.u32 4294901760, %v4068_v0 }
 0x429   :  { %v2523_v0 = vrot.slane %v9146_v48, 7  ;;  %v2378_v22 = vrot.slane %v9217_v27, 2 }
 0x42a   :  { %v9233_v40 = vmax.f32 %v7389_v26, 0.0  ;;  %v2403_v53 = vsel %vm134_vm2, %v2400_v36, %v2402_v25  ;;  %v2339_v16 = vsel %vm50_vm1, %v2336_v51, %v2338_v23  ;;  %v7062_v14 = vpack.c.bf16 %v4069_v30, %v4063_v34  ;;  %v11855_v36 = vld [vmem:[#allocation7_spill] sm:$0xff]  ;;  %v11856_v26 = vld [vmem:[#allocation5_spill] sm:$0xff] }
 0x42b   :  { %2417 = vrot.lane.b32.xlu0 %v2403_v53, %s7646_s30  ;;  %2353 = vrot.lane.b32.xlu1 %v2339_v16, %s7646_s30  ;;  %v2456_v53 = vrot.slane %v9146_v48, 5  ;;  %v2455_v34 = vrot.slane %v9140_v62, 5  ;;  %v2458_v30 = vrot.slane %v9163_v24, 5 }
 0x42c   :  { %11854 = vst [vmem:[#allocation39_spill] sm:$0xff] %v9233_v40  ;;  %v2404_v10 = vrot.slane %v9233_v40, 3  ;;  %v2340_v5 = vrot.slane %v9233_v40, 1  ;;  %7063 = vmatprep.subr.bf16.mxu1 %v7062_v14  ;;  %v2527_v14 = vrot.slane %v9178_v4, 7 }
 0x42e   :  { %v2405_v49 = vsel %vm134_vm2, %v2402_v25, %v2404_v10  ;;  %v2341_v21 = vsel %vm50_vm1, %v2338_v23, %v2340_v5  ;;  %v2406_v51 = vsel %vm134_vm2, %v2404_v10, %v11855_v36  ;;  %v2342_v16 = vsel %vm50_vm1, %v2340_v5, %v11856_v26 }
 0x42f   :  { %2419 = vrot.lane.b32.xlu0 %v2405_v49, %s7646_s30  ;;  %2355 = vrot.lane.b32.xlu1 %v2341_v21, %s7646_s30  ;;  %v2522_v49 = vrot.slane %v9140_v62, 7  ;;  %v2457_v25 = vsel %vm1149_vm7, %v2455_v34, %v2456_v53  ;;  %v2525_v23 = vrot.slane %v9163_v24, 7  ;;  %v2459_v5 = vsel %vm1149_vm7, %v2456_v53, %v2458_v30 }
 0x430   :  { %v2460_v36 = vrot.slane %v9178_v4, 5  ;;  %v2531_v34 = vrot.slane %v9203_v31, 7 }
 0x431   :  { %v2524_v21 = vsel %vm2521_vm12, %v2522_v49, %v2523_v0  ;;  %v2526_v10 = vsel %vm2521_vm12, %v2523_v0, %v2525_v23  ;;  %v2462_v49 = vrot.slane %v9190_v8, 5 }
 0x432   :  { %v2461_v26 = vsel %vm1149_vm7, %v2458_v30, %v2460_v36  ;;  %v2533_v30 = vrot.slane %v9217_v27, 7 }
 0x433   :  { %2421 = vrot.lane.b32.xlu0 %v2406_v51, %s7646_s30  ;;  %2357 = vrot.lane.b32.xlu1 %v2342_v16, %s7646_s30  ;;  %v2528_v51 = vsel %vm2521_vm12, %v2525_v23, %v2527_v14  ;;  %v2529_v16 = vrot.slane %v9190_v8, 7  ;;  %v2463_v53 = vsel %vm1149_vm7, %v2460_v36, %v2462_v49 }
 0x435   :  { %v2530_v0 = vsel %vm2521_vm12, %v2527_v14, %v2529_v16  ;;  %v2534_v14 = vsel %vm2521_vm12, %v2531_v34, %v2533_v30 }
 0x437   :  { %2539 = vrot.lane.b32.xlu0 %v2524_v21, %s7646_s30  ;;  %2471 = vrot.lane.b32.xlu1 %v2457_v25, %s7646_s30  ;;  %v2464_v21 = vrot.slane %v9203_v31, 5  ;;  %v2532_v25 = vsel %vm2521_vm12, %v2529_v16, %v2531_v34 }
 0x439   :  { %v2465_v23 = vsel %vm1149_vm7, %v2462_v49, %v2464_v21 }
 0x43b   :  { %2541 = vrot.lane.b32.xlu0 %v2526_v10, %s7646_s30  ;;  %2473 = vrot.lane.b32.xlu1 %v2459_v5, %s7646_s30  ;;  %v2466_v10 = vrot.slane %v9217_v27, 5 }
 0x43d   :  { %v2467_v36 = vsel %vm1149_vm7, %v2464_v21, %v2466_v10  ;;  %v11858_v21 = vld [vmem:[#allocation8_spill] sm:$0xff] }
 0x43f   :  { %2543 = vrot.lane.b32.xlu0 %v2528_v51, %s7646_s30  ;;  %2475 = vrot.lane.b32.xlu1 %v2461_v26, %s7646_s30  ;;  %v2535_v51 = vrot.slane %v9233_v40, 7  ;;  %v2468_v26 = vrot.slane %v9233_v40, 5 }
 0x441   :  { %v2536_v16 = vsel %vm2521_vm12, %v2533_v30, %v2535_v51  ;;  %v2469_v49 = vsel %vm1149_vm7, %v2466_v10, %v2468_v26  ;;  %v9311_v30 = vld [vmem:[%s11345_s5 + $0xc8] sm:$0xff]  }
 0x442   :  { %11860 = vst [vmem:[#allocation5_spill] sm:$0xff] %v9311_v30 }
 0x443   :  { %2545 = vrot.lane.b32.xlu0 %v2530_v0, %s7646_s30  ;;  %2477 = vrot.lane.b32.xlu1 %v2463_v53, %s7646_s30  ;;  %v11857_v0 = vmov 0.0  }
 0x444   :  { %v2537_v53 = vrot.slane %v11857_v0, 7 }
 0x446   :  { %v2538_v34 = vsel %vm2521_vm12, %v2535_v51, %v2537_v53  ;;  %v9319_v51 = vld [vmem:[%s11345_s5 + $0x88] sm:$0xff]  }
 0x447   :  { %2547 = vrot.lane.b32.xlu0 %v2532_v25, %s7646_s30  ;;  %2479 = vrot.lane.b32.xlu1 %v2465_v23, %s7646_s30  ;;  %v2470_v25 = vsel %vm1149_vm7, %v2468_v26, %v11858_v21  ;;  %v9306_v23 = vld [vmem:[%s11345_s5 + $0x80] sm:$0xff]   ;;  %11861 = vst [vmem:[#allocation8_spill] sm:$0xff] %v9319_v51  ;;  %v5671_v53 = vunpack.c.h.bf16 %v9319_v51 }
 0x448   :  { %11859 = vst [vmem:[#allocation7_spill] sm:$0xff] %v9306_v23  ;;  %v5666_v10 = vunpack.c.l.bf16 %v9306_v23 }
 0x449   :  { %v9342_v5 = vsub.f32 %v5671_v53, %v5671_v53 }
 0x44a   :  { %v9321_v26 = vsub.f32 %v5666_v10, %v5666_v10  ;;  %v2374_v10 = vrot.slane %v9190_v8, 2 }
 0x44b   :  { %2549 = vrot.lane.b32.xlu0 %v2534_v14, %s7646_s30  ;;  %2481 = vrot.lane.b32.xlu1 %v2467_v36, %s7646_s30  ;;  %v5667_v14 = vunpack.c.h.bf16 %v9306_v23  ;;  %v5702_v36 = vunpack.c.l.bf16 %v9311_v30  ;;  %11868 = vst [vmem:[#allocation46_spill] sm:$0xff] %v9342_v5 }
 0x44c   :  { %11862 = vst [vmem:[#allocation40_spill] sm:$0xff] %v9321_v26 }
 0x44d   :  { %v9328_v21 = vsub.f32 %v5702_v36, %v5702_v36  ;;  %v2370_v36 = vrot.slane %v9163_v24, 2 }
 0x44f   :  { %2551 = vrot.lane.b32.xlu0 %v2536_v16, %s7646_s30  ;;  %2483 = vrot.lane.b32.xlu1 %v2469_v49, %s7646_s30  ;;  %v5703_v16 = vunpack.c.h.bf16 %v9311_v30  ;;  %v5670_v49 = vunpack.c.l.bf16 %v9319_v51  ;;  %11864 = vst [vmem:[#allocation42_spill] sm:$0xff] %v9328_v21  ;;  %v9369_v0 = vsel %vm92_vm0, %v2368_v61, %v2370_v36  ;;  %v5674_v61 = vunpack.c.l.bf16 %v9361_v58 }
 0x451   :  { %v9337_v15 = vsub.f32 %v5703_v16, %v5703_v16  ;;  %v9340_v46 = vsub.f32 %v5670_v49, %v5670_v49  ;;  %v2372_v16 = vrot.slane %v9178_v4, 2  ;;  %v11869_v49 = vand.u32 4294901760, %v9321_v26 }
 0x452   :  { %v9417_v3 = vsub.f32 %v5674_v61, %v5674_v61 }
 0x453   :  { %2553 = vrot.lane.b32.xlu0 %v2538_v34, %s7646_s30  ;;  %2485 = vrot.lane.b32.xlu1 %v2470_v25, %s7646_s30  ;;  %v9326_v34 = vsub.f32 %v5667_v14, %v5667_v14  ;;  %v9333_v25 = vld [vmem:[%s11345_s5 + $0xd0] sm:$0xff]   ;;  %11866 = vst [vmem:[#allocation44_spill] sm:$0xff] %v9337_v15  ;;  %11867 = vst [vmem:[#allocation45_spill] sm:$0xff] %v9340_v46  ;;  %v3966_v53 = vsub.f32 %v9321_v26, %v11869_v49 }
 0x454   :  { %11865 = vst [vmem:[#allocation43_spill] sm:$0xff] %v9333_v25  ;;  %v5706_v14 = vunpack.c.l.bf16 %v9333_v25  ;;  %v5707_v42 = vunpack.c.h.bf16 %v9333_v25  ;;  %v11873_v25 = vand.u32 4294901760, %v9328_v21  ;;  %v9380_v33 = vsel %vm92_vm0, %v2370_v36, %v2372_v16  ;;  %11880 = vst [vmem:[#allocation52_spill] sm:$0xff] %v9417_v3 }
 0x455   :  { %11863 = vst [vmem:[#allocation41_spill] sm:$0xff] %v9326_v34  ;;  %v11872_v45 = vand.u32 4294901760, %v9326_v34  ;;  %v9387_v49 = vsel %vm92_vm0, %v2372_v16, %v2374_v10  ;;  %v3967_v30 = vand.u32 4294901760, %v3966_v53  ;;  %v9400_v36 = vsel %vm92_vm0, %v2374_v10, %v2376_v35 }
 0x456   :  { %v9366_v63 = vsub.f32 %v5706_v14, %v5706_v14  ;;  %v4074_v51 = vsub.f32 %v9328_v21, %v11873_v25  ;;  %v9392_v23 = vsub.f32 %v5707_v42, %v5707_v42  ;;  %v9397_v25 = vld [vmem:[%s11345_s5 + $0xd8] sm:$0xff]   ;;  %v11877_v14 = vand.u32 4294901760, %v9340_v46 }
 0x457   :  { %v3972_v26 = vsub.f32 %v9326_v34, %v11872_v45  ;;  %v11874_v45 = vand.u32 4294901760, %v9337_v15  ;;  %11876 = vst [vmem:[#allocation50_spill] sm:$0xff] %v9397_v25  ;;  %v11878_v53 = vand.u32 4294901760, %v9342_v5  ;;  %v9412_v42 = vld [vmem:[%s11345_s5 + $0x98] sm:$0xff]  }
 0x458   :  { %11871 = vst [vmem:[#allocation48_spill] sm:$0xff] %v9366_v63  ;;  %11875 = vst [vmem:[#allocation49_spill] sm:$0xff] %v9392_v23  ;;  %v3978_v16 = vsub.f32 %v9340_v46, %v11877_v14  ;;  %v4075_v58 = vand.u32 4294901760, %v4074_v51  ;;  %v9419_v14 = vsub.f32 %v5675_v50, %v5675_v50  ;;  %v5678_v31 = vunpack.c.l.bf16 %v9412_v42 }
 0x459   :  { %v4080_v34 = vsub.f32 %v9337_v15, %v11874_v45  ;;  %v3984_v21 = vsub.f32 %v9342_v5, %v11878_v53  ;;  %11879 = vst [vmem:[#allocation51_spill] sm:$0xff] %v9412_v42  ;;  %v3973_v15 = vand.u32 4294901760, %v3972_v26  ;;  %v5710_v53 = vunpack.c.l.bf16 %v9397_v25 }
 0x45a   :  { %11881 = vst [vmem:[#allocation53_spill] sm:$0xff] %v9419_v14  ;;  %v5711_v45 = vunpack.c.h.bf16 %v9397_v25  ;;  %v5679_v26 = vunpack.c.h.bf16 %v9412_v42  ;;  %v3979_v8 = vand.u32 4294901760, %v3978_v16  ;;  %v11882_v51 = vand.u32 4294901760, %v9366_v63 }
 0x45b   :  { %v4081_v5 = vand.u32 4294901760, %v4080_v34  ;;  %v3985_v10 = vand.u32 4294901760, %v3984_v21  ;;  %v2380_v50 = vrot.slane %v9233_v40, 2  ;;  %v9430_v27 = vpack.c.bf16 %v3973_v15, %v3967_v30  ;;  %v9447_v15 = vld [vmem:[%s11345_s5 + $0xe0] sm:$0xff]  }
 0x45c   :  { %v4086_v61 = vsub.f32 %v9366_v63, %v11882_v51  ;;  %v9440_v42 = vsub.f32 %v5710_v53, %v5710_v53  ;;  %v9442_v51 = vsub.f32 %v5711_v45, %v5711_v45  ;;  %11885 = vst [vmem:[#allocation56_spill] sm:$0xff] %v9447_v15  ;;  %v9452_v30 = vld [vmem:[%s11345_s5 + $0xa0] sm:$0xff]   ;;  %v9455_v46 = vsel %vm92_vm0, %v2376_v35, %v2378_v22  ;;  %v9474_v35 = vld [vmem:[%s11345_s5 + $0xe8] sm:$0xff]  }
 0x45d   :  { %11886 = vst [vmem:[#allocation57_spill] sm:$0xff] %v9452_v30  ;;  %11887 = vst [vmem:[#allocation58_spill] sm:$0xff] %v9455_v46  ;;  %v11888_v34 = vand.u32 4294901760, %v9392_v23  ;;  %v9460_v25 = vsub.f32 %v5678_v31, %v5678_v31  ;;  %v9462_v45 = vsub.f32 %v5679_v26, %v5679_v26  ;;  %v9464_v21 = vpack.c.bf16 %v4081_v5, %v4075_v58 }
 0x45e   :  { %11883 = vst [vmem:[#allocation54_spill] sm:$0xff] %v9440_v42  ;;  %11884 = vst [vmem:[#allocation55_spill] sm:$0xff] %v9442_v51  ;;  %v9466_v16 = vpack.c.bf16 %v3985_v10, %v3979_v8  ;;  %v4087_v63 = vand.u32 4294901760, %v4086_v61  ;;  %v9469_v40 = vsel %vm92_vm0, %v2378_v22, %v2380_v50  ;;  %v5714_v29 = vunpack.c.l.bf16 %v9447_v15  ;;  %v9483_v8 = vld [vmem:[%s11345_s5 + $0xa8] sm:$0xff]  }
 0x45f   :  { %v4092_v53 = vsub.f32 %v9392_v23, %v11888_v34  ;;  %11889 = vst [vmem:[#allocation59_spill] sm:$0xff] %v9460_v25  ;;  %11890 = vst [vmem:[#allocation60_spill] sm:$0xff] %v9462_v45  ;;  %v5715_v31 = vunpack.c.h.bf16 %v9447_v15  ;;  %v5682_v26 = vunpack.c.l.bf16 %v9452_v30  ;;  %v5683_v58 = vunpack.c.h.bf16 %v9452_v30 }
 0x460   :  { %11891 = vst [vmem:[#allocation61_spill] sm:$0xff] %v9469_v40  ;;  %11892 = vst [vmem:[#allocation62_spill] sm:$0xff] %v9474_v35  ;;  %v11894_v22 = vand.u32 4294901760, %v9417_v3  ;;  %v11895_v10 = vand.u32 4294901760, %v9419_v14  ;;  %v5718_v55 = vunpack.c.l.bf16 %v9474_v35  ;;  %v11900_v41 = vand.u32 4294901760, %v9440_v42 }
 0x461   :  { %11893 = vst [vmem:[#allocation63_spill] sm:$0xff] %v9483_v8  ;;  %v4093_v15 = vand.u32 4294901760, %v4092_v53  ;;  %v9503_v34 = vsub.f32 %v5715_v31, %v5715_v31  ;;  %v9505_v53 = vsub.f32 %v5682_v26, %v5682_v26  ;;  %v9507_v30 = vsub.f32 %v5683_v58, %v5683_v58 }
 0x462   :  { %v3990_v5 = vsub.f32 %v9417_v3, %v11894_v22  ;;  %v3996_v61 = vsub.f32 %v9419_v14, %v11895_v10  ;;  %v5719_v22 = vunpack.c.h.bf16 %v9474_v35  ;;  %v5686_v3 = vunpack.c.l.bf16 %v9483_v8 }
 0x463   :  { %v5687_v10 = vunpack.c.h.bf16 %v9483_v8  ;;  %v9501_v14 = vsub.f32 %v5714_v29, %v5714_v29  ;;  %11897 = vst [vmem:[#allocation65_spill] sm:$0xff] %v9503_v34  ;;  %11898 = vst [vmem:[#allocation66_spill] sm:$0xff] %v9505_v53  ;;  %v4098_v46 = vsub.f32 %v9440_v42, %v11900_v41  ;;  %v11901_v35 = vand.u32 4294901760, %v9442_v51  ;;  %v9536_v29 = vld [vmem:[%s11345_s5 + $0xf0] sm:$0xff]  }
 0x464   :  { %11899 = vst [vmem:[#allocation67_spill] sm:$0xff] %v9507_v30  ;;  %v3991_v40 = vand.u32 4294901760, %v3990_v5  ;;  %v3997_v23 = vand.u32 4294901760, %v3996_v61  ;;  %v11902_v31 = vand.u32 4294901760, %v9460_v25  ;;  %v11903_v58 = vand.u32 4294901760, %v9462_v45  ;;  %11908 = vst [vmem:[#allocation72_spill] sm:$0xff] %v9536_v29 }
 0x465   :  { %11896 = vst [vmem:[#allocation64_spill] sm:$0xff] %v9501_v14  ;;  %v4104_v11 = vsub.f32 %v9442_v51, %v11901_v35  ;;  %v9523_v61 = vsub.f32 %v5718_v55, %v5718_v55  ;;  %v9525_v8 = vpack.c.bf16 %v4093_v15, %v4087_v63  ;;  %v9527_v41 = vsub.f32 %v5719_v22, %v5719_v22  ;;  %v9553_v55 = vld [vmem:[%s11345_s5 + $0xb0] sm:$0xff]  }
 0x466   :  { %v4002_v26 = vsub.f32 %v9460_v25, %v11902_v31  ;;  %v4008_v5 = vsub.f32 %v9462_v45, %v11903_v58  ;;  %v9529_v42 = vsub.f32 %v5686_v3, %v5686_v3  ;;  %v9531_v35 = vsub.f32 %v5687_v10, %v5687_v10  ;;  %v11909_v58 = vld [vmem:[#allocation6_spill] sm:$0xff] }
 0x467   :  { %11904 = vst [vmem:[#allocation68_spill] sm:$0xff] %v9523_v61  ;;  %11905 = vst [vmem:[#allocation69_spill] sm:$0xff] %v9527_v41  ;;  %v11524_v25 = vand.u32 4294901760, %v9503_v34  ;;  %v11529_v63 = vand.u32 4294901760, %v9507_v30  ;;  %v9542_v15 = vpack.c.bf16 %v3997_v23, %v3991_v40  ;;  %v4099_v22 = vand.u32 4294901760, %v4098_v46 }
 0x468   :  { %11906 = vst [vmem:[#allocation70_spill] sm:$0xff] %v9529_v42  ;;  %11907 = vst [vmem:[#allocation71_spill] sm:$0xff] %v9531_v35  ;;  %v4105_v3 = vand.u32 4294901760, %v4104_v11  ;;  %v9546_v10 = vsel %vm92_vm0, %v2380_v50, %v11909_v58  ;;  %v4003_v45 = vand.u32 4294901760, %v4002_v26  ;;  %v4009_v51 = vand.u32 4294901760, %v4008_v5 }
 0x469   :  { %v5722_v31 = vunpack.c.l.bf16 %v9536_v29  ;;  %11910 = vst [vmem:[#allocation6_spill] sm:$0xff] %v9553_v55  ;;  %v11911_v50 = vand.u32 4294901760, %v9501_v14  ;;  %v4116_v5 = vsub.f32 %v9503_v34, %v11524_v25  ;;  %v11912_v58 = vand.u32 4294901760, %v9505_v53 }
 0x46a   :  { %v4020_v40 = vsub.f32 %v9507_v30, %v11529_v63  ;;  %v9572_v46 = vpack.c.bf16 %v4105_v3, %v4099_v22  ;;  %v5723_v11 = vunpack.c.h.bf16 %v9536_v29  ;;  %v11915_v22 = vand.u32 4294901760, %v9527_v41 }
 0x46b   :  { %v4110_v26 = vsub.f32 %v9501_v14, %v11911_v50  ;;  %v4014_v59 = vsub.f32 %v9505_v53, %v11912_v58  ;;  %v5690_v50 = vunpack.c.l.bf16 %v9553_v55  ;;  %v9578_v14 = vpack.c.bf16 %v4009_v51, %v4003_v45 }
 0x46c   :  { %v11913_v58 = vand.u32 4294901760, %v9523_v61  ;;  %v9585_v34 = vsub.f32 %v5722_v31, %v5722_v31  ;;  %v4128_v3 = vsub.f32 %v9527_v41, %v11915_v22  ;;  %v11916_v63 = vand.u32 4294901760, %v9529_v42 }
 0x46d   :  { %v11917_v51 = vand.u32 4294901760, %v9531_v35  ;;  %v5691_v25 = vunpack.c.h.bf16 %v9553_v55  ;;  %v4111_v54 = vand.u32 4294901760, %v4110_v26  ;;  %v4015_v31 = vand.u32 4294901760, %v4014_v59 }
 0x46e   :  { %v4122_v53 = vsub.f32 %v9523_v61, %v11913_v58  ;;  %11914 = vst [vmem:[#allocation73_spill] sm:$0xff] %v9585_v34  ;;  %v4026_v23 = vsub.f32 %v9529_v42, %v11916_v63  ;;  %v4117_v58 = vand.u32 4294901760, %v4116_v5  ;;  %v4021_v61 = vand.u32 4294901760, %v4020_v40 }
 0x46f   :  { %v4032_v45 = vsub.f32 %v9531_v35, %v11917_v51  ;;  %v9601_v41 = vsub.f32 %v5723_v11, %v5723_v11  ;;  %v9603_v63 = vsub.f32 %v5690_v50, %v5690_v50  ;;  %v11547_v26 = vand.u32 4294901760, %v9585_v34 }
 0x470   :  { %v4123_v35 = vand.u32 4294901760, %v4122_v53  ;;  %v4129_v5 = vand.u32 4294901760, %v4128_v3  ;;  %v4027_v59 = vand.u32 4294901760, %v4026_v23  ;;  %v9610_v55 = vsub.f32 %v5691_v25, %v5691_v25 }
 0x471   :  { %11918 = vst [vmem:[#allocation74_spill] sm:$0xff] %v9601_v41  ;;  %11919 = vst [vmem:[#allocation75_spill] sm:$0xff] %v9603_v63  ;;  %v4033_v40 = vand.u32 4294901760, %v4032_v45  ;;  %v9619_v50 = vpack.c.bf16 %v4117_v58, %v4111_v54  ;;  %v9621_v53 = vpack.c.bf16 %v4021_v61, %v4015_v31  ;;  %v11925_v61 = vpack.c.bf16 %v8922_v39, %v8920_v38 }
 0x472   :  { %11922 = vst [vmem:[#allocation78_spill] sm:$0xff] %v9610_v55  ;;  %v11926_v58 = vpack.c.bf16 %v8926_v17, %v8924_v57  ;;  %v9642_v31 = vpack.c.bf16 %v4129_v5, %v4123_v35 }
 0x489   :  { %v2408_v30 = vpop.permute.xlu0 %2407  ;;  %v2344_v29 = vpop.permute.xlu1 %2343 }
 0x48a   :  { %v2571_v37 = vsel %vm1200_vm10, %v9349_v20, %v2408_v30  ;;  %v2563_v22 = vsel %vm1200_vm10, %v9140_v62, %v2344_v29 }
 0x48b   :  { %v9605_v42 = vand.u32 4294901760, %v2571_v37  ;;  %v9607_v51 = vand.u32 4294901760, %v2563_v22 }
 0x48d   :  { %11920 = vst [vmem:[#allocation76_spill] sm:$0xff] %v9605_v42  ;;  %11921 = vst [vmem:[#allocation77_spill] sm:$0xff] %v9607_v51  ;;  %v9613_v20 = vsub.f32 %v2571_v37, %v9605_v42  ;;  %v9616_v30 = vsub.f32 %v2563_v22, %v9607_v51  ;;  %v2410_v29 = vpop.permute.xlu0 %2409  ;;  %3106 = vmatprep.mubr.f32.mxu0 %v9605_v42  ;;  %v2346_v11 = vpop.permute.xlu1 %2345 }
 0x48e   :  { %v2572_v23 = vsel %vm1200_vm10, %v9369_v0, %v2410_v29  ;;  %v2564_v25 = vsel %vm1200_vm10, %v9146_v48, %v2346_v11  ;;  %3108 = vmatmul.mubr.f32.vlgmr.msra.gmra.mrb[8].mxu0 %v9607_v51  ;;  %v9644_v29 = vpack.c.bf16 %v4033_v40, %v4027_v59  ;;  %v9649_v11 = vsub.f32 %v9585_v34, %v11547_v26  ;;  %v9668_v40 = vld [vmem:[%s11345_s5 + $0xf8] sm:$0xff]  }
 0x48f   :  { %v11548_v45 = vand.u32 4294901760, %v9616_v30  ;;  %v9631_v22 = vand.u32 4294901760, %v2572_v23  ;;  %v9633_v54 = vand.u32 4294901760, %v2564_v25  ;;  %6905 = vmatpush3.bf16.msra.mxu0 %v11925_v61  ;;  %v11549_v0 = vand.u32 4294901760, %v9613_v20  ;;  %11927 = vst [vmem:[#allocation81_spill] sm:$0xff] %v9668_v40  ;;  %v9688_v34 = vld [vmem:[%s11345_s5 + $0xb8] sm:$0xff]  }
 0x490   :  { %6907 = vmatprep.subr.bf16.mxu0 %v11926_v58  ;;  %v11928_v26 = vand.u32 4294901760, %v9601_v41  ;;  %11930 = vst [vmem:[#allocation82_spill] sm:$0xff] %v9688_v34 }
 0x491   :  { %11923 = vst [vmem:[#allocation79_spill] sm:$0xff] %v9631_v22  ;;  %11924 = vst [vmem:[#allocation80_spill] sm:$0xff] %v9633_v54  ;;  %v2803_v61 = vsub.f32 %v9616_v30, %v11548_v45  ;;  %v9656_v37 = vsub.f32 %v2572_v23, %v9631_v22  ;;  %v9659_v58 = vsub.f32 %v2564_v25, %v9633_v54  ;;  %v2412_v35 = vpop.permute.xlu0 %2411  ;;  %3113 = vmatprep.mubr.f32.mxu0 %v9631_v22  ;;  %v2348_v5 = vpop.permute.xlu1 %2347 }
 0x492   :  { %v2797_v59 = vsub.f32 %v9613_v20, %v11549_v0  ;;  %v2573_v23 = vsel %vm1200_vm10, %v9380_v33, %v2412_v35  ;;  %v2565_v25 = vsel %vm1200_vm10, %v9163_v24, %v2348_v5  ;;  %3115 = vmatmul.mubr.f32.gmra.mrb[10].mxu0 %v9633_v54  ;;  %v9678_v45 = vsub.f32 %v9601_v41, %v11928_v26 }
 0x493   :  { %v11929_v0 = vand.u32 4294901760, %v9603_v63  ;;  %v2804_v33 = vand.u32 4294901760, %v2803_v61  ;;  %v9690_v35 = vand.u32 4294901760, %v2573_v23  ;;  %v9692_v5 = vand.u32 4294901760, %v2565_v25 }
 0x494   :  { %v11933_v54 = vpack.c.bf16 %v8930_v43, %v8928_v6  ;;  %v2798_v26 = vand.u32 4294901760, %v2797_v59  ;;  %v11934_v41 = vpack.c.bf16 %v8978_v56, %v8976_v52  ;;  %v5726_v22 = vunpack.c.l.bf16 %v9668_v40 }
 0x495   :  { %v9683_v3 = vsub.f32 %v9603_v63, %v11929_v0  ;;  %11931 = vst [vmem:[#allocation83_spill] sm:$0xff] %v9690_v35  ;;  %11932 = vst [vmem:[#allocation84_spill] sm:$0xff] %v9692_v5  ;;  %v5727_v61 = vunpack.c.h.bf16 %v9668_v40  ;;  %v9705_v51 = vsub.f32 %v2573_v23, %v9690_v35  ;;  %v9708_v42 = vsub.f32 %v2565_v25, %v9692_v5  ;;  %v2350_v59 = vpop.permute.xlu1 %2349 }
 0x496   :  { %6909 = vmatpush3.bf16.msra.mxu0 %v11933_v54  ;;  %v2414_v54 = vpop.permute.xlu0 %2413  ;;  %2799 = vmatprep.mubr.f32.mxu1 %v2798_v26  ;;  %v5694_v63 = vunpack.c.l.bf16 %v9688_v34  ;;  %v2566_v23 = vsel %vm1200_vm10, %v9178_v4, %v2350_v59  ;;  %v11936_v25 = vand.u32 4294901760, %v9656_v37 }
 0x497   :  { %6911 = vmatprep.subr.bf16.mxu0 %v11934_v41  ;;  %3120 = vmatprep.mubr.f32.mxu0 %v9690_v35  ;;  %v11935_v41 = vand.u32 4294901760, %v9610_v55  ;;  %v2574_v40 = vsel %vm1200_vm10, %v9387_v49, %v2414_v54  ;;  %v5695_v35 = vunpack.c.h.bf16 %v9688_v34  ;;  %v11940_v49 = vand.u32 4294901760, %v9659_v58 }
 0x498   :  { %2805 = vmatmul.mubr.f32.vlgmr.msra.gmra.mrb[24].mxu1 %v2804_v33  ;;  %3122 = vmatmul.mubr.f32.gmra.mrb[12].mxu0 %v9692_v5  ;;  %v2812_v26 = vsub.f32 %v9656_v37, %v11936_v25  ;;  %v9726_v56 = vand.u32 4294901760, %v2574_v40  ;;  %v11941_v25 = vpack.c.bf16 %v8991_v7, %v8989_v18  ;;  %v11580_v5 = vand.u32 4294901760, %v9708_v42 }
 0x499   :  { %v9714_v0 = vsub.f32 %v9610_v55, %v11935_v41  ;;  %v9728_v41 = vand.u32 4294901760, %v2566_v23  ;;  %v11939_v55 = vpack.c.bf16 %v8982_v1, %v8980_v47  ;;  %7065 = vmatpush3.bf16.msra.mxu1 %v9430_v27  ;;  %v2818_v33 = vsub.f32 %v9659_v58, %v11940_v49 }
 0x49a   :  { %11937 = vst [vmem:[#allocation85_spill] sm:$0xff] %v9726_v56  ;;  %v2813_v59 = vand.u32 4294901760, %v2812_v26  ;;  %7067 = vmatprep.subr.bf16.mxu1 %v9464_v21  ;;  %v9743_v34 = vsub.f32 %v5726_v22, %v5726_v22  ;;  %v9748_v27 = vsub.f32 %v2574_v40, %v9726_v56  ;;  %v2416_v54 = vpop.permute.xlu0 %2415  ;;  %3127 = vmatprep.mubr.f32.mxu0 %v9726_v56  ;;  %v2352_v26 = vpop.permute.xlu1 %2351 }
 0x49b   :  { %11938 = vst [vmem:[#allocation86_spill] sm:$0xff] %v9728_v41  ;;  %6913 = vmatpush3.bf16.msra.mxu0 %v11939_v55  ;;  %v9745_v55 = vsub.f32 %v5727_v61, %v5727_v61  ;;  %v9751_v49 = vsub.f32 %v2566_v23, %v9728_v41  ;;  %v2819_v7 = vand.u32 4294901760, %v2818_v33  ;;  %v2575_v22 = vsel %vm1200_vm10, %v9400_v36, %v2416_v54  ;;  %v11945_v61 = vld [vmem:[#allocation34_spill] sm:$0xff] }
 0x49c   :  { %6915 = vmatprep.subr.bf16.mxu0 %v11941_v25  ;;  %11942 = vst [vmem:[#allocation87_spill] sm:$0xff] %v9743_v34  ;;  %v11944_v25 = vand.u32 4294901760, %v9705_v51  ;;  %2814 = vmatprep.mubr.f32.mxu1 %v2813_v59  ;;  %v2567_v40 = vsel %vm1200_vm10, %v11945_v61, %v2352_v26  ;;  %v2833_v23 = vsub.f32 %v9708_v42, %v11580_v5  ;;  %v9765_v56 = vand.u32 4294901760, %v2575_v22  ;;  %v11949_v59 = vld [vmem:[#allocation11_spill] sm:$0xff] }
 0x49d   :  { %11943 = vst [vmem:[#allocation88_spill] sm:$0xff] %v9745_v55  ;;  %3129 = vmatmul.mubr.f32.gmra.mrb[14].mxu0 %v9728_v41  ;;  %v9767_v33 = vand.u32 4294901760, %v2567_v40  ;;  %2820 = vmatmul.mubr.f32.gmra.mrb[26].mxu1 %v2819_v7  ;;  %v11586_v54 = vand.u32 4294901760, %v9748_v27  ;;  %v11950_v26 = vpack.c.bf16 %v9044_v13, %v11949_v59  ;;  %v9778_v18 = vsub.f32 %v5694_v63, %v5694_v63  ;;  %v11954_v5 = vld [vmem:[#allocation35_spill] sm:$0xff]  ;;  %v11958_v63 = vld [vmem:[#allocation13_spill] sm:$0xff] }
 0x49e   :  { %v2827_v21 = vsub.f32 %v9705_v51, %v11944_v25  ;;  %11946 = vst [vmem:[#allocation34_spill] sm:$0xff] %v9765_v56  ;;  %v11948_v25 = vpack.c.bf16 %v8997_v44, %v8995_v19  ;;  %7069 = vmatpush3.bf16.msra.mxu1 %v9466_v16  ;;  %v2834_v41 = vand.u32 4294901760, %v2833_v23  ;;  %v9780_v1 = vsub.f32 %v5695_v35, %v5695_v35  ;;  %v2354_v16 = vpop.permute.xlu1 %2353  ;;  %v11964_v44 = vld [vmem:[#allocation61_spill] sm:$0xff] }
 0x49f   :  { %11947 = vst [vmem:[#allocation89_spill] sm:$0xff] %v9767_v33  ;;  %11951 = vst [vmem:[#allocation90_spill] sm:$0xff] %v9778_v18  ;;  %v9783_v7 = vsub.f32 %v2575_v22, %v9765_v56  ;;  %3133 = vmatprep.mubr.f32.mxu0 %v9765_v56  ;;  %v2842_v23 = vsub.f32 %v9748_v27, %v11586_v54  ;;  %v2568_v22 = vsel %vm1200_vm10, %v11954_v5, %v2354_v16  ;;  %v11965_v56 = vld [vmem:[#allocation38_spill] sm:$0xff] }
 0x4a0   :  { %6917 = vmatpush3.bf16.msra.mxu0 %v11948_v25  ;;  %v2828_v36 = vand.u32 4294901760, %v2827_v21  ;;  %11952 = vst [vmem:[#allocation91_spill] sm:$0xff] %v9780_v1  ;;  %v9786_v21 = vsub.f32 %v2567_v40, %v9767_v33  ;;  %v2418_v25 = vpop.permute.xlu0 %2417  ;;  %7071 = vmatprep.subr.bf16.mxu1 %v9525_v8  ;;  %v11955_v40 = vand.u32 4294901760, %v9751_v49  ;;  %v9805_v54 = vand.u32 4294901760, %v2568_v22  ;;  %v11961_v8 = vld [vmem:[#allocation14_spill] sm:$0xff] }
 0x4a1   :  { %6919 = vmatprep.subr.bf16.mxu0 %v11950_v26  ;;  %v11953_v26 = vld [vmem:[#allocation58_spill] sm:$0xff]  ;;  %3135 = vmatmul.mubr.f32.gmra.mrb[16].mxu0 %v9767_v33  ;;  %v2843_v16 = vand.u32 4294901760, %v2842_v23  ;;  %v11594_v33 = vand.u32 4294901760, %v9783_v7  ;;  %v11962_v59 = vpack.c.bf16 %v9057_v2, %v11961_v8 }
 0x4a2   :  { %2829 = vmatprep.mubr.f32.mxu1 %v2828_v36  ;;  %v2576_v35 = vsel %vm1200_vm10, %v11953_v26, %v2418_v25  ;;  %v2848_v36 = vsub.f32 %v9751_v49, %v11955_v40  ;;  %11957 = vst [vmem:[#allocation35_spill] sm:$0xff] %v9805_v54  ;;  %v11959_v25 = vld [vmem:[#allocation12_spill] sm:$0xff]  ;;  %7073 = vmatpush3.bf16.msra.mxu1 %v9542_v15  ;;  %v2356_v15 = vpop.permute.xlu1 %2355 }
 0x4a3   :  { %v9803_v13 = vand.u32 4294901760, %v2576_v35  ;;  %2835 = vmatmul.mubr.f32.gmra.mrb[28].mxu1 %v2834_v41  ;;  %v11960_v26 = vpack.c.bf16 %v11958_v63, %v11959_v25  ;;  %v9822_v23 = vsub.f32 %v2568_v22, %v9805_v54  ;;  %7075 = vmatprep.subr.bf16.mxu1 %v9572_v46  ;;  %v11966_v22 = vand.u32 4294901760, %v9786_v21 }
 0x4a4   :  { %v2849_v40 = vand.u32 4294901760, %v2848_v36  ;;  %2844 = vmatprep.mubr.f32.mxu1 %v2843_v16  ;;  %v11971_v46 = vpack.c.bf16 %v9101_v28, %v9098_v12  ;;  %v11984_v28 = vand.u32 4294901760, %v9778_v18  ;;  %v11985_v12 = vand.u32 4294901760, %v9780_v1 }
 0x4a5   :  { %11956 = vst [vmem:[#allocation58_spill] sm:$0xff] %v9803_v13  ;;  %6921 = vmatpush3.bf16.msra.mxu0 %v11960_v26  ;;  %v9819_v19 = vsub.f32 %v2576_v35, %v9803_v13  ;;  %11963 = vst [vmem:[#allocation13_spill] sm:$0xff] %v9822_v23  ;;  %v2420_v26 = vpop.permute.xlu0 %2419  ;;  %3140 = vmatprep.mubr.f32.mxu0 %v9803_v13  ;;  %v2569_v35 = vsel %vm1200_vm10, %v11965_v56, %v2356_v15  ;;  %v4039_v13 = vand.u32 4294901760, %v9683_v3 }
 0x4a6   :  { %6923 = vmatprep.subr.bf16.mxu0 %v11962_v59  ;;  %v2856_v59 = vsub.f32 %v9783_v7, %v11594_v33  ;;  %v2577_v41 = vsel %vm1200_vm10, %v11964_v44, %v2420_v26  ;;  %3142 = vmatmul.mubr.f32.gmra.mrb[18].mxu0 %v9805_v54  ;;  %v2862_v16 = vsub.f32 %v9786_v21, %v11966_v22  ;;  %v9841_v33 = vand.u32 4294901760, %v2569_v35  ;;  %v11969_v44 = vld [vmem:[#allocation24_spill] sm:$0xff] }
 0x4a7   :  { %v9839_v2 = vand.u32 4294901760, %v2577_v41  ;;  %2850 = vmatmul.mubr.f32.gmra.mrb[30].mxu1 %v2849_v40  ;;  %v11970_v26 = vpack.c.bf16 %v9074_v60, %v11969_v44  ;;  %v11604_v36 = vand.u32 4294901760, %v9819_v19  ;;  %v11972_v54 = vand.u32 4294901760, %v9743_v34 }
 0x4a8   :  { %11968 = vst [vmem:[#allocation14_spill] sm:$0xff] %v9841_v33  ;;  %v2857_v15 = vand.u32 4294901760, %v2856_v59  ;;  %7077 = vmatpush3.bf16.msra.mxu1 %v9578_v14  ;;  %v2863_v22 = vand.u32 4294901760, %v2862_v16  ;;  %v11973_v60 = vand.u32 4294901760, %v9745_v55  ;;  %v9866_v14 = vsub.f32 %v2569_v35, %v9841_v33  ;;  %v2358_v16 = vpop.permute.xlu1 %2357 }
 0x4a9   :  { %11967 = vst [vmem:[#allocation12_spill] sm:$0xff] %v9839_v2  ;;  %6925 = vmatpush3.bf16.msra.mxu0 %v11970_v26  ;;  %v9855_v40 = vsub.f32 %v9743_v34, %v11972_v54  ;;  %v9863_v26 = vsub.f32 %v2577_v41, %v9839_v2  ;;  %3147 = vmatprep.mubr.f32.mxu0 %v9839_v2  ;;  %v11977_v35 = vand.u32 4294901760, %v9822_v23  ;;  %v4045_v34 = vand.u32 4294901760, %v9714_v0 }
 0x4aa   :  { %6927 = vmatprep.subr.bf16.mxu0 %v11971_v46  ;;  %v9860_v59 = vsub.f32 %v9745_v55, %v11973_v60  ;;  %11975 = vst [vmem:[#allocation38_spill] sm:$0xff] %v9866_v14  ;;  %v2422_v46 = vpop.permute.xlu0 %2421  ;;  %2858 = vmatprep.mubr.f32.mxu1 %v2857_v15  ;;  %v2871_v54 = vsub.f32 %v9819_v19, %v11604_v36  ;;  %v11976_v55 = vld [vmem:[#allocation39_spill] sm:$0xff]  ;;  %v11617_v0 = vand.u32 4294901760, %v9866_v14 }
 0x4ab   :  { %11974 = vst [vmem:[#allocation61_spill] sm:$0xff] %v9863_v26  ;;  %v2578_v60 = vsel %vm1200_vm10, %v9546_v10, %v2422_v46  ;;  %v2570_v41 = vsel %vm1200_vm10, %v11976_v55, %v2358_v16  ;;  %3149 = vmatmul.mubr.f32.gmra.mrb[20].mxu0 %v9841_v33  ;;  %7079 = vmatprep.subr.bf16.mxu1 %v9619_v50  ;;  %v11981_v50 = vld [vmem:[#allocation31_spill] sm:$0xff]  ;;  %v11982_v16 = vld [vmem:[#allocation30_spill] sm:$0xff] }
 0x4ac   :  { %v2877_v15 = vsub.f32 %v9822_v23, %v11977_v35  ;;  %v9883_v2 = vand.u32 4294901760, %v2578_v60  ;;  %v9885_v36 = vand.u32 4294901760, %v2570_v41  ;;  %2864 = vmatmul.mubr.f32.gmra.mrb[32].mxu1 %v2863_v22  ;;  %v11980_v10 = vpack.c.bf16 %v9105_v32, %v9103_v9 }
 0x4ad   :  { %v2872_v3 = vand.u32 4294901760, %v2871_v54  ;;  %7081 = vmatpush3.bf16.msra.mxu1 %v9621_v53  ;;  %v11983_v33 = vpack.c.bf16 %v11981_v50, %v11982_v16  ;;  %v4050_v22 = vsub.f32 %v9778_v18, %v11984_v28  ;;  %v4153_v18 = vand.u32 4294901760, %v9860_v59 }
 0x4ae   :  { %11978 = vst [vmem:[#allocation24_spill] sm:$0xff] %v9883_v2  ;;  %11979 = vst [vmem:[#allocation39_spill] sm:$0xff] %v9885_v36  ;;  %6929 = vmatpush3.bf16.msra.mxu0 %v11980_v10  ;;  %v2878_v35 = vand.u32 4294901760, %v2877_v15  ;;  %v4056_v10 = vsub.f32 %v9780_v1, %v11985_v12  ;;  %v9903_v54 = vsub.f32 %v2578_v60, %v9883_v2  ;;  %v2540_v46 = vpop.permute.xlu0 %2539  ;;  %3154 = vmatprep.mubr.f32.mxu0 %v9883_v2 }
 0x4af   :  { %6931 = vmatprep.subr.bf16.mxu0 %v11983_v33  ;;  %v9906_v53 = vsub.f32 %v2570_v41, %v9885_v36  ;;  %2873 = vmatprep.mubr.f32.mxu1 %v2872_v3  ;;  %v2472_v33 = vpop.permute.xlu1 %2471  ;;  %v11987_v15 = vand.u32 4294901760, %v9863_v26  ;;  %v2892_v12 = vsub.f32 %v9866_v14, %v11617_v0  ;;  %v11988_v60 = vand.u32 4294901760, %v9649_v11 }
 0x4b0   :  { %11986 = vst [vmem:[#allocation92_spill] sm:$0xff] %v9903_v54  ;;  %3156 = vmatmul.mubr.f32.gmra.mrb[22].mxu0 %v9885_v36  ;;  %7083 = vmatprep.subr.bf16.mxu1 %v9642_v31  ;;  %v11989_v41 = vand.u32 4294901760, %v9678_v45  ;;  %v4147_v1 = vand.u32 4294901760, %v9855_v40  ;;  %v2497_v2 = vrot.slane %v9146_v48, 6  ;;  %v11991_v36 = vld [vmem:[#allocation32_spill] sm:$0xff]  ;;  %v7088_v16 = vpack.c.bf16 %v4045_v34, %v4039_v13 }
 0x4b1   :  { %v2886_v28 = vsub.f32 %v9863_v26, %v11987_v15  ;;  %2879 = vmatmul.mubr.f32.gmra.mrb[34].mxu1 %v2878_v35  ;;  %v11990_v15 = vld [vmem:[#allocation33_spill] sm:$0xff]  ;;  %v11619_v0 = vand.u32 4294901760, %v9903_v54  ;;  %3258 = vmatprep.mubr.f32.mxu0 %v9613_v20  ;;  %v2893_v45 = vand.u32 4294901760, %v2892_v12  ;;  %v11618_v11 = vand.u32 4294901760, %v9906_v53 }
 0x4b2   :  { %v7086_v3 = vpack.c.bf16 %v11989_v41, %v11988_v60  ;;  %v11992_v50 = vpack.c.bf16 %v11990_v15, %v11991_v36  ;;  %7085 = vmatpush3.bf16.msra.mxu1 %v9644_v29  ;;  %v4051_v40 = vand.u32 4294901760, %v4050_v22  ;;  %v4057_v59 = vand.u32 4294901760, %v4056_v10  ;;  %v2542_v41 = vpop.permute.xlu0 %2541  ;;  %v9936_v13 = vld [vmem:[%s11345_s5 + $0x40] sm:$0xff]  }
 0x4b3   :  { %v2887_v31 = vand.u32 4294901760, %v2886_v28  ;;  %v2496_v60 = vrot.slane %v9140_v62, 6  ;;  %v2432_v35 = vrot.slane %v9146_v48, 4  ;;  %11993 = vst [vmem:[#allocation93_spill] sm:$0xff] %v9936_v13  ;;  %v2474_v34 = vpop.permute.xlu1 %2473  ;;  %v2901_v29 = vsub.f32 %v9903_v54, %v11619_v0  ;;  %v9952_v12 = vld [vmem:[%s11345_s5] sm:$0xff]   ;;  %v10034_v0 = vld [vmem:[%s11345_s5 + $0x58] sm:$0xff]  }
 0x4b4   :  { %6933 = vmatpush3.bf16.msra.mxu0 %v11992_v50  ;;  %v2499_v50 = vrot.slane %v9163_v24, 6  ;;  %7087 = vmatprep.subr.bf16.mxu1 %v7086_v3  ;;  %v2907_v48 = vsub.f32 %v9906_v53, %v11618_v11  ;;  %v7090_v22 = vpack.c.bf16 %v4153_v18, %v4147_v1  ;;  %v2431_v28 = vrot.slane %v9140_v62, 4  ;;  %11994 = vst [vmem:[#allocation94_spill] sm:$0xff] %v9952_v12  ;;  %v9964_v11 = vld [vmem:[%s11345_s5 + $0x48] sm:$0xff]  }
 0x4b5   :  { %2888 = vmatprep.mubr.f32.mxu1 %v2887_v31  ;;  %6935 = vmatprep.subr.bf16.mxu0 %v9936_v13  ;;  %v2498_v10 = vsel %vm2495_vm13, %v2496_v60, %v2497_v2  ;;  %v2902_v31 = vand.u32 4294901760, %v2901_v29  ;;  %v7092_v18 = vpack.c.bf16 %v4057_v59, %v4051_v40  ;;  %v2434_v62 = vrot.slane %v9163_v24, 4  ;;  %11995 = vst [vmem:[#allocation95_spill] sm:$0xff] %v9964_v11 }
 0x4b6   :  { %2894 = vmatmul.mubr.f32.gmra.mrb[36].mxu1 %v2893_v45  ;;  %v9956_v3 = vsel %vm1200_vm10, %v2498_v10, %v2540_v46  ;;  %v2908_v1 = vand.u32 4294901760, %v2907_v48  ;;  %v2433_v60 = vsel %vm1123_vm8, %v2431_v28, %v2432_v35  ;;  %v2544_v45 = vpop.permute.xlu0 %2543  ;;  %v2501_v40 = vrot.slane %v9178_v4, 6  ;;  %v9982_v48 = vld [vmem:[%s11345_s5 + $0x8] sm:$0xff]   ;;  %v9995_v10 = vld [vmem:[%s11345_s5 + $0x50] sm:$0xff]  }
 0x4b7   :  { %3261 = vmatmul.mubr.f32.vlgmr.msra.gmra.mrb[24].mxu0 %v9616_v30  ;;  %7089 = vmatpush3.bf16.msra.mxu1 %v7088_v16  ;;  %v2476_v46 = vpop.permute.xlu1 %2475  ;;  %v9968_v29 = vsel %vm1200_vm10, %v2433_v60, %v2472_v33  ;;  %v2500_v16 = vsel %vm2495_vm13, %v2497_v2, %v2499_v50  ;;  %v9974_v24 = vand.u32 4294901760, %v9956_v3  ;;  %11996 = vst [vmem:[#allocation96_spill] sm:$0xff] %v9982_v48  ;;  %11997 = vst [vmem:[#allocation97_spill] sm:$0xff] %v9995_v10 }
 0x4b8   :  { %6937 = vmatpush3.bf16.msra.mxu0 %v9952_v12  ;;  %3267 = vmatprep.mubr.f32.mxu0 %v9656_v37  ;;  %v9977_v59 = vsel %vm1200_vm10, %v2500_v16, %v2542_v41  ;;  %v9987_v2 = vand.u32 4294901760, %v9968_v29  ;;  %v2435_v33 = vsel %vm1123_vm8, %v2432_v35, %v2434_v62  ;;  %v2502_v35 = vsel %vm2495_vm13, %v2499_v50, %v2501_v40 }
 0x4b9   :  { %2903 = vmatprep.mubr.f32.mxu1 %v2902_v31  ;;  %6939 = vmatprep.subr.bf16.mxu0 %v9964_v11  ;;  %v9999_v31 = vand.u32 4294901760, %v9977_v59  ;;  %v10014_v60 = vsel %vm1200_vm10, %v2502_v35, %v2544_v45  ;;  %v2438_v45 = vrot.slane %v11945_v61, 4 }
 0x4ba   :  { %7091 = vmatprep.subr.bf16.mxu1 %v7090_v22  ;;  %2909 = vmatmul.mubr.f32.gmra.mrb[38].mxu1 %v2908_v1  ;;  %v2436_v22 = vrot.slane %v9178_v4, 4  ;;  %v2546_v41 = vpop.permute.xlu0 %2545  ;;  %v10002_v1 = vsel %vm1200_vm10, %v2435_v33, %v2474_v34  ;;  %v2503_v4 = vrot.slane %v11945_v61, 6  ;;  %v10019_v34 = vld [vmem:[%s11345_s5 + $0x10] sm:$0xff]   ;;  %v2505_v61 = vrot.slane %v11954_v5, 6 }
 0x4bb   :  { %3270 = vmatmul.mubr.f32.gmra.mrb[26].mxu0 %v9659_v58  ;;  %7093 = vmatpush3.bf16.msra.mxu1 %v7092_v18  ;;  %v2478_v28 = vpop.permute.xlu1 %2477  ;;  %v10010_v18 = vld [vmem:[%s11345_s5 + $0xc0] sm:$0xff]   ;;  %11998 = vst [vmem:[#allocation98_spill] sm:$0xff] %v10019_v34  ;;  %v10026_v50 = vand.u32 4294901760, %v10002_v1  ;;  %v11999_v33 = vld [vmem:[#allocation7_spill] sm:$0xff] }
 0x4bc   :  { %6941 = vmatpush3.bf16.msra.mxu0 %v9982_v48  ;;  %3276 = vmatprep.mubr.f32.mxu0 %v9705_v51  ;;  %v2437_v16 = vsel %vm1123_vm8, %v2434_v62, %v2436_v22  ;;  %12000 = vst [vmem:[#allocation7_spill] sm:$0xff] %v10034_v0  ;;  %v2504_v62 = vsel %vm2495_vm13, %v2501_v40, %v2503_v4 }
 0x4bd   :  { %4156 = vmatprep.mubr.f32.mxu1 %v9974_v24  ;;  %6943 = vmatprep.subr.bf16.mxu0 %v9995_v10  ;;  %v10038_v10 = vand.u32 4294901760, %v10014_v60  ;;  %v10041_v48 = vsel %vm1200_vm10, %v2437_v16, %v2476_v46  ;;  %v10048_v11 = vsel %vm1200_vm10, %v2504_v62, %v2546_v41  ;;  %v2439_v40 = vsel %vm1123_vm8, %v2436_v22, %v2438_v45  ;;  %v12005_v16 = vld [vmem:[#allocation8_spill] sm:$0xff] }
 0x4be   :  { %7127 = vmatprep.subr.bf16.mxu1 %v10010_v18  ;;  %4158 = vmatmul.mubr.f32.vlgmr.msra.gmra.mrb[40].mxu1 %v9987_v2  ;;  %v2548_v35 = vpop.permute.xlu0 %2547  ;;  %v10060_v46 = vand.u32 4294901760, %v10041_v48  ;;  %v2440_v41 = vrot.slane %v11954_v5, 4  ;;  %v10075_v12 = vsel %vm1200_vm10, %v2439_v40, %v2478_v28  ;;  %v2506_v22 = vsel %vm2495_vm13, %v2503_v4, %v2505_v61  ;;  %v12011_v40 = vld [vmem:[#allocation47_spill] sm:$0xff] }
 0x4bf   :  { %3279 = vmatmul.mubr.f32.gmra.mrb[28].mxu0 %v9708_v42  ;;  %4163 = vmatprep.mubr.f32.mxu1 %v9999_v31  ;;  %12001 = vst [vmem:[#allocation99_spill] sm:$0xff] %v10038_v10  ;;  %v2507_v5 = vrot.slane %v11965_v56, 6  ;;  %v10082_v13 = vsel %vm1200_vm10, %v2506_v22, %v2548_v35  ;;  %v10094_v28 = vand.u32 4294901760, %v10075_v12  ;;  %v2442_v35 = vrot.slane %v11965_v56, 4  ;;  %v10102_v22 = vld [vmem:[%s11345_s5 + $0x68] sm:$0xff]  }
 0x4c0   :  { %6945 = vmatpush3.bf16.msra.mxu0 %v10019_v34  ;;  %3285 = vmatprep.mubr.f32.mxu0 %v9748_v27  ;;  %v2480_v34 = vpop.permute.xlu1 %2479  ;;  %12004 = vst [vmem:[#allocation100_spill] sm:$0xff] %v10060_v46  ;;  %v2441_v4 = vsel %vm1123_vm8, %v2438_v45, %v2440_v41  ;;  %12012 = vst [vmem:[#allocation47_spill] sm:$0xff] %v10102_v22  ;;  %v2509_v45 = vrot.slane %v11976_v55, 6 }
 0x4c1   :  { %7129 = vmatpush3.bf16.msra.mxu1 %v11999_v33  ;;  %6947 = vmatprep.subr.bf16.mxu0 %v10034_v0  ;;  %v12002_v33 = vld [vmem:[#allocation5_spill] sm:$0xff]  ;;  %v10053_v0 = vld [vmem:[%s11345_s5 + $0x18] sm:$0xff]   ;;  %12010 = vst [vmem:[#allocation102_spill] sm:$0xff] %v10094_v28  ;;  %v2508_v36 = vsel %vm2495_vm13, %v2505_v61, %v2507_v5  ;;  %v2443_v61 = vsel %vm1123_vm8, %v2440_v41, %v2442_v35 }
 0x4c2   :  { %7131 = vmatprep.subr.bf16.mxu1 %v12002_v33  ;;  %12003 = vst [vmem:[#allocation5_spill] sm:$0xff] %v10053_v0  ;;  %4165 = vmatmul.mubr.f32.gmra.mrb[42].mxu1 %v10026_v50  ;;  %v2550_v62 = vpop.permute.xlu0 %2549  ;;  %v10068_v33 = vld [vmem:[%s11345_s5 + $0x60] sm:$0xff]   ;;  %v2510_v41 = vsel %vm2495_vm13, %v2507_v5, %v2509_v45 }
 0x4c3   :  { %3288 = vmatmul.mubr.f32.gmra.mrb[30].mxu0 %v9751_v49  ;;  %4170 = vmatprep.mubr.f32.mxu1 %v10038_v10  ;;  %12006 = vst [vmem:[#allocation8_spill] sm:$0xff] %v10068_v33  ;;  %v10116_v32 = vsel %vm1200_vm10, %v2508_v36, %v2550_v62  ;;  %v2444_v36 = vrot.slane %v11976_v55, 4 }
 0x4c4   :  { %6949 = vmatpush3.bf16.msra.mxu0 %v10053_v0  ;;  %3293 = vmatprep.mubr.f32.mxu0 %v9783_v7  ;;  %v10072_v0 = vand.u32 4294901760, %v10048_v11  ;;  %v2482_v15 = vpop.permute.xlu1 %2481 }
 0x4c5   :  { %7133 = vmatpush3.bf16.msra.mxu1 %v12005_v16  ;;  %6951 = vmatprep.subr.bf16.mxu0 %v10068_v33  ;;  %v12008_v16 = vld [vmem:[#allocation43_spill] sm:$0xff]  ;;  %v10087_v33 = vld [vmem:[%s11345_s5 + $0x20] sm:$0xff]   ;;  %v10143_v9 = vsel %vm1200_vm10, %v2443_v61, %v2482_v15 }
 0x4c6   :  { %12007 = vst [vmem:[#allocation101_spill] sm:$0xff] %v10072_v0  ;;  %7135 = vmatprep.subr.bf16.mxu1 %v12008_v16  ;;  %12009 = vst [vmem:[#allocation43_spill] sm:$0xff] %v10087_v33  ;;  %4172 = vmatmul.mubr.f32.gmra.mrb[44].mxu1 %v10060_v46  ;;  %v10106_v16 = vand.u32 4294901760, %v10082_v13  ;;  %v2552_v56 = vpop.permute.xlu0 %2551  ;;  %v10162_v5 = vand.u32 4294901760, %v10143_v9  ;;  %v12026_v61 = vld [vmem:[#allocation57_spill] sm:$0xff] }
 0x4c7   :  { %3296 = vmatmul.mubr.f32.gmra.mrb[32].mxu0 %v9786_v21  ;;  %4177 = vmatprep.mubr.f32.mxu1 %v10072_v0  ;;  %12021 = vst [vmem:[#allocation107_spill] sm:$0xff] %v10143_v9 }
 0x4c8   :  { %6953 = vmatpush3.bf16.msra.mxu0 %v10087_v33  ;;  %3302 = vmatprep.mubr.f32.mxu0 %v9819_v19  ;;  %12013 = vst [vmem:[#allocation103_spill] sm:$0xff] %v10106_v16  ;;  %v10109_v33 = vsel %vm1200_vm10, %v2441_v4, %v2480_v34  ;;  %v2484_v62 = vpop.permute.xlu1 %2483  ;;  %v12018_v4 = vld [vmem:[#allocation51_spill] sm:$0xff]  ;;  %12025 = vst [vmem:[#allocation108_spill] sm:$0xff] %v10162_v5 }
 0x4c9   :  { %7137 = vmatpush3.bf16.msra.mxu1 %v12011_v40  ;;  %6955 = vmatprep.subr.bf16.mxu0 %v10102_v22  ;;  %v12014_v40 = vld [vmem:[#allocation50_spill] sm:$0xff]  ;;  %v10128_v34 = vand.u32 4294901760, %v10109_v33 }
 0x4ca   :  { %7139 = vmatprep.subr.bf16.mxu1 %v12014_v40  ;;  %12015 = vst [vmem:[#allocation50_spill] sm:$0xff] %v10116_v32  ;;  %v10121_v22 = vld [vmem:[%s11345_s5 + $0x28] sm:$0xff]   ;;  %4179 = vmatmul.mubr.f32.gmra.mrb[46].mxu1 %v10094_v28  ;;  %v10136_v40 = vld [vmem:[%s11345_s5 + $0x70] sm:$0xff]   ;;  %v2554_v15 = vpop.permute.xlu0 %2553 }
 0x4cb   :  { %3305 = vmatmul.mubr.f32.gmra.mrb[34].mxu0 %v9822_v23  ;;  %12016 = vst [vmem:[#allocation104_spill] sm:$0xff] %v10121_v22  ;;  %4183 = vmatprep.mubr.f32.mxu1 %v10106_v16  ;;  %12017 = vst [vmem:[#allocation105_spill] sm:$0xff] %v10128_v34  ;;  %v10150_v23 = vsel %vm1200_vm10, %v2510_v41, %v2552_v56  ;;  %v2445_v56 = vsel %vm1123_vm8, %v2442_v35, %v2444_v36  ;;  %v10169_v41 = vld [vmem:[%s11345_s5 + $0x78] sm:$0xff]  }
 0x4cc   :  { %6957 = vmatpush3.bf16.msra.mxu0 %v10121_v22  ;;  %3311 = vmatprep.mubr.f32.mxu0 %v9863_v26  ;;  %12019 = vst [vmem:[#allocation51_spill] sm:$0xff] %v10136_v40  ;;  %v10140_v22 = vand.u32 4294901760, %v10116_v32  ;;  %v12022_v26 = vmov 0.0   ;;  %12027 = vst [vmem:[#allocation57_spill] sm:$0xff] %v10169_v41  ;;  %v10177_v32 = vand.u32 4294901760, %v10150_v23  ;;  %v10180_v9 = vsel %vm1200_vm10, %v2445_v56, %v2484_v62 }
 0x4cd   :  { %7141 = vmatpush3.bf16.msra.mxu1 %v12018_v4  ;;  %6959 = vmatprep.subr.bf16.mxu0 %v10136_v40  ;;  %v2511_v55 = vrot.slane %v12022_v26, 6  ;;  %v12023_v4 = vld [vmem:[#allocation56_spill] sm:$0xff]  ;;  %v10155_v40 = vld [vmem:[%s11345_s5 + $0x30] sm:$0xff]  }
 0x4ce   :  { %12020 = vst [vmem:[#allocation106_spill] sm:$0xff] %v10140_v22  ;;  %7143 = vmatprep.subr.bf16.mxu1 %v12023_v4  ;;  %12024 = vst [vmem:[#allocation56_spill] sm:$0xff] %v10155_v40  ;;  %4185 = vmatmul.mubr.f32.gmra.mrb[48].mxu1 %v10128_v34  ;;  %v12028_v4 = vld [vmem:[#allocation17_spill] sm:$0xff] }
 0x4cf   :  { %3314 = vmatmul.mubr.f32.gmra.mrb[36].mxu0 %v9866_v14  ;;  %4190 = vmatprep.mubr.f32.mxu1 %v10140_v22  ;;  %v12029_v26 = vand.u32 4294901760, %v12028_v4  ;;  %12032 = vst [vmem:[#allocation17_spill] sm:$0xff] %v10177_v32  ;;  %v2512_v35 = vsel %vm2495_vm13, %v2509_v45, %v2511_v55  ;;  %v12035_v45 = vand.u32 4294901760, %v8922_v39  ;;  %v10203_v55 = vand.u32 4294901760, %v10180_v9  ;;  %v12039_v4 = vld [vmem:[#allocation63_spill] sm:$0xff] }
 0x4d0   :  { %6961 = vmatpush3.bf16.msra.mxu0 %v10155_v40  ;;  %3320 = vmatprep.mubr.f32.mxu0 %v9903_v54  ;;  %v12030_v40 = vld [vmem:[#allocation18_spill] sm:$0xff]  ;;  %v10186_v22 = vsel %vm1200_vm10, %v2512_v35, %v2554_v15  ;;  %v12038_v15 = vld [vmem:[#allocation15_spill] sm:$0xff]  ;;  %v12040_v35 = vand.u32 4294901760, %v8924_v57  ;;  %v12045_v57 = vand.u32 4294901760, %v8928_v6  ;;  %v10243_v6 = vsub.f32 %v9968_v29, %v9987_v2 }
 0x4d1   :  { %7145 = vmatpush3.bf16.msra.mxu1 %v12026_v61  ;;  %6963 = vmatprep.subr.bf16.mxu0 %v10169_v41  ;;  %v12031_v54 = vand.u32 4294901760, %v12030_v40  ;;  %v12033_v61 = vld [vmem:[#allocation62_spill] sm:$0xff]  ;;  %v2486_v41 = vpop.permute.xlu1 %2485  ;;  %v12036_v40 = vand.u32 4294901760, %v9613_v20  ;;  %12037 = vst [vmem:[#allocation18_spill] sm:$0xff] %v10203_v55  ;;  %v2446_v56 = vsel %vm1123_vm8, %v2444_v36, %v12038_v15  ;;  %v10214_v20 = vsub.f32 %v9956_v3, %v9974_v24 }
 0x4d2   :  { %7147 = vmatprep.subr.bf16.mxu1 %v12033_v61  ;;  %4192 = vmatmul.mubr.f32.gmra.mrb[50].mxu1 %v10162_v5  ;;  %v10217_v61 = vand.u32 4294901760, %v10186_v22  ;;  %v12043_v36 = vand.u32 4294901760, %v9616_v30  ;;  %v12047_v3 = vand.u32 4294901760, %v9656_v37  ;;  %v12049_v30 = vld [vmem:[#allocation6_spill] sm:$0xff]  ;;  %v12054_v37 = vld [vmem:[#allocation81_spill] sm:$0xff] }
 0x4d3   :  { %v6966_v14 = vpack.c.bf16 %v12031_v54, %v12029_v26  ;;  %3323 = vmatmul.mubr.f32.gmra.mrb[38].mxu0 %v9906_v53  ;;  %v10191_v26 = vld [vmem:[%s11345_s5 + $0x38] sm:$0xff]   ;;  %v12034_v54 = vand.u32 4294901760, %v8920_v38  ;;  %4197 = vmatprep.mubr.f32.mxu1 %v10177_v32  ;;  %v12041_v38 = vand.u32 4294901760, %v8926_v17  ;;  %v12046_v17 = vand.u32 4294901760, %v8930_v43 }
 0x4d4   :  { %6965 = vmatpush3.bf16.msra.mxu0 %v10191_v26  ;;  %3394 = vmatprep.mubr.f32.mxu0 %v12036_v40  ;;  %12042 = vst [vmem:[#allocation62_spill] sm:$0xff] %v10217_v61  ;;  %v12051_v40 = vld [vmem:[#allocation9_spill] sm:$0xff]  ;;  %v12053_v43 = vand.u32 4294901760, %v9659_v58 }
 0x4d5   :  { %v6968_v62 = vpack.c.bf16 %v12035_v45, %v12034_v54  ;;  %7149 = vmatpush3.bf16.msra.mxu1 %v12039_v4  ;;  %6967 = vmatprep.subr.bf16.mxu0 %v6966_v14  ;;  %v6970_v39 = vpack.c.bf16 %v12041_v38, %v12040_v35  ;;  %v10220_v54 = vsel %vm1200_vm10, %v2446_v56, %v2486_v41  ;;  %v12044_v45 = vld [vmem:[#allocation72_spill] sm:$0xff]  ;;  %v12052_v15 = vand.u32 4294901760, %v12051_v40  ;;  %v12056_v38 = vld [vmem:[#allocation19_spill] sm:$0xff]  ;;  %v12059_v58 = vld [vmem:[#allocation21_spill] sm:$0xff] }
 0x4d6   :  { %7151 = vmatprep.subr.bf16.mxu1 %v12044_v45  ;;  %4199 = vmatmul.mubr.f32.gmra.mrb[52].mxu1 %v10203_v55  ;;  %v6972_v14 = vpack.c.bf16 %v12046_v17, %v12045_v57  ;;  %v10234_v41 = vand.u32 4294901760, %v10220_v54  ;;  %v11660_v4 = vand.u32 4294901760, %v10214_v20  ;;  %v10251_v35 = vsub.f32 %v9977_v59, %v9999_v31  ;;  %v12061_v57 = vld [vmem:[#allocation10_spill] sm:$0xff] }
 0x4d7   :  { %3398 = vmatmul.mubr.f32.vlgmr.msra.gmra.mrb[40].mxu0 %v12043_v36  ;;  %4204 = vmatprep.mubr.f32.mxu1 %v10217_v61  ;;  %v12058_v36 = vand.u32 4294901760, %v9705_v51  ;;  %v12060_v45 = vand.u32 4294901760, %v12059_v58  ;;  %v12062_v17 = vand.u32 4294901760, %v12061_v57  ;;  %v12064_v51 = vand.u32 4294901760, %v9708_v42  ;;  %v12070_v42 = vld [vmem:[#allocation11_spill] sm:$0xff] }
 0x4d8   :  { %6969 = vmatpush3.bf16.msra.mxu0 %v6968_v62  ;;  %3405 = vmatprep.mubr.f32.mxu0 %v12047_v3  ;;  %12048 = vst [vmem:[#allocation15_spill] sm:$0xff] %v10234_v41  ;;  %v12050_v62 = vand.u32 4294901760, %v8976_v52  ;;  %v12055_v52 = vand.u32 4294901760, %v8980_v47  ;;  %v12063_v3 = vld [vmem:[#allocation82_spill] sm:$0xff]  ;;  %v10270_v47 = vsub.f32 %v10002_v1, %v10026_v50  ;;  %v12065_v40 = vand.u32 4294901760, %v9748_v27  ;;  %v10297_v27 = vld [vmem:[%s11345_s5 + $0x80] sm:$0xff]  }
 0x4d9   :  { %7153 = vmatpush3.bf16.msra.mxu1 %v12049_v30  ;;  %6971 = vmatprep.subr.bf16.mxu0 %v6970_v39  ;;  %v12057_v39 = vand.u32 4294901760, %v12056_v38  ;;  %v6978_v59 = vpack.c.bf16 %v12062_v17, %v12060_v45  ;;  %v12074_v45 = vand.u32 4294901760, %v9751_v49  ;;  %v10310_v17 = vld [vmem:[%s11345_s5 + $0xc8] sm:$0xff]  }
 0x4da   :  { %v6974_v56 = vpack.c.bf16 %v12052_v15, %v12050_v62  ;;  %7155 = vmatprep.subr.bf16.mxu1 %v12054_v37  ;;  %4206 = vmatmul.mubr.f32.gmra.mrb[54].mxu1 %v10234_v41  ;;  %v10277_v62 = vsub.f32 %v10014_v60, %v10038_v10  ;;  %v11658_v15 = vand.u32 4294901760, %v10251_v35  ;;  %v11657_v57 = vand.u32 4294901760, %v10270_v47 }
 0x4db   :  { %3409 = vmatmul.mubr.f32.gmra.mrb[42].mxu0 %v12053_v43  ;;  %v6976_v29 = vpack.c.bf16 %v12057_v39, %v12055_v52  ;;  %4444 = vmatprep.mubr.f32.mxu1 %v11660_v4  ;;  %v12068_v52 = vld [vmem:[#allocation20_spill] sm:$0xff]  ;;  %v12071_v39 = vand.u32 4294901760, %v12070_v42  ;;  %v10353_v42 = vsub.f32 %v10082_v13, %v10106_v16 }
 0x4dc   :  { %6973 = vmatpush3.bf16.msra.mxu0 %v6972_v14  ;;  %3416 = vmatprep.mubr.f32.mxu0 %v12058_v36  ;;  %v11659_v14 = vand.u32 4294901760, %v10243_v6  ;;  %v12069_v1 = vand.u32 4294901760, %v12068_v52  ;;  %v12072_v36 = vld [vmem:[#allocation23_spill] sm:$0xff]  ;;  %v11656_v49 = vand.u32 4294901760, %v10277_v62  ;;  %v12079_v52 = vld [vmem:[#allocation16_spill] sm:$0xff] }
 0x4dd   :  { %7157 = vmatpush3.bf16.msra.mxu1 %v12063_v3  ;;  %6975 = vmatprep.subr.bf16.mxu0 %v6974_v56  ;;  %v12066_v56 = vld [vmem:[#allocation22_spill] sm:$0xff]  ;;  %v12073_v60 = vand.u32 4294901760, %v12072_v36  ;;  %v12084_v36 = vld [vmem:[#allocation25_spill] sm:$0xff]  ;;  %v12141_v4 = vld [vmem:[#allocation56_spill] sm:$0xff] }
 0x4de   :  { %7191 = vmatprep.subr.bf16.mxu1 %v10010_v18  ;;  %v12067_v43 = vand.u32 4294901760, %v12066_v56 }
 0x4df   :  { %3420 = vmatmul.mubr.f32.gmra.mrb[44].mxu0 %v12064_v51  ;;  %v6982_v58 = vpack.c.bf16 %v12073_v60, %v12071_v39  ;;  %v12076_v51 = vand.u32 4294901760, %v11959_v25  ;;  %v12081_v25 = vand.u32 4294901760, %v9786_v21  ;;  %v12083_v39 = vand.u32 4294901760, %v11969_v44 }
 0x4e0   :  { %6977 = vmatpush3.bf16.msra.mxu0 %v6976_v29  ;;  %3427 = vmatprep.mubr.f32.mxu0 %v12065_v40  ;;  %v6980_v38 = vpack.c.bf16 %v12069_v1, %v12067_v43  ;;  %v10302_v29 = vsub.f32 %v10041_v48, %v10060_v46  ;;  %v12075_v48 = vand.u32 4294901760, %v9783_v7  ;;  %v12077_v40 = vand.u32 4294901760, %v11958_v63  ;;  %v10335_v7 = vld [vmem:[%s11345_s5 + $0x88] sm:$0xff]  }
 0x4e1   :  { %4448 = vmatmul.mubr.f32.vlgmr.msra.gmra.mrb[56].mxu1 %v11659_v14  ;;  %6979 = vmatprep.subr.bf16.mxu0 %v6978_v59  ;;  %v10315_v59 = vsub.f32 %v10048_v11, %v10072_v0  ;;  %v12078_v43 = vand.u32 4294901760, %v11961_v8  ;;  %v12080_v11 = vand.u32 4294901760, %v12079_v52  ;;  %v10340_v63 = vsub.f32 %v10075_v12, %v10094_v28  ;;  %v12138_v14 = vld [vmem:[#allocation12_spill] sm:$0xff] }
 0x4e2   :  { %4455 = vmatprep.mubr.f32.mxu1 %v11658_v15  ;;  %7193 = vmatpush3.bf16.msra.mxu1 %v10297_v27  ;;  %v6984_v56 = vpack.c.bf16 %v12077_v40, %v12076_v51  ;;  %v11646_v8 = vand.u32 4294901760, %v10302_v29  ;;  %v12082_v12 = vand.u32 4294901760, %v9819_v19  ;;  %v12085_v60 = vand.u32 4294901760, %v12084_v36  ;;  %v12088_v51 = vld [vmem:[#allocation27_spill] sm:$0xff]  ;;  %v12137_v15 = vld [vmem:[#allocation104_spill] sm:$0xff] }
 0x4e3   :  { %3431 = vmatmul.mubr.f32.gmra.mrb[46].mxu0 %v12074_v45  ;;  %7195 = vmatprep.subr.bf16.mxu1 %v10310_v17  ;;  %v6986_v1 = vpack.c.bf16 %v12080_v11, %v12078_v43  ;;  %v11645_v21 = vand.u32 4294901760, %v10315_v59  ;;  %v12086_v45 = vld [vmem:[#allocation26_spill] sm:$0xff]  ;;  %v12089_v13 = vand.u32 4294901760, %v12088_v51  ;;  %v10378_v44 = vsub.f32 %v10109_v33, %v10128_v34  ;;  %v10386_v11 = vld [vmem:[%s11345_s5 + $0xd8] sm:$0xff]  }
 0x4e4   :  { %6981 = vmatpush3.bf16.msra.mxu0 %v6980_v38  ;;  %3437 = vmatprep.mubr.f32.mxu0 %v12075_v48  ;;  %v10348_v38 = vld [vmem:[%s11345_s5 + $0xd0] sm:$0xff]   ;;  %v12087_v48 = vand.u32 4294901760, %v12086_v45  ;;  %v11652_v52 = vand.u32 4294901760, %v10340_v63  ;;  %v11647_v36 = vand.u32 4294901760, %v10353_v42 }
 0x4e5   :  { %4459 = vmatmul.mubr.f32.gmra.mrb[58].mxu1 %v11657_v57  ;;  %6983 = vmatprep.subr.bf16.mxu0 %v6982_v58  ;;  %v6988_v58 = vpack.c.bf16 %v12085_v60, %v12083_v39  ;;  %v10373_v19 = vld [vmem:[%s11345_s5 + $0x90] sm:$0xff]   ;;  %v12094_v39 = vld [vmem:[#allocation61_spill] sm:$0xff]  ;;  %v12096_v60 = vld [vmem:[#allocation28_spill] sm:$0xff] }
 0x4e6   :  { %4466 = vmatprep.mubr.f32.mxu1 %v11656_v49  ;;  %7197 = vmatpush3.bf16.msra.mxu1 %v10335_v7  ;;  %v6990_v40 = vpack.c.bf16 %v12089_v13, %v12087_v48  ;;  %v12095_v33 = vand.u32 4294901760, %v12094_v39  ;;  %v12097_v45 = vand.u32 4294901760, %v12096_v60  ;;  %v12098_v48 = vld [vmem:[#allocation29_spill] sm:$0xff]  ;;  %v12104_v39 = vld [vmem:[#allocation107_spill] sm:$0xff]  ;;  %v12134_v57 = vld [vmem:[#allocation58_spill] sm:$0xff] }
 0x4e7   :  { %3441 = vmatmul.mubr.f32.gmra.mrb[48].mxu0 %v12081_v25  ;;  %7199 = vmatprep.subr.bf16.mxu1 %v10348_v38  ;;  %v12093_v25 = vld [vmem:[#allocation50_spill] sm:$0xff]  ;;  %v12099_v51 = vand.u32 4294901760, %v12098_v48  ;;  %v10429_v48 = vsub.f32 %v10150_v23, %v10177_v32  ;;  %v10445_v23 = vld [vmem:[%s11345_s5 + $0xa0] sm:$0xff]   ;;  %v12133_v49 = vld [vmem:[#allocation43_spill] sm:$0xff] }
 0x4e8   :  { %6985 = vmatpush3.bf16.msra.mxu0 %v6984_v56  ;;  %3448 = vmatprep.mubr.f32.mxu0 %v12082_v12  ;;  %v12090_v56 = vld [vmem:[#allocation13_spill] sm:$0xff] }
 0x4e9   :  { %4470 = vmatmul.mubr.f32.gmra.mrb[60].mxu1 %v11646_v8  ;;  %6987 = vmatprep.subr.bf16.mxu0 %v6986_v1  ;;  %v12091_v43 = vand.u32 4294901760, %v12090_v56  ;;  %v12092_v1 = vld [vmem:[#allocation106_spill] sm:$0xff]  ;;  %v6992_v13 = vpack.c.bf16 %v12099_v51, %v12097_v45  ;;  %v10424_v45 = vld [vmem:[%s11345_s5 + $0xe0] sm:$0xff]  }
 0x4ea   :  { %4477 = vmatprep.mubr.f32.mxu1 %v11645_v21  ;;  %7201 = vmatpush3.bf16.msra.mxu1 %v10373_v19  ;;  %v10391_v12 = vsub.f32 %v12093_v25, %v12092_v1  ;;  %v12100_v56 = vld [vmem:[#allocation30_spill] sm:$0xff]  ;;  %v12102_v21 = vld [vmem:[#allocation31_spill] sm:$0xff]  ;;  %v12107_v51 = vld [vmem:[#allocation92_spill] sm:$0xff] }
 0x4eb   :  { %3452 = vmatmul.mubr.f32.gmra.mrb[50].mxu0 %v12091_v43  ;;  %7203 = vmatprep.subr.bf16.mxu1 %v10386_v11  ;;  %v12101_v43 = vand.u32 4294901760, %v12100_v56  ;;  %v12103_v25 = vand.u32 4294901760, %v12102_v21  ;;  %v11651_v21 = vand.u32 4294901760, %v10378_v44  ;;  %v12108_v56 = vand.u32 4294901760, %v12107_v51 }
 0x4ec   :  { %6989 = vmatpush3.bf16.msra.mxu0 %v6988_v58  ;;  %3459 = vmatprep.mubr.f32.mxu0 %v12095_v33  ;;  %v10411_v58 = vld [vmem:[%s11345_s5 + $0x98] sm:$0xff]   ;;  %v10416_v33 = vsub.f32 %v12104_v39, %v10162_v5  ;;  %v12113_v51 = vand.u32 4294901760, %v9906_v53  ;;  %v12115_v53 = vld [vmem:[#allocation93_spill] sm:$0xff] }
 0x4ed   :  { %4481 = vmatmul.mubr.f32.gmra.mrb[62].mxu1 %v11652_v52  ;;  %6991 = vmatprep.subr.bf16.mxu0 %v6990_v40  ;;  %v6994_v8 = vpack.c.bf16 %v12103_v25, %v12101_v43  ;;  %v12105_v40 = vld [vmem:[#allocation38_spill] sm:$0xff]  ;;  %v11650_v43 = vand.u32 4294901760, %v10391_v12  ;;  %v12109_v25 = vld [vmem:[#allocation32_spill] sm:$0xff]  ;;  %v12122_v52 = vld [vmem:[#allocation83_spill] sm:$0xff] }
 0x4ee   :  { %4487 = vmatprep.mubr.f32.mxu1 %v11647_v36  ;;  %7205 = vmatpush3.bf16.msra.mxu1 %v10411_v58  ;;  %v12106_v60 = vand.u32 4294901760, %v12105_v40  ;;  %v12110_v39 = vand.u32 4294901760, %v12109_v25  ;;  %v12111_v40 = vld [vmem:[#allocation33_spill] sm:$0xff]  ;;  %v10463_v25 = vsub.f32 %v10186_v22, %v10217_v61  ;;  %v10480_v22 = vsub.f32 %v10220_v54, %v10234_v41  ;;  %v12119_v54 = vld [vmem:[#allocation95_spill] sm:$0xff] }
 0x4ef   :  { %7207 = vmatprep.subr.bf16.mxu1 %v10424_v45 }
 0x4f0   :  { %3463 = vmatmul.mubr.f32.gmra.mrb[52].mxu0 %v12106_v60  ;;  %v12112_v60 = vand.u32 4294901760, %v12111_v40  ;;  %v10475_v40 = vld [vmem:[%s11345_s5 + $0xa8] sm:$0xff]  }
 0x4f1   :  { %6993 = vmatpush3.bf16.msra.mxu0 %v6992_v13  ;;  %3470 = vmatprep.mubr.f32.mxu0 %v12108_v56  ;;  %v10450_v13 = vsub.f32 %v10180_v9, %v10203_v55  ;;  %v11649_v56 = vand.u32 4294901760, %v10416_v33  ;;  %v11648_v9 = vand.u32 4294901760, %v10429_v48 }
 0x4f2   :  { %v6996_v36 = vpack.c.bf16 %v12112_v60, %v12110_v39  ;;  %4491 = vmatmul.mubr.f32.gmra.mrb[64].mxu1 %v11651_v21  ;;  %6995 = vmatprep.subr.bf16.mxu0 %v6994_v8  ;;  %v10458_v8 = vld [vmem:[%s11345_s5 + $0xe8] sm:$0xff]   ;;  %v12114_v39 = vld [vmem:[#allocation76_spill] sm:$0xff]  ;;  %v11655_v21 = vand.u32 4294901760, %v10480_v22 }
 0x4f3   :  { %4498 = vmatprep.mubr.f32.mxu1 %v11650_v43  ;;  %7209 = vmatpush3.bf16.msra.mxu1 %v10445_v23  ;;  %v11653_v60 = vand.u32 4294901760, %v10450_v13  ;;  %v12120_v43 = vld [vmem:[#allocation80_spill] sm:$0xff] }
 0x4f4   :  { %3474 = vmatmul.mubr.f32.gmra.mrb[54].mxu0 %v12113_v51  ;;  %7211 = vmatprep.subr.bf16.mxu1 %v10458_v8  ;;  %v10487_v51 = vld [vmem:[%s11345_s5 + $0xf0] sm:$0xff]  }
 0x4f5   :  { %6997 = vmatpush3.bf16.msra.mxu0 %v6996_v36  ;;  %3607 = vmatprep.mubr.f32.mxu0 %v12114_v39  ;;  %v12116_v36 = vld [vmem:[#allocation77_spill] sm:$0xff] }
 0x4f6   :  { %4502 = vmatmul.mubr.f32.gmra.mrb[66].mxu1 %v11649_v56  ;;  %6999 = vmatprep.subr.bf16.mxu0 %v12115_v53  ;;  %v12117_v53 = vld [vmem:[#allocation94_spill] sm:$0xff]  ;;  %v11654_v56 = vand.u32 4294901760, %v10463_v25 }
 0x4f7   :  { %4509 = vmatprep.mubr.f32.mxu1 %v11648_v9  ;;  %7213 = vmatpush3.bf16.msra.mxu1 %v10475_v40  ;;  %v12118_v9 = vld [vmem:[#allocation79_spill] sm:$0xff] }
 0x4f8   :  { %3609 = vmatmul.mubr.f32.vlgmr.msra.gmra.mrb[56].mxu0 %v12116_v36  ;;  %7215 = vmatprep.subr.bf16.mxu1 %v10487_v51 }
 0x4f9   :  { %7001 = vmatpush3.bf16.msra.mxu0 %v12117_v53  ;;  %3614 = vmatprep.mubr.f32.mxu0 %v12118_v9  ;;  %v12121_v53 = vld [vmem:[#allocation96_spill] sm:$0xff] }
 0x4fa   :  { %4513 = vmatmul.mubr.f32.gmra.mrb[68].mxu1 %v11653_v60  ;;  %7003 = vmatprep.subr.bf16.mxu0 %v12119_v54  ;;  %v12123_v60 = vld [vmem:[#allocation97_spill] sm:$0xff]  ;;  %v12125_v54 = vld [vmem:[#allocation98_spill] sm:$0xff] }
 0x4fb   :  { %4520 = vmatprep.mubr.f32.mxu1 %v11654_v56  ;;  %7217 = vmatpush3.bf16.msra.mxu1 %v12049_v30  ;;  %v12124_v30 = vld [vmem:[#allocation84_spill] sm:$0xff]  ;;  %v12126_v56 = vld [vmem:[#allocation85_spill] sm:$0xff] }
 0x4fc   :  { %3616 = vmatmul.mubr.f32.gmra.mrb[58].mxu0 %v12120_v43  ;;  %7219 = vmatprep.subr.bf16.mxu1 %v12054_v37  ;;  %v12127_v37 = vld [vmem:[#allocation7_spill] sm:$0xff] }
 0x4fd   :  { %7005 = vmatpush3.bf16.msra.mxu0 %v12121_v53  ;;  %3621 = vmatprep.mubr.f32.mxu0 %v12122_v52  ;;  %v12128_v53 = vld [vmem:[#allocation86_spill] sm:$0xff] }
 0x4fe   :  { %4524 = vmatmul.mubr.f32.gmra.mrb[70].mxu1 %v11655_v21  ;;  %7007 = vmatprep.subr.bf16.mxu0 %v12123_v60  ;;  %v12129_v21 = vld [vmem:[#allocation5_spill] sm:$0xff]  ;;  %v12130_v60 = vld [vmem:[#allocation34_spill] sm:$0xff] }
 0x4ff   :  { %7221 = vmatpush3.bf16.msra.mxu1 %v12063_v3  ;;  %4776 = vmatprep.mubr.f32.mxu1 %v9974_v24  ;;  %v12131_v3 = vld [vmem:[#allocation8_spill] sm:$0xff] }
 0x500   :  { %3623 = vmatmul.mubr.f32.gmra.mrb[60].mxu0 %v12124_v30 }
 0x501   :  { %7009 = vmatpush3.bf16.msra.mxu0 %v12125_v54  ;;  %3628 = vmatprep.mubr.f32.mxu0 %v12126_v56  ;;  %v12132_v54 = vld [vmem:[#allocation89_spill] sm:$0xff] }
 0x502   :  { %4778 = vmatmul.mubr.f32.vlgmr.msra.gmra.mrb[72].mxu1 %v9987_v2  ;;  %7011 = vmatprep.subr.bf16.mxu0 %v12127_v37  ;;  %v12135_v37 = vld [vmem:[#allocation47_spill] sm:$0xff] }
 0x503   :  { %4783 = vmatprep.mubr.f32.mxu1 %v9999_v31 }
 0x504   :  { %3630 = vmatmul.mubr.f32.gmra.mrb[62].mxu0 %v12128_v53 }
 0x505   :  { %7013 = vmatpush3.bf16.msra.mxu0 %v12129_v21  ;;  %3634 = vmatprep.mubr.f32.mxu0 %v12130_v60  ;;  %v12136_v21 = vld [vmem:[#allocation35_spill] sm:$0xff] }
 0x506   :  { %4785 = vmatmul.mubr.f32.gmra.mrb[74].mxu1 %v10026_v50  ;;  %7015 = vmatprep.subr.bf16.mxu0 %v12131_v3  ;;  %v12139_v3 = vld [vmem:[#allocation51_spill] sm:$0xff] }
 0x507   :  { %4790 = vmatprep.mubr.f32.mxu1 %v10038_v10 }
 0x508   :  { %3636 = vmatmul.mubr.f32.gmra.mrb[64].mxu0 %v12132_v54 }
 0x509   :  { %7017 = vmatpush3.bf16.msra.mxu0 %v12133_v49  ;;  %3641 = vmatprep.mubr.f32.mxu0 %v12134_v57  ;;  %v12140_v49 = vld [vmem:[#allocation14_spill] sm:$0xff] }
 0x50a   :  { %4792 = vmatmul.mubr.f32.gmra.mrb[76].mxu1 %v10060_v46  ;;  %7019 = vmatprep.subr.bf16.mxu0 %v12135_v37  ;;  %v12142_v46 = vld [vmem:[#allocation24_spill] sm:$0xff]  ;;  %v12143_v37 = vld [vmem:[#allocation57_spill] sm:$0xff] }
 0x50b   :  { %4797 = vmatprep.mubr.f32.mxu1 %v10072_v0  ;;  %v12191_v0 = vand.u32 4294901760, %v10480_v22 }
 0x50c   :  { %3643 = vmatmul.mubr.f32.gmra.mrb[66].mxu0 %v12136_v21 }
 0x50d   :  { %7021 = vmatpush3.bf16.msra.mxu0 %v12137_v15  ;;  %3648 = vmatprep.mubr.f32.mxu0 %v12138_v14  ;;  %v12144_v15 = vld [vmem:[#allocation39_spill] sm:$0xff] }
 0x50e   :  { %4799 = vmatmul.mubr.f32.gmra.mrb[78].mxu1 %v10094_v28  ;;  %7023 = vmatprep.subr.bf16.mxu0 %v12139_v3 }
 0x50f   :  { %4803 = vmatprep.mubr.f32.mxu1 %v10106_v16  ;;  %v12190_v16 = vld [vmem:[#allocation88_spill] sm:$0xff] }
 0x510   :  { %3650 = vmatmul.mubr.f32.gmra.mrb[68].mxu0 %v12140_v49 }
 0x511   :  { %7025 = vmatpush3.bf16.msra.mxu0 %v12141_v4  ;;  %3655 = vmatprep.mubr.f32.mxu0 %v12142_v46 }
 0x512   :  { %4805 = vmatmul.mubr.f32.gmra.mrb[80].mxu1 %v10128_v34  ;;  %7027 = vmatprep.subr.bf16.mxu0 %v12143_v37  ;;  %v12160_v37 = vld [vmem:[#allocation49_spill] sm:$0xff]  ;;  %v12186_v34 = vand.u32 4294901760, %v10463_v25 }
 0x513   :  { %4810 = vmatprep.mubr.f32.mxu1 %v12092_v1  ;;  %v12185_v1 = vand.u32 4294901760, %v10450_v13 }
 0x514   :  { %3657 = vmatmul.mubr.f32.gmra.mrb[70].mxu0 %v12144_v15 }
 0x515   :  { %7029 = vmatpush3.bf16.msra.mxu0 %v10191_v26  ;;  %3726 = vmatprep.mubr.f32.mxu0 %v12114_v39  ;;  %v12146_v26 = vand.u32 4294901760, %v10214_v20  ;;  %v12154_v39 = vld [vmem:[#allocation44_spill] sm:$0xff] }
 0x516   :  { %4812 = vmatmul.mubr.f32.gmra.mrb[82].mxu1 %v10162_v5  ;;  %7031 = vmatprep.subr.bf16.mxu0 %v10010_v18  ;;  %v12145_v18 = vmov 0.0  }
 0x517   :  { %4817 = vmatprep.mubr.f32.mxu1 %v10177_v32  ;;  %v3847_v4 = vsub.f32 %v10214_v20, %v12146_v26  ;;  %v12161_v26 = vand.u32 4294901760, %v10302_v29  ;;  %v12184_v32 = vld [vmem:[#allocation74_spill] sm:$0xff] }
 0x518   :  { %3728 = vmatmul.mubr.f32.vlgmr.msra.gmra.mrb[72].mxu0 %v12116_v36 }
 0x519   :  { %7033 = vmatpush3.bf16.msra.mxu0 %v10297_v27  ;;  %3733 = vmatprep.mubr.f32.mxu0 %v12118_v9  ;;  %v7612_v27 = vld [vmem:[%s11345_s5 + $0xb0] sm:$0xff]  }
 0x51a   :  { %4819 = vmatmul.mubr.f32.gmra.mrb[84].mxu1 %v10203_v55  ;;  %7035 = vmatprep.subr.bf16.mxu0 %v10310_v17  ;;  %v12180_v55 = vand.u32 4294901760, %v10429_v48 }
 0x51b   :  { %4824 = vmatprep.mubr.f32.mxu1 %v10217_v61  ;;  %v12179_v61 = vand.u32 4294901760, %v10416_v33 }
 0x51c   :  { %3735 = vmatmul.mubr.f32.gmra.mrb[74].mxu0 %v12120_v43  ;;  %v12152_v43 = vld [vmem:[#allocation41_spill] sm:$0xff] }
 0x51d   :  { %7037 = vmatpush3.bf16.msra.mxu0 %v10335_v7  ;;  %3740 = vmatprep.mubr.f32.mxu0 %v12122_v52  ;;  %v12148_v7 = vld [vmem:[#allocation36_spill] sm:$0xff]  ;;  %v3848_v52 = vand.u32 4294901760, %v3847_v4  ;;  %v3883_v4 = vsub.f32 %v10302_v29, %v12161_v26  ;;  %v12172_v26 = vld [vmem:[#allocation65_spill] sm:$0xff] }
 0x51e   :  { %4826 = vmatmul.mubr.f32.gmra.mrb[86].mxu1 %v10234_v41  ;;  %7039 = vmatprep.subr.bf16.mxu0 %v10348_v38  ;;  %v12149_v38 = vld [vmem:[#allocation37_spill] sm:$0xff]  ;;  %v12194_v10 = vand.u32 4294901760, %v12148_v7 }
 0x51f   :  { %4975 = vmatprep.mubr.f32.mxu1 %v12145_v18  ;;  %v12178_v18 = vld [vmem:[#allocation69_spill] sm:$0xff] }
 0x520   :  { %3742 = vmatmul.mubr.f32.gmra.mrb[76].mxu0 %v12124_v30  ;;  %v12156_v30 = vand.u32 4294901760, %v10277_v62 }
 0x521   :  { %7041 = vmatpush3.bf16.msra.mxu0 %v10373_v19  ;;  %3747 = vmatprep.mubr.f32.mxu0 %v12126_v56  ;;  %v7094_v19 = vpack.c.bf16 %v12149_v38, %v12148_v7 }
 0x522   :  { %7043 = vmatprep.subr.bf16.mxu0 %v10386_v11  ;;  %v12150_v11 = vand.u32 4294901760, %v10251_v35 }
 0x524   :  { %3749 = vmatmul.mubr.f32.gmra.mrb[78].mxu0 %v12128_v53  ;;  %v3877_v53 = vsub.f32 %v10277_v62, %v12156_v30  ;;  %v12169_v30 = vld [vmem:[#allocation59_spill] sm:$0xff] }
 0x525   :  { %7045 = vmatpush3.bf16.msra.mxu0 %v10411_v58  ;;  %3753 = vmatprep.mubr.f32.mxu0 %v12130_v60  ;;  %v3862_v58 = vsub.f32 %v10251_v35, %v12150_v11  ;;  %v12157_v60 = vld [vmem:[#allocation45_spill] sm:$0xff]  ;;  %v3884_v11 = vand.u32 4294901760, %v3883_v4 }
 0x526   :  { %7047 = vmatprep.subr.bf16.mxu0 %v10424_v45  ;;  %v12151_v45 = vld [vmem:[#allocation40_spill] sm:$0xff] }
 0x528   :  { %3755 = vmatmul.mubr.f32.gmra.mrb[80].mxu0 %v12132_v54  ;;  %v12158_v54 = vld [vmem:[#allocation46_spill] sm:$0xff] }
 0x529   :  { %7049 = vmatpush3.bf16.msra.mxu0 %v10445_v23  ;;  %3760 = vmatprep.mubr.f32.mxu0 %v12134_v57  ;;  %v12147_v57 = vand.u32 4294901760, %v10243_v6  ;;  %v7096_v23 = vpack.c.bf16 %v12152_v43, %v12151_v45 }
 0x52a   :  { %7051 = vmatprep.subr.bf16.mxu0 %v10458_v8  ;;  %v12153_v8 = vld [vmem:[#allocation42_spill] sm:$0xff] }
 0x52b   :  { %v3853_v17 = vsub.f32 %v10243_v6, %v12147_v57  ;;  %v7098_v9 = vpack.c.bf16 %v12154_v39, %v12153_v8  ;;  %v12162_v57 = vand.u32 4294901760, %v10315_v59 }
 0x52c   :  { %3762 = vmatmul.mubr.f32.gmra.mrb[82].mxu0 %v12136_v21  ;;  %v7100_v21 = vpack.c.bf16 %v12158_v54, %v12157_v60 }
 0x52d   :  { %7053 = vmatpush3.bf16.msra.mxu0 %v10475_v40  ;;  %3767 = vmatprep.mubr.f32.mxu0 %v12138_v14  ;;  %v7613_v14 = vld [vmem:[%s11345_s5 + $0xf8] sm:$0xff]   ;;  %v3854_v56 = vand.u32 4294901760, %v3853_v17  ;;  %v12155_v40 = vand.u32 4294901760, %v10270_v47  ;;  %v3892_v17 = vsub.f32 %v10315_v59, %v12162_v57 }
 0x52e   :  { %7055 = vmatprep.subr.bf16.mxu0 %v10487_v51  ;;  %v3863_v51 = vand.u32 4294901760, %v3862_v58  ;;  %v12165_v58 = vld [vmem:[#allocation54_spill] sm:$0xff] }
 0x52f   :  { %v3868_v36 = vsub.f32 %v10270_v47, %v12155_v40  ;;  %v3893_v40 = vand.u32 4294901760, %v3892_v17 }
 0x530   :  { %3769 = vmatmul.mubr.f32.gmra.mrb[84].mxu0 %v12140_v49  ;;  %v12159_v49 = vld [vmem:[#allocation48_spill] sm:$0xff] }
 0x531   :  { %7057 = vmatpush3.bf16.msra.mxu0 %v7612_v27  ;;  %3774 = vmatprep.mubr.f32.mxu0 %v12142_v46  ;;  %v7614_v46 = vld [vmem:[%s11345_s5 + $0xb8] sm:$0xff]   ;;  %v3869_v3 = vand.u32 4294901760, %v3868_v36  ;;  %v3878_v27 = vand.u32 4294901760, %v3877_v53  ;;  %v12168_v36 = vand.u32 4294901760, %v10353_v42  ;;  %s5536_s5 = sshll.u32 %s7647_s13, 4  ;;  %s5537_s5 = int_to_ptr.vmem [resolvable:$true] %s5536_s5 }
 0x532   :  { %7059 = vmatprep.subr.bf16.mxu0 %v7613_v14  ;;  %v12163_v14 = vld [vmem:[#allocation52_spill] sm:$0xff]  ;;  %s7615_s14 = scalar_lea.vmem %s5537_s5, 64  ;;  %p7620_p1 = scmp.lt.s32.totalorder %s5537_s5, %s5537_s5 }
 0x533   :  { %v12170_v53 = vld [vmem:[#allocation60_spill] sm:$0xff]  ;;  %p7616_p0 = scmp.ne.s32.totalorder %s5537_s5, %s7615_s14  ;;  %p7621_p2 = scmp.lt.s32.totalorder %s7615_s14, %s7615_s14 }
 0x534   :  { %3776 = vmatmul.mubr.f32.gmra.mrb[86].mxu0 %v12144_v15  ;;  %v7102_v15 = vpack.c.bf16 %v12160_v37, %v12159_v49 }
 0x535   :  { %7061 = vmatpush3.bf16.msra.mxu0 %v7614_v46  ;;  %3849 = vmatprep.mubr.f32.mxu0 %v3848_v52  ;;  %v12166_v46 = vld [vmem:[#allocation55_spill] sm:$0xff]  ;;  %p7622_p3 = por %p7621_p2, %p7620_p1 }
 0x536   :  { %7095 = vmatprep.subr.bf16.mxu0 %v7094_v19  ;;  %v12164_v19 = vld [vmem:[#allocation53_spill] sm:$0xff] }
 0x537   :  { %v7104_v52 = vpack.c.bf16 %v12164_v19, %v12163_v14  ;;  %p7623_p4 = pnand %p7622_p3, %p7616_p0 }
 0x538   :  { %3855 = vmatmul.mubr.f32.vlgmr.msra.gmra.mrb[88].mxu0 %v3854_v56  ;;  %v12167_v56 = vand.u32 4294901760, %v10340_v63 }
 0x539   :  { %7097 = vmatpush3.bf16.msra.mxu0 %v7096_v23  ;;  %3864 = vmatprep.mubr.f32.mxu0 %v3863_v51  ;;  %v7106_v23 = vpack.c.bf16 %v12166_v46, %v12165_v58  ;;  %v3906_v51 = vsub.f32 %v10353_v42, %v12168_v36 }
 0x53a   :  { %7099 = vmatprep.subr.bf16.mxu0 %v7098_v9  ;;  %v3898_v9 = vsub.f32 %v10340_v63, %v12167_v56  ;;  %v12174_v56 = vand.u32 4294901760, %v10391_v12 }
 0x53b   :  { %v3907_v17 = vand.u32 4294901760, %v3906_v51 }
 0x53c   :  { %3870 = vmatmul.mubr.f32.gmra.mrb[90].mxu0 %v3869_v3  ;;  %v3899_v3 = vand.u32 4294901760, %v3898_v9  ;;  %v3921_v36 = vsub.f32 %v10391_v12, %v12174_v56  ;;  %v12177_v9 = vld [vmem:[#allocation68_spill] sm:$0xff]  ;;  %v3936_v56 = vsub.f32 %v10429_v48, %v12180_v55  ;;  %v3951_v55 = vsub.f32 %v10463_v25, %v12186_v34  ;;  %v12192_v34 = vld [vmem:[#allocation90_spill] sm:$0xff] }
 0x53d   :  { %7101 = vmatpush3.bf16.msra.mxu0 %v7100_v21  ;;  %3879 = vmatprep.mubr.f32.mxu0 %v3878_v27  ;;  %v7108_v21 = vpack.c.bf16 %v12170_v53, %v12169_v30  ;;  %v12173_v27 = vand.u32 4294901760, %v10378_v44  ;;  %v7114_v41 = vpack.c.bf16 %v12178_v18, %v12177_v9 }
 0x53e   :  { %7103 = vmatprep.subr.bf16.mxu0 %v7102_v15  ;;  %v12171_v15 = vld [vmem:[#allocation64_spill] sm:$0xff]  ;;  %v3922_v51 = vand.u32 4294901760, %v3921_v36  ;;  %v3937_v36 = vand.u32 4294901760, %v3936_v56  ;;  %v3952_v56 = vand.u32 4294901760, %v3951_v55  ;;  %v12197_v55 = vand.u32 4294901760, %v12152_v43 }
 0x53f   :  { %v7110_v4 = vpack.c.bf16 %v12172_v26, %v12171_v15  ;;  %v3912_v57 = vsub.f32 %v10378_v44, %v12173_v27  ;;  %v3927_v27 = vsub.f32 %v10416_v33, %v12179_v61  ;;  %v3942_v61 = vsub.f32 %v10450_v13, %v12185_v1 }
 0x540   :  { %3885 = vmatmul.mubr.f32.gmra.mrb[92].mxu0 %v3884_v11  ;;  %v12176_v11 = vld [vmem:[#allocation67_spill] sm:$0xff]  ;;  %v3957_v1 = vsub.f32 %v10480_v22, %v12191_v0  ;;  %v12196_v0 = vand.u32 4294901760, %v12151_v45  ;;  %v12203_v45 = vand.u32 4294901760, %v12160_v37  ;;  %v12210_v37 = vand.u32 4294901760, %v12171_v15 }
 0x541   :  { %7105 = vmatpush3.bf16.msra.mxu0 %v7104_v52  ;;  %3894 = vmatprep.mubr.f32.mxu0 %v3893_v40  ;;  %v12175_v52 = vld [vmem:[#allocation66_spill] sm:$0xff] }
 0x542   :  { %7107 = vmatprep.subr.bf16.mxu0 %v7106_v23  ;;  %v7112_v40 = vpack.c.bf16 %v12176_v11, %v12175_v52  ;;  %v3913_v23 = vand.u32 4294901760, %v3912_v57  ;;  %v12183_v57 = vld [vmem:[#allocation73_spill] sm:$0xff] }
 0x543   :  { %v7118_v5 = vpack.c.bf16 %v12184_v32, %v12183_v57 }
 0x544   :  { %3900 = vmatmul.mubr.f32.gmra.mrb[94].mxu0 %v3899_v3  ;;  %v12182_v3 = vld [vmem:[#allocation71_spill] sm:$0xff] }
 0x545   :  { %7109 = vmatpush3.bf16.msra.mxu0 %v7108_v21  ;;  %3908 = vmatprep.mubr.f32.mxu0 %v3907_v17  ;;  %v12181_v21 = vld [vmem:[#allocation70_spill] sm:$0xff] }
 0x546   :  { %7111 = vmatprep.subr.bf16.mxu0 %v7110_v4  ;;  %v7116_v17 = vpack.c.bf16 %v12182_v3, %v12181_v21  ;;  %v3928_v4 = vand.u32 4294901760, %v3927_v27  ;;  %v12189_v27 = vld [vmem:[#allocation87_spill] sm:$0xff] }
 0x547   :  { %v7122_v28 = vpack.c.bf16 %v12190_v16, %v12189_v27 }
 0x548   :  { %3914 = vmatmul.mubr.f32.gmra.mrb[96].mxu0 %v3913_v23  ;;  %v12188_v23 = vld [vmem:[#allocation78_spill] sm:$0xff] }
 0x549   :  { %7113 = vmatpush3.bf16.msra.mxu0 %v7112_v40  ;;  %3923 = vmatprep.mubr.f32.mxu0 %v3922_v51  ;;  %v12187_v40 = vld [vmem:[#allocation75_spill] sm:$0xff] }
 0x54a   :  { %7115 = vmatprep.subr.bf16.mxu0 %v7114_v41  ;;  %v7120_v51 = vpack.c.bf16 %v12188_v23, %v12187_v40  ;;  %v3943_v41 = vand.u32 4294901760, %v3942_v61 }
 0x54c   :  { %3929 = vmatmul.mubr.f32.gmra.mrb[98].mxu0 %v3928_v4  ;;  %v12193_v4 = vld [vmem:[#allocation91_spill] sm:$0xff] }
 0x54d   :  { %7117 = vmatpush3.bf16.msra.mxu0 %v7116_v17  ;;  %3938 = vmatprep.mubr.f32.mxu0 %v3937_v36  ;;  %v7124_v17 = vpack.c.bf16 %v12193_v4, %v12192_v34  ;;  %v3958_v36 = vand.u32 4294901760, %v3957_v1 }
 0x54e   :  { %7119 = vmatprep.subr.bf16.mxu0 %v7118_v5  ;;  %v12195_v5 = vand.u32 4294901760, %v12149_v38  ;;  %v12202_v38 = vand.u32 4294901760, %v12159_v49 }
 0x550   :  { %3944 = vmatmul.mubr.f32.gmra.mrb[100].mxu0 %v3943_v41  ;;  %v7158_v61 = vpack.c.bf16 %v12195_v5, %v12194_v10  ;;  %v12198_v41 = vand.u32 4294901760, %v12153_v8  ;;  %v12200_v10 = vand.u32 4294901760, %v12157_v60  ;;  %v7166_v43 = vpack.c.bf16 %v12203_v45, %v12202_v38  ;;  %v12226_v45 = vld [vmem:[#allocation99_spill] sm:$0xff] }
 0x551   :  { %7121 = vmatpush3.bf16.msra.mxu0 %v7120_v51  ;;  %3953 = vmatprep.mubr.f32.mxu0 %v3952_v56  ;;  %v7160_v51 = vpack.c.bf16 %v12197_v55, %v12196_v0  ;;  %v12207_v60 = vand.u32 4294901760, %v12166_v46  ;;  %v12214_v46 = vand.u32 4294901760, %v12177_v9 }
 0x552   :  { %7123 = vmatprep.subr.bf16.mxu0 %v7122_v28  ;;  %v12199_v28 = vand.u32 4294901760, %v12154_v39  ;;  %v12206_v39 = vand.u32 4294901760, %v12165_v58 }
 0x554   :  { %3959 = vmatmul.mubr.f32.gmra.mrb[102].mxu0 %v3958_v36  ;;  %v7162_v1 = vpack.c.bf16 %v12199_v28, %v12198_v41 }
 0x555   :  { %7125 = vmatpush3.bf16.msra.mxu0 %v7124_v17  ;;  %4308 = vmatprep.mubr.f32.mxu0 %v10214_v20  ;;  %v12201_v20 = vand.u32 4294901760, %v12158_v54  ;;  %v7170_v54 = vpack.c.bf16 %v12207_v60, %v12206_v39  ;;  %v12227_v39 = vld [vmem:[#allocation100_spill] sm:$0xff] }
 0x556   :  { %7159 = vmatprep.subr.bf16.mxu0 %v7158_v61 }
 0x557   :  { %v7164_v7 = vpack.c.bf16 %v12201_v20, %v12200_v10 }
 0x558   :  { %4311 = vmatmul.mubr.f32.vlgmr.msra.gmra.mrb[104].mxu0 %v10243_v6  ;;  %v12204_v6 = vand.u32 4294901760, %v12163_v14  ;;  %v12211_v14 = vand.u32 4294901760, %v12172_v26  ;;  %v12218_v26 = vand.u32 4294901760, %v12183_v57  ;;  %v12223_v57 = vand.u32 4294901760, %v12190_v16  ;;  %v10747_v16 = vld [vmem:[%s11346_s6] ss:$0 sm:$0xff] }
 0x559   :  { %7161 = vmatpush3.bf16.msra.mxu0 %v7160_v51  ;;  %4317 = vmatprep.mubr.f32.mxu0 %v10251_v35  ;;  %v12205_v35 = vand.u32 4294901760, %v12164_v19 }
 0x55a   :  { %7163 = vmatprep.subr.bf16.mxu0 %v7162_v1  ;;  %v7174_v19 = vpack.c.bf16 %v12211_v14, %v12210_v37  ;;  %v12229_v14 = vld [vmem:[#allocation102_spill] sm:$0xff] }
 0x55b   :  { %v7168_v8 = vpack.c.bf16 %v12205_v35, %v12204_v6 }
 0x55c   :  { %4320 = vmatmul.mubr.f32.gmra.mrb[106].mxu0 %v10270_v47  ;;  %v12208_v47 = vand.u32 4294901760, %v12169_v30  ;;  %v12215_v30 = vand.u32 4294901760, %v12178_v18 }
 0x55d   :  { %7165 = vmatpush3.bf16.msra.mxu0 %v7164_v7  ;;  %4326 = vmatprep.mubr.f32.mxu0 %v10277_v62  ;;  %v12209_v62 = vand.u32 4294901760, %v12170_v53 }
 0x55e   :  { %7167 = vmatprep.subr.bf16.mxu0 %v7166_v43  ;;  %v7178_v53 = vpack.c.bf16 %v12215_v30, %v12214_v46 }
 0x55f   :  { %v7172_v49 = vpack.c.bf16 %v12209_v62, %v12208_v47  ;;  %v12228_v47 = vld [vmem:[#allocation101_spill] sm:$0xff] }
 0x560   :  { %4329 = vmatmul.mubr.f32.gmra.mrb[108].mxu0 %v10302_v29  ;;  %v12212_v29 = vand.u32 4294901760, %v12175_v52  ;;  %v12219_v52 = vand.u32 4294901760, %v12184_v32 }
 0x561   :  { %7169 = vmatpush3.bf16.msra.mxu0 %v7168_v8  ;;  %4335 = vmatprep.mubr.f32.mxu0 %v10315_v59  ;;  %v12213_v59 = vand.u32 4294901760, %v12176_v11  ;;  %v5918_v9 = vpop.f32.mrb[8].mxu0 }
 0x562   :  { %7171 = vmatprep.subr.bf16.mxu0 %v7170_v54  ;;  %v7182_v11 = vpack.c.bf16 %v12219_v52, %v12218_v26  ;;  %v5919_v56 = vpop.f32.mrb[9].mxu0  ;;  %v12232_v26 = vld [vmem:[#allocation106_spill] sm:$0xff] }
 0x563   :  { %v7176_v58 = vpack.c.bf16 %v12213_v59, %v12212_v29  ;;  %v5920_v18 = vadd.f32 %v5919_v56, %v5918_v9  ;;  %v12230_v59 = vld [vmem:[#allocation103_spill] sm:$0xff] }
 0x564   :  { %4338 = vmatmul.mubr.f32.gmra.mrb[110].mxu0 %v10340_v63  ;;  %v12216_v63 = vand.u32 4294901760, %v12181_v21 }
 0x565   :  { %7173 = vmatpush3.bf16.msra.mxu0 %v7172_v49  ;;  %4343 = vmatprep.mubr.f32.mxu0 %v10353_v42  ;;  %v12217_v42 = vand.u32 4294901760, %v12182_v3  ;;  %v12222_v3 = vand.u32 4294901760, %v12189_v27  ;;  %v5921_v17 = vpop.f32.mrb[10].mxu0 }
 0x566   :  { %7175 = vmatprep.subr.bf16.mxu0 %v7174_v19  ;;  %v5922_v36 = vpop.f32.mrb[11].mxu0 }
 0x567   :  { %v7180_v15 = vpack.c.bf16 %v12217_v42, %v12216_v63  ;;  %v7186_v32 = vpack.c.bf16 %v12223_v57, %v12222_v3  ;;  %v12231_v42 = vld [vmem:[#allocation105_spill] sm:$0xff] }
 0x568   :  { %4346 = vmatmul.mubr.f32.gmra.mrb[112].mxu0 %v10378_v44  ;;  %v12220_v44 = vand.u32 4294901760, %v12187_v40  ;;  %v12225_v40 = vand.u32 4294901760, %v12193_v4  ;;  %v12234_v57 = vld [vmem:[#allocation17_spill] sm:$0xff] }
 0x569   :  { %7177 = vmatpush3.bf16.msra.mxu0 %v7176_v58  ;;  %4352 = vmatprep.mubr.f32.mxu0 %v10391_v12  ;;  %v12221_v12 = vand.u32 4294901760, %v12188_v23 }
 0x56a   :  { %7179 = vmatprep.subr.bf16.mxu0 %v7178_v53 }
 0x56b   :  { %v7184_v21 = vpack.c.bf16 %v12221_v12, %v12220_v44  ;;  %v5862_v5 = vpop.f32.mrb[24].mxu1  ;;  %v5924_v61 = vpop.f32.mrb[12].mxu0  ;;  %v12233_v12 = vld [vmem:[#allocation108_spill] sm:$0xff] }
 0x56c   :  { %4355 = vmatmul.mubr.f32.gmra.mrb[114].mxu0 %v10416_v33  ;;  %v5923_v33 = vadd.f32 %v5922_v36, %v5921_v17  ;;  %v5863_v27 = vpop.f32.mrb[25].mxu1  ;;  %v5925_v0 = vpop.f32.mrb[13].mxu0 }
 0x56d   :  { %7181 = vmatpush3.bf16.msra.mxu0 %v7180_v15  ;;  %4361 = vmatprep.mubr.f32.mxu0 %v10429_v48  ;;  %v12224_v48 = vand.u32 4294901760, %v12192_v34  ;;  %v5926_v55 = vadd.f32 %v5925_v0, %v5924_v61  ;;  %v12236_v0 = vld [vmem:[#allocation62_spill] sm:$0xff] }
 0x56e   :  { %7183 = vmatprep.subr.bf16.mxu0 %v7182_v11 }
 0x56f   :  { %v7188_v23 = vpack.c.bf16 %v12225_v40, %v12224_v48 }
 0x570   :  { %4364 = vmatmul.mubr.f32.gmra.mrb[116].mxu0 %v10450_v13  ;;  %v5864_v13 = vadd.f32 %v5863_v27, %v5862_v5  ;;  %v5927_v34 = vpop.f32.mrb[14].mxu0  ;;  %v5865_v4 = vpop.f32.mrb[26].mxu1  ;;  %v12235_v5 = vld [vmem:[#allocation18_spill] sm:$0xff] }
 0x571   :  { %7185 = vmatpush3.bf16.msra.mxu0 %v7184_v21  ;;  %4370 = vmatprep.mubr.f32.mxu0 %v10463_v25  ;;  %v5928_v51 = vpop.f32.mrb[15].mxu0  ;;  %v5866_v41 = vpop.f32.mrb[27].mxu1 }
 0x572   :  { %7187 = vmatprep.subr.bf16.mxu0 %v7186_v32  ;;  %v2807_v25 = vadd.f32 %v5864_v13, %v10747_v16  ;;  %v5867_v1 = vadd.f32 %v5866_v41, %v5865_v4  ;;  %v12237_v51 = vld [vmem:[#allocation15_spill] sm:$0xff] }
 0x574   :  { %4373 = vmatmul.mubr.f32.gmra.mrb[118].mxu0 %v10480_v22  ;;  %v3110_v28 = vadd.f32 %v5920_v18, %v2807_v25  ;;  %v5930_v10 = vpop.f32.mrb[16].mxu0  ;;  %v2822_v22 = vadd.f32 %v5867_v1, %v10747_v16  ;;  %v12238_v1 = vmov 0.0  }
 0x575   :  { %7189 = vmatpush3.bf16.msra.mxu0 %v7188_v23  ;;  %4657 = vmatprep.mubr.f32.mxu0 %v9974_v24  ;;  %v5931_v7 = vpop.f32.mrb[17].mxu0 }
 0x576   :  { %v5868_v20 = vpop.f32.mrb[28].mxu1  ;;  %v5932_v38 = vadd.f32 %v5931_v7, %v5930_v10  ;;  %v3117_v6 = vadd.f32 %v5923_v33, %v2822_v22 }
 0x577   :  { %v5869_v24 = vpop.f32.mrb[29].mxu1 }
 0x578   :  { %4659 = vmatmul.mubr.f32.vlgmr.msra.gmra.mrb[120].mxu0 %v9987_v2  ;;  %v5870_v43 = vadd.f32 %v5869_v24, %v5868_v20 }
 0x579   :  { %4664 = vmatprep.mubr.f32.mxu0 %v9999_v31  ;;  %v5933_v35 = vpop.f32.mrb[18].mxu0 }
 0x57a   :  { %v2837_v2 = vadd.f32 %v5870_v43, %v10747_v16  ;;  %v5871_v8 = vpop.f32.mrb[30].mxu1  ;;  %v5934_v31 = vpop.f32.mrb[19].mxu0 }
 0x57b   :  { %v5872_v60 = vpop.f32.mrb[31].mxu1  ;;  %v5935_v54 = vadd.f32 %v5934_v31, %v5933_v35 }
 0x57c   :  { %4666 = vmatmul.mubr.f32.gmra.mrb[122].mxu0 %v10026_v50  ;;  %v3124_v62 = vadd.f32 %v5926_v55, %v2837_v2 }
 0x57d   :  { %4671 = vmatprep.mubr.f32.mxu0 %v12226_v45 }
 0x57e   :  { %v5936_v49 = vpop.f32.mrb[20].mxu0 }
 0x57f   :  { %v5874_v50 = vpop.f32.mrb[32].mxu1  ;;  %v5937_v37 = vpop.f32.mrb[21].mxu0 }
 0x580   :  { %4673 = vmatmul.mubr.f32.gmra.mrb[124].mxu0 %v12227_v39  ;;  %v5875_v19 = vpop.f32.mrb[33].mxu1  ;;  %v5938_v29 = vadd.f32 %v5937_v37, %v5936_v49 }
 0x581   :  { %4678 = vmatprep.mubr.f32.mxu0 %v12228_v47  ;;  %v5876_v58 = vadd.f32 %v5875_v19, %v5874_v50 }
 0x583   :  { %v5939_v46 = vpop.f32.mrb[22].mxu0  ;;  %v2866_v30 = vadd.f32 %v5876_v58, %v10747_v16 }
 0x584   :  { %4680 = vmatmul.mubr.f32.gmra.mrb[126].mxu0 %v12229_v14  ;;  %v5877_v53 = vpop.f32.mrb[34].mxu1  ;;  %v5940_v63 = vpop.f32.mrb[23].mxu0 }
 0x585   :  { %4684 = vmatprep.mubr.f32.mxu0 %v12230_v59  ;;  %v5878_v15 = vpop.f32.mrb[35].mxu1  ;;  %v3137_v11 = vadd.f32 %v5932_v38, %v2866_v30 }
 0x586   :  { %v5879_v52 = vadd.f32 %v5878_v15, %v5877_v53 }
 0x588   :  { %4686 = vmatmul.mubr.f32.gmra.mrb[128].mxu0 %v12231_v42  ;;  %v2881_v56 = vadd.f32 %v5879_v52, %v10747_v16 }
 0x589   :  { %4691 = vmatprep.mubr.f32.mxu0 %v12232_v26  ;;  %v5880_v18 = vpop.f32.mrb[36].mxu1 }
 0x58a   :  { %v5974_v9 = vpop.f32.mrb[24].mxu0  ;;  %v5881_v21 = vpop.f32.mrb[37].mxu1  ;;  %v3144_v17 = vadd.f32 %v5935_v54, %v2881_v56 }
 0x58b   :  { %v5975_v44 = vpop.f32.mrb[25].mxu0  ;;  %v5882_v32 = vadd.f32 %v5881_v21, %v5880_v18 }
 0x58c   :  { %4693 = vmatmul.mubr.f32.gmra.mrb[130].mxu0 %v12233_v12  ;;  %v5976_v3 = vadd.f32 %v5975_v44, %v5974_v9 }
 0x58d   :  { %4698 = vmatprep.mubr.f32.mxu0 %v12234_v57  ;;  %v2896_v48 = vadd.f32 %v5882_v32, %v10747_v16  ;;  %v5883_v40 = vpop.f32.mrb[38].mxu1 }
 0x58e   :  { %v3263_v36 = vadd.f32 %v5976_v3, %v3110_v28  ;;  %v5977_v33 = vpop.f32.mrb[26].mxu0  ;;  %v5884_v61 = vpop.f32.mrb[39].mxu1 }
 0x58f   :  { %v5978_v23 = vpop.f32.mrb[27].mxu0  ;;  %v3151_v13 = vadd.f32 %v5938_v29, %v2896_v48 }
 0x590   :  { %4700 = vmatmul.mubr.f32.gmra.mrb[132].mxu0 %v12235_v5  ;;  %v5979_v27 = vadd.f32 %v5978_v23, %v5977_v33 }
 0x591   :  { %4705 = vmatprep.mubr.f32.mxu0 %v12236_v0  ;;  %v6254_v34 = vpop.f32.mrb[40].mxu1 }
 0x592   :  { %v3272_v55 = vadd.f32 %v5979_v27, %v3117_v6  ;;  %v5980_v25 = vpop.f32.mrb[28].mxu0  ;;  %v6255_v28 = vpop.f32.mrb[41].mxu1 }
 0x593   :  { %v5981_v4 = vpop.f32.mrb[29].mxu0  ;;  %v10773_v16 = vadd.f32 %v6255_v28, %v6254_v34 }
 0x594   :  { %4707 = vmatmul.mubr.f32.gmra.mrb[134].mxu0 %v12237_v51  ;;  %v5982_v41 = vadd.f32 %v5981_v4, %v5980_v25 }
 0x595   :  { %5147 = vmatprep.mubr.f32.mxu0 %v12238_v1  ;;  %v6257_v20 = vpop.f32.mrb[42].mxu1  ;;  %v10959_v1 = vld [vmem:[%s11347_s7 + $0x40] sm:$0xff] }
 0x596   :  { %v3281_v10 = vadd.f32 %v5982_v41, %v3124_v62  ;;  %v5983_v22 = vpop.f32.mrb[30].mxu0  ;;  %v6258_v24 = vpop.f32.mrb[43].mxu1 }
 0x597   :  { %v5984_v7 = vpop.f32.mrb[31].mxu0  ;;  %v10775_v38 = vadd.f32 %v6258_v24, %v6257_v20 }
 0x599   :  { %v6260_v43 = vpop.f32.mrb[44].mxu1 }
 0x59a   :  { %v5986_v45 = vpop.f32.mrb[32].mxu0  ;;  %v6261_v2 = vpop.f32.mrb[45].mxu1 }
 0x59b   :  { %v5987_v6 = vpop.f32.mrb[33].mxu0  ;;  %v10777_v8 = vadd.f32 %v6261_v2, %v6260_v43 }
 0x59c   :  { %v5988_v35 = vadd.f32 %v5987_v6, %v5986_v45 }
 0x59d   :  { %v6263_v60 = vpop.f32.mrb[46].mxu1 }
 0x59e   :  { %v3298_v31 = vadd.f32 %v5988_v35, %v3137_v11  ;;  %v5989_v39 = vpop.f32.mrb[34].mxu0  ;;  %v6264_v49 = vpop.f32.mrb[47].mxu1 }
 0x59f   :  { %v5990_v54 = vpop.f32.mrb[35].mxu0 }
 0x5a0   :  { %v5991_v47 = vadd.f32 %v5990_v54, %v5989_v39 }
 0x5a1   :  { %v6266_v37 = vpop.f32.mrb[48].mxu1 }
 0x5a2   :  { %v3307_v62 = vadd.f32 %v5991_v47, %v3144_v17  ;;  %v5992_v50 = vpop.f32.mrb[36].mxu0  ;;  %v6267_v29 = vpop.f32.mrb[49].mxu1 }
 0x5a3   :  { %v5993_v14 = vpop.f32.mrb[37].mxu0  ;;  %v10779_v59 = vadd.f32 %v6267_v29, %v6266_v37 }
 0x5a4   :  { %v5994_v19 = vadd.f32 %v5993_v14, %v5992_v50 }
 0x5a5   :  { %v6269_v30 = vpop.f32.mrb[50].mxu1 }
 0x5a6   :  { %v3316_v58 = vadd.f32 %v5994_v19, %v3151_v13  ;;  %v5995_v46 = vpop.f32.mrb[38].mxu0  ;;  %v6270_v63 = vpop.f32.mrb[51].mxu1 }
 0x5a7   :  { %v5996_v53 = vpop.f32.mrb[39].mxu0  ;;  %v10781_v42 = vadd.f32 %v6270_v63, %v6269_v30 }
 0x5a9   :  { %v6272_v26 = vpop.f32.mrb[52].mxu1 }
 0x5aa   :  { %v6030_v15 = vpop.f32.mrb[40].mxu0  ;;  %v6273_v9 = vpop.f32.mrb[53].mxu1 }
 0x5ab   :  { %v6031_v52 = vpop.f32.mrb[41].mxu0  ;;  %v10783_v56 = vadd.f32 %v6273_v9, %v6272_v26 }
 0x5ac   :  { %v6032_v11 = vadd.f32 %v6031_v52, %v6030_v15 }
 0x5ad   :  { %v6275_v12 = vpop.f32.mrb[54].mxu1 }
 0x5ae   :  { %v3400_v18 = vadd.f32 %v6032_v11, %v3263_v36  ;;  %v6033_v44 = vpop.f32.mrb[42].mxu0  ;;  %v6276_v57 = vpop.f32.mrb[55].mxu1 }
 0x5af   :  { %v6034_v21 = vpop.f32.mrb[43].mxu0 }
 0x5b0   :  { %v6035_v3 = vadd.f32 %v6034_v21, %v6033_v44 }
 0x5b2   :  { %v3411_v32 = vadd.f32 %v6035_v3, %v3272_v55  ;;  %v6036_v17 = vpop.f32.mrb[44].mxu0 }
 0x5b3   :  { %v6037_v33 = vpop.f32.mrb[45].mxu0 }
 0x5b4   :  { %v6366_v48 = vpop.f32.mrb[56].mxu1  ;;  %v6038_v40 = vadd.f32 %v6037_v33, %v6036_v17 }
 0x5b5   :  { %v6367_v23 = vpop.f32.mrb[57].mxu1 }
 0x5b6   :  { %v3422_v5 = vadd.f32 %v6038_v40, %v3281_v10  ;;  %v10785_v61 = vadd.f32 %v6367_v23, %v6366_v48  ;;  %v6039_v27 = vpop.f32.mrb[46].mxu0 }
 0x5b7   :  { %v6040_v0 = vpop.f32.mrb[47].mxu0 }
 0x5b8   :  { %v6369_v13 = vpop.f32.mrb[58].mxu1 }
 0x5b9   :  { %v6370_v25 = vpop.f32.mrb[59].mxu1 }
 0x5ba   :  { %v10787_v34 = vadd.f32 %v6370_v25, %v6369_v13  ;;  %v6042_v36 = vpop.f32.mrb[48].mxu0 }
 0x5bb   :  { %v6043_v4 = vpop.f32.mrb[49].mxu0 }
 0x5bc   :  { %v6372_v51 = vpop.f32.mrb[60].mxu1  ;;  %v6044_v41 = vadd.f32 %v6043_v4, %v6042_v36 }
 0x5bd   :  { %v6373_v28 = vpop.f32.mrb[61].mxu1 }
 0x5be   :  { %v3443_v55 = vadd.f32 %v6044_v41, %v3298_v31  ;;  %v10789_v22 = vadd.f32 %v6373_v28, %v6372_v51  ;;  %v6045_v20 = vpop.f32.mrb[50].mxu0 }
 0x5bf   :  { %v6046_v7 = vpop.f32.mrb[51].mxu0 }
 0x5c0   :  { %v6375_v24 = vpop.f32.mrb[62].mxu1  ;;  %v6047_v10 = vadd.f32 %v6046_v7, %v6045_v20 }
 0x5c1   :  { %v6376_v45 = vpop.f32.mrb[63].mxu1 }
 0x5c2   :  { %v3454_v43 = vadd.f32 %v6047_v10, %v3307_v62 }
 0x5c3   :  { %v6048_v6 = vpop.f32.mrb[52].mxu0 }
 0x5c4   :  { %v6049_v35 = vpop.f32.mrb[53].mxu0 }
 0x5c5   :  { %v6378_v2 = vpop.f32.mrb[64].mxu1  ;;  %v6050_v39 = vadd.f32 %v6049_v35, %v6048_v6 }
 0x5c6   :  { %v6379_v60 = vpop.f32.mrb[65].mxu1 }
 0x5c7   :  { %v3465_v54 = vadd.f32 %v6050_v39, %v3316_v58  ;;  %v10791_v47 = vadd.f32 %v6379_v60, %v6378_v2  ;;  %v6051_v49 = vpop.f32.mrb[54].mxu0 }
 0x5c8   :  { %v6052_v50 = vpop.f32.mrb[55].mxu0 }
 0x5c9   :  { %v6381_v37 = vpop.f32.mrb[66].mxu1 }
 0x5ca   :  { %v6382_v31 = vpop.f32.mrb[67].mxu1 }
 0x5cb   :  { %v10793_v14 = vadd.f32 %v6382_v31, %v6381_v37  ;;  %v6086_v19 = vpop.f32.mrb[56].mxu0  ;;  %v4860_v31 = vld [vmem:[%s11347_s7] sm:$0xff] }
 0x5cc   :  { %v6087_v29 = vpop.f32.mrb[57].mxu0 }
 0x5cd   :  { %v6384_v46 = vpop.f32.mrb[68].mxu1  ;;  %v6088_v30 = vadd.f32 %v6087_v29, %v6086_v19 }
 0x5ce   :  { %v6385_v53 = vpop.f32.mrb[69].mxu1 }
 0x5cf   :  { %v3611_v62 = vadd.f32 %v6088_v30, %v3400_v18  ;;  %v10795_v63 = vadd.f32 %v6385_v53, %v6384_v46  ;;  %v6089_v15 = vpop.f32.mrb[58].mxu0  ;;  %v4873_v46 = vunpack.c.h.bf16 %v4860_v31  ;;  %v4872_v30 = vunpack.c.l.bf16 %v4860_v31 }
 0x5d0   :  { %v6090_v26 = vpop.f32.mrb[59].mxu0 }
 0x5d1   :  { %v6387_v52 = vpop.f32.mrb[70].mxu1  ;;  %v6091_v58 = vadd.f32 %v6090_v26, %v6089_v15 }
 0x5d2   :  { %v6388_v11 = vpop.f32.mrb[71].mxu1 }
 0x5d3   :  { %v10797_v9 = vadd.f32 %v6091_v58, %v3411_v32  ;;  %v6092_v44 = vpop.f32.mrb[60].mxu0  ;;  %v10823_v58 = vsub.f32 %v4873_v46, %v4873_v46 }
 0x5d4   :  { %v6093_v12 = vpop.f32.mrb[61].mxu0 }
 0x5d5   :  { %v6478_v21 = vpop.f32.mrb[72].mxu1  ;;  %v6094_v3 = vadd.f32 %v6093_v12, %v6092_v44  ;;  %v10827_v44 = vsub.f32 %v4872_v30, %v4872_v30  ;;  %v10870_v30 = vld [vmem:[%s11347_s7 + $0x20] sm:$0xff] }
 0x5d6   :  { %v6479_v57 = vpop.f32.mrb[73].mxu1 }
 0x5d7   :  { %v10799_v17 = vadd.f32 %v6094_v3, %v3422_v5  ;;  %v10801_v33 = vadd.f32 %v6479_v57, %v6478_v21  ;;  %v6095_v48 = vpop.f32.mrb[62].mxu0 }
 0x5d8   :  { %v6096_v18 = vpop.f32.mrb[63].mxu0 }
 0x5d9   :  { %12239 = vst [vmem:[#allocation63_spill] sm:$0xff] %v10801_v33  ;;  %v6481_v40 = vpop.f32.mrb[74].mxu1  ;;  %v11683_v18 = vand.u32 4294901760, %v10823_v58 }
 0x5da   :  { %v6482_v23 = vpop.f32.mrb[75].mxu1 }
 0x5db   :  { %v10803_v27 = vadd.f32 %v6482_v23, %v6481_v40  ;;  %v6098_v0 = vpop.f32.mrb[64].mxu0 }
 0x5dc   :  { %v6099_v13 = vpop.f32.mrb[65].mxu0 }
 0x5dd   :  { %12240 = vst [vmem:[#allocation72_spill] sm:$0xff] %v10803_v27  ;;  %v6484_v25 = vpop.f32.mrb[76].mxu1  ;;  %v6100_v32 = vadd.f32 %v6099_v13, %v6098_v0  ;;  %v11680_v0 = vand.u32 4294901760, %v10827_v44 }
 0x5de   :  { %v6485_v36 = vpop.f32.mrb[77].mxu1 }
 0x5df   :  { %v10805_v4 = vadd.f32 %v6100_v32, %v3443_v55  ;;  %v10807_v51 = vadd.f32 %v6485_v36, %v6484_v25  ;;  %v6101_v41 = vpop.f32.mrb[66].mxu0  ;;  %v4989_v36 = vsub.f32 %v10823_v58, %v11683_v18 }
 0x5e0   :  { %v6102_v5 = vpop.f32.mrb[67].mxu0 }
 0x5e1   :  { %12241 = vst [vmem:[#allocation6_spill] sm:$0xff] %v10807_v51  ;;  %v6487_v28 = vpop.f32.mrb[78].mxu1  ;;  %v6103_v20 = vadd.f32 %v6102_v5, %v6101_v41  ;;  %v4994_v5 = vsub.f32 %v10827_v44, %v11680_v0 }
 0x5e2   :  { %v6488_v7 = vpop.f32.mrb[79].mxu1 }
 0x5e3   :  { %v10809_v24 = vadd.f32 %v6103_v20, %v3454_v43  ;;  %v6104_v10 = vpop.f32.mrb[68].mxu0  ;;  %v4861_v43 = vld [vmem:[%s11347_s7 + $0x8] sm:$0xff] }
 0x5e4   :  { %v6105_v45 = vpop.f32.mrb[69].mxu0  ;;  %v4874_v15 = vunpack.c.l.bf16 %v4861_v43 }
 0x5e5   :  { %v6490_v6 = vpop.f32.mrb[80].mxu1  ;;  %v6106_v35 = vadd.f32 %v6105_v45, %v6104_v10  ;;  %v4990_v10 = vand.u32 4294901760, %v4989_v36  ;;  %v4880_v36 = vunpack.c.l.bf16 %v10870_v30 }
 0x5e6   :  { %v6491_v2 = vpop.f32.mrb[81].mxu1  ;;  %v10829_v21 = vsub.f32 %v4874_v15, %v4874_v15 }
 0x5e7   :  { %v10811_v39 = vadd.f32 %v6106_v35, %v3465_v54  ;;  %v10813_v60 = vadd.f32 %v6491_v2, %v6490_v6  ;;  %v6107_v55 = vpop.f32.mrb[70].mxu0  ;;  %v4875_v54 = vunpack.c.h.bf16 %v4861_v43  ;;  %v4995_v35 = vand.u32 4294901760, %v4994_v5 }
 0x5e8   :  { %v6108_v49 = vpop.f32.mrb[71].mxu0  ;;  %v11679_v13 = vand.u32 4294901760, %v10829_v21 }
 0x5e9   :  { %12242 = vst [vmem:[#allocation9_spill] sm:$0xff] %v10813_v60  ;;  %v6493_v50 = vpop.f32.mrb[82].mxu1  ;;  %v10825_v11 = vsub.f32 %v4875_v54, %v4875_v54  ;;  %v10865_v54 = vld [vmem:[%s11347_s7 + $0x18] sm:$0xff] }
 0x5ea   :  { %v6494_v37 = vpop.f32.mrb[83].mxu1  ;;  %v5004_v28 = vsub.f32 %v10829_v21, %v11679_v13 }
 0x5eb   :  { %v10821_v19 = vadd.f32 %v6494_v37, %v6493_v50  ;;  %v6142_v29 = vpop.f32.mrb[72].mxu0  ;;  %v11682_v40 = vand.u32 4294901760, %v10825_v11 }
 0x5ec   :  { %v6143_v53 = vpop.f32.mrb[73].mxu0  ;;  %v5005_v2 = vand.u32 4294901760, %v5004_v28 }
 0x5ed   :  { %12243 = vst [vmem:[#allocation81_spill] sm:$0xff] %v10821_v19  ;;  %v6496_v26 = vpop.f32.mrb[84].mxu1  ;;  %v6144_v52 = vadd.f32 %v6143_v53, %v6142_v29  ;;  %v10874_v53 = vcombine.low %v4860_v31, %v4861_v43 }
 0x5ee   :  { %v6497_v12 = vpop.f32.mrb[85].mxu1  ;;  %v7248_v50 = vpack.c.bf16 %v5005_v2, %v4995_v35  ;;  %v10905_v35 = vsub.f32 %v4880_v36, %v4880_v36 }
 0x5ef   :  { %v10831_v3 = vadd.f32 %v6144_v52, %v3611_v62  ;;  %v10833_v57 = vadd.f32 %v6497_v12, %v6496_v26  ;;  %v6145_v48 = vpop.f32.mrb[74].mxu0  ;;  %v4999_v62 = vsub.f32 %v10825_v11, %v11682_v40  ;;  %12246 = vst [vmem:[#allocation10_spill] sm:$0xff] %v10874_v53  ;;  %v4879_v12 = vunpack.c.h.bf16 %v10865_v54 }
 0x5f0   :  { %v6146_v23 = vpop.f32.mrb[75].mxu0 }
 0x5f1   :  { %12244 = vst [vmem:[#allocation19_spill] sm:$0xff] %v10833_v57  ;;  %v6499_v25 = vpop.f32.mrb[86].mxu1  ;;  %v6147_v32 = vadd.f32 %v6146_v23, %v6145_v48  ;;  %v5000_v45 = vand.u32 4294901760, %v4999_v62  ;;  %v4878_v23 = vunpack.c.l.bf16 %v10865_v54  ;;  %v10894_v28 = vsub.f32 %v4879_v12, %v4879_v12 }
 0x5f2   :  { %v6500_v41 = vpop.f32.mrb[87].mxu1  ;;  %v10885_v25 = vld [vmem:[%s11347_s7 + $0x28] sm:$0xff] }
 0x5f3   :  { %v10852_v20 = vadd.f32 %v6147_v32, %v10797_v9  ;;  %v6148_v7 = vpop.f32.mrb[76].mxu0  ;;  %v7246_v49 = vpack.c.bf16 %v5000_v45, %v4990_v10  ;;  %v10860_v9 = vld [vmem:[%s11347_s7 + $0x10] sm:$0xff]  ;;  %v4882_v62 = vunpack.c.l.bf16 %v10885_v25  ;;  %v10899_v10 = vsub.f32 %v4878_v23, %v4878_v23 }
 0x5f4   :  { %v6149_v6 = vpop.f32.mrb[77].mxu0  ;;  %v4877_v52 = vunpack.c.h.bf16 %v10860_v9  ;;  %v4876_v48 = vunpack.c.l.bf16 %v10860_v9 }
 0x5f5   :  { %v6150_v55 = vadd.f32 %v6149_v6, %v6148_v7  ;;  %7247 = vmatprep.subr.bf16.mxu0 %v7246_v49 }
 0x5f6   :  { %7249 = vmatpush1.bf16.msra.mxu0 %v7248_v50  ;;  %v10892_v5 = vsub.f32 %v4877_v52, %v4877_v52  ;;  %v10896_v7 = vsub.f32 %v4876_v48, %v4876_v48  ;;  %v11675_v50 = vand.u32 4294901760, %v10894_v28  ;;  %v11681_v48 = vand.u32 4294901760, %v10905_v35 }
 0x5f7   :  { %v10855_v37 = vadd.f32 %v6150_v55, %v10799_v17  ;;  %v6151_v29 = vpop.f32.mrb[78].mxu0  ;;  %v10872_v17 = vcombine.high %v4860_v31, %v4861_v43  ;;  %v4881_v31 = vunpack.c.h.bf16 %v10870_v30  ;;  %v4883_v43 = vunpack.c.h.bf16 %v10885_v25 }
 0x5f8   :  { %v6152_v46 = vpop.f32.mrb[79].mxu0  ;;  %v11676_v49 = vand.u32 4294901760, %v10892_v5  ;;  %v11673_v29 = vand.u32 4294901760, %v10896_v7 }
 0x5f9   :  { %12245 = vst [vmem:[#allocation21_spill] sm:$0xff] %v10872_v17  ;;  %7223 = vmatprep.subr.bf16.mxu1 %v10872_v17  ;;  %v10901_v45 = vsub.f32 %v4881_v31, %v4881_v31  ;;  %v10903_v6 = vsub.f32 %v4883_v43, %v4883_v43  ;;  %v10951_v17 = vsub.f32 %v4882_v62, %v4882_v62 }
 0x5fa   :  { %7225 = vmatpush1.bf16.msra.mxu1 %v10874_v53  ;;  %v5014_v31 = vsub.f32 %v10896_v7, %v11673_v29 }
 0x5fb   :  { %v6154_v26 = vpop.f32.mrb[80].mxu0  ;;  %v11677_v52 = vand.u32 4294901760, %v10901_v45  ;;  %v11678_v12 = vand.u32 4294901760, %v10903_v6  ;;  %v11688_v62 = vand.u32 4294901760, %v10951_v17 }
 0x5fc   :  { %v6155_v32 = vpop.f32.mrb[81].mxu0 }
 0x5fd   :  { %v6156_v41 = vadd.f32 %v6155_v32, %v6154_v26  ;;  %v11674_v26 = vand.u32 4294901760, %v10899_v10  ;;  %v5019_v32 = vsub.f32 %v10894_v28, %v11675_v50  ;;  %v5029_v36 = vsub.f32 %v10901_v45, %v11677_v52 }
 0x5fe   :  { %v5015_v52 = vand.u32 4294901760, %v5014_v31 }
 0x5ff   :  { %v10908_v2 = vadd.f32 %v6156_v41, %v10805_v4  ;;  %v6157_v55 = vpop.f32.mrb[82].mxu0  ;;  %v5009_v4 = vsub.f32 %v10892_v5, %v11676_v49  ;;  %v5024_v43 = vsub.f32 %v10899_v10, %v11674_v26  ;;  %v5039_v41 = vsub.f32 %v10903_v6, %v11678_v12  ;;  %v10949_v12 = vld [vmem:[%s11347_s7 + $0x38] sm:$0xff] }
 0x600   :  { %v6158_v46 = vpop.f32.mrb[83].mxu0  ;;  %v5020_v49 = vand.u32 4294901760, %v5019_v32  ;;  %v4887_v32 = vunpack.c.h.bf16 %v10949_v12 }
 0x601   :  { %v6159_v23 = vadd.f32 %v6158_v46, %v6157_v55  ;;  %v5034_v55 = vsub.f32 %v10905_v35, %v11681_v48  ;;  %v10941_v46 = vld [vmem:[%s11347_s7 + $0x30] sm:$0xff]  ;;  %v5010_v50 = vand.u32 4294901760, %v5009_v4  ;;  %v5025_v0 = vand.u32 4294901760, %v5024_v43 }
 0x602   :  { %v5030_v48 = vand.u32 4294901760, %v5029_v36  ;;  %v5040_v40 = vand.u32 4294901760, %v5039_v41  ;;  %v4884_v31 = vunpack.c.l.bf16 %v10941_v46  ;;  %v4889_v41 = vunpack.c.h.bf16 %v10959_v1 }
 0x603   :  { %v10944_v29 = vadd.f32 %v6159_v23, %v10809_v24  ;;  %v6160_v26 = vpop.f32.mrb[84].mxu0  ;;  %v5035_v18 = vand.u32 4294901760, %v5034_v55  ;;  %v7250_v53 = vpack.c.bf16 %v5020_v49, %v5010_v50  ;;  %v4885_v24 = vunpack.c.h.bf16 %v10941_v46 }
 0x604   :  { %v6161_v13 = vpop.f32.mrb[85].mxu0  ;;  %v7252_v23 = vpack.c.bf16 %v5025_v0, %v5015_v52  ;;  %v7254_v4 = vpack.c.bf16 %v5040_v40, %v5030_v48  ;;  %v4886_v40 = vunpack.c.l.bf16 %v10949_v12  ;;  %v10971_v0 = vld [vmem:[%s11347_s7 + $0x48] sm:$0xff]  ;;  %v10975_v52 = vsub.f32 %v4884_v31, %v4884_v31 }
 0x605   :  { %v6162_v15 = vadd.f32 %v6161_v13, %v6160_v26  ;;  %7251 = vmatprep.subr.bf16.mxu0 %v7250_v53  ;;  %v10965_v49 = vsub.f32 %v4885_v24, %v4885_v24  ;;  %v10973_v26 = vsub.f32 %v4887_v32, %v4887_v32  ;;  %v10983_v53 = vcombine.low %v10860_v9, %v10865_v54 }
 0x606   :  { %7253 = vmatpush1.bf16.msra.mxu0 %v7252_v23  ;;  %v10989_v36 = vsub.f32 %v4886_v40, %v4886_v40  ;;  %v11695_v24 = vand.u32 4294901760, %v10975_v52 }
 0x607   :  { %v10962_v43 = vadd.f32 %v6162_v15, %v10811_v39  ;;  %v6163_v13 = vpop.f32.mrb[86].mxu0  ;;  %v10979_v39 = vcombine.high %v10860_v9, %v10865_v54  ;;  %12248 = vst [vmem:[#allocation22_spill] sm:$0xff] %v10983_v53  ;;  %7255 = vmatprep.subr.bf16.mxu0 %v7254_v4  ;;  %v5044_v15 = vsub.f32 %v10951_v17, %v11688_v62  ;;  %v11691_v48 = vand.u32 4294901760, %v10965_v49 }
 0x608   :  { %v6164_v50 = vpop.f32.mrb[87].mxu0  ;;  %v11694_v55 = vand.u32 4294901760, %v10973_v26  ;;  %v4891_v9 = vunpack.c.h.bf16 %v10971_v0  ;;  %v4888_v54 = vunpack.c.l.bf16 %v10959_v1  ;;  %v11002_v13 = vsub.f32 %v4889_v41, %v4889_v41 }
 0x609   :  { %12247 = vst [vmem:[#allocation82_spill] sm:$0xff] %v10979_v39  ;;  %7227 = vmatprep.subr.bf16.mxu1 %v10979_v39  ;;  %v5045_v4 = vand.u32 4294901760, %v5044_v15  ;;  %v5049_v32 = vsub.f32 %v10965_v49, %v11691_v48  ;;  %v5054_v62 = vsub.f32 %v10975_v52, %v11695_v24  ;;  %v4890_v39 = vunpack.c.l.bf16 %v10971_v0 }
 0x60a   :  { %7229 = vmatpush1.bf16.msra.mxu1 %v10983_v53  ;;  %v5059_v50 = vsub.f32 %v10973_v26, %v11694_v55  ;;  %v11010_v15 = vsub.f32 %v4891_v9, %v4891_v9  ;;  %v12249_v53 = vand.u32 4294901760, %v10989_v36  ;;  %v11699_v51 = vand.u32 4294901760, %v11002_v13 }
 0x60b   :  { %v6198_v23 = vpop.f32.mrb[88].mxu0  ;;  %v7256_v57 = vpack.c.bf16 %v5045_v4, %v5035_v18  ;;  %v5050_v31 = vand.u32 4294901760, %v5049_v32  ;;  %v5055_v60 = vand.u32 4294901760, %v5054_v62  ;;  %v11019_v33 = vsub.f32 %v4888_v54, %v4888_v54 }
 0x60c   :  { %v6199_v40 = vpop.f32.mrb[89].mxu0  ;;  %v5064_v41 = vsub.f32 %v10989_v36, %v12249_v53  ;;  %v5060_v19 = vand.u32 4294901760, %v5059_v50  ;;  %v11696_v55 = vand.u32 4294901760, %v11010_v15  ;;  %v5069_v53 = vsub.f32 %v11002_v13, %v11699_v51 }
 0x60d   :  { %v6200_v48 = vadd.f32 %v6199_v40, %v6198_v23  ;;  %7257 = vmatpush1.bf16.msra.mxu0 %v7256_v57  ;;  %v11021_v23 = vsub.f32 %v4890_v39, %v4890_v39  ;;  %v11036_v57 = vld [vmem:[%s11347_s7 + $0x50] sm:$0xff]  ;;  %v11698_v32 = vand.u32 4294901760, %v11019_v33 }
 0x60e   :  { %v5065_v9 = vand.u32 4294901760, %v5064_v41  ;;  %v7258_v4 = vpack.c.bf16 %v5060_v19, %v5050_v31  ;;  %v5079_v62 = vsub.f32 %v11010_v15, %v11696_v55  ;;  %v11041_v19 = vld [vmem:[%s11347_s7 + $0x58] sm:$0xff]  ;;  %v5070_v31 = vand.u32 4294901760, %v5069_v53 }
 0x60f   :  { %v3857_v27 = vadd.f32 %v6200_v48, %v10831_v3  ;;  %v6201_v24 = vpop.f32.mrb[90].mxu0  ;;  %v11031_v3 = vcombine.high %v10870_v30, %v10885_v25  ;;  %v11697_v50 = vand.u32 4294901760, %v11021_v23  ;;  %v11051_v41 = vcombine.low %v10870_v30, %v10885_v25 }
 0x610   :  { %v6202_v18 = vpop.f32.mrb[91].mxu0  ;;  %v7260_v54 = vpack.c.bf16 %v5065_v9, %v5055_v60  ;;  %7259 = vmatprep.subr.bf16.mxu0 %v7258_v4  ;;  %v5080_v40 = vand.u32 4294901760, %v5079_v62  ;;  %v4895_v60 = vunpack.c.h.bf16 %v11041_v19  ;;  %v4894_v30 = vunpack.c.l.bf16 %v11041_v19 }
 0x611   :  { %v6203_v39 = vadd.f32 %v6202_v18, %v6201_v24  ;;  %v11044_v48 = vadd.f32 %v10773_v16, %v3857_v27  ;;  %7231 = vmatprep.subr.bf16.mxu1 %v11031_v3  ;;  %12250 = vst [vmem:[#allocation20_spill] sm:$0xff] %v11051_v41  ;;  %v5074_v16 = vsub.f32 %v11019_v33, %v11698_v32  ;;  %v4893_v27 = vunpack.c.h.bf16 %v11036_v57 }
 0x612   :  { %7261 = vmatpush1.bf16.msra.mxu0 %v7260_v54  ;;  %v7262_v18 = vpack.c.bf16 %v5080_v40, %v5070_v31  ;;  %v5084_v4 = vsub.f32 %v11021_v23, %v11697_v50  ;;  %7233 = vmatpush1.bf16.msra.mxu1 %v11051_v41  ;;  %v11070_v31 = vsub.f32 %v4895_v60, %v4895_v60 }
 0x613   :  { %v3872_v55 = vadd.f32 %v6203_v39, %v10852_v20  ;;  %v6204_v24 = vpop.f32.mrb[92].mxu0  ;;  %v4892_v20 = vunpack.c.l.bf16 %v11036_v57  ;;  %v5075_v62 = vand.u32 4294901760, %v5074_v16  ;;  %v11068_v39 = vsub.f32 %v4893_v27, %v4893_v27 }
 0x614   :  { %v6205_v9 = vpop.f32.mrb[93].mxu0  ;;  %7263 = vmatprep.subr.bf16.mxu0 %v7262_v18  ;;  %v5085_v54 = vand.u32 4294901760, %v5084_v4  ;;  %v11074_v50 = vsub.f32 %v4894_v30, %v4894_v30  ;;  %v11704_v27 = vand.u32 4294901760, %v11070_v31  ;;  %v11115_v30 = vcombine.low %v10959_v1, %v10971_v0 }
 0x615   :  { %v6206_v25 = vadd.f32 %v6205_v9, %v6204_v24  ;;  %v11066_v53 = vadd.f32 %v10775_v38, %v3872_v55  ;;  %v11072_v40 = vsub.f32 %v4892_v20, %v4892_v20  ;;  %v5088_v41 = vand.u32 4294901760, %v11068_v39 }
 0x616   :  { %v11080_v38 = vcombine.high %v10941_v46, %v10949_v12  ;;  %v11084_v55 = vcombine.low %v10941_v46, %v10949_v12  ;;  %v7264_v16 = vpack.c.bf16 %v5085_v54, %v5075_v62  ;;  %v11702_v9 = vand.u32 4294901760, %v11074_v50 }
 0x617   :  { %v3887_v32 = vadd.f32 %v6206_v25, %v10855_v37  ;;  %v6207_v51 = vpop.f32.mrb[94].mxu0  ;;  %v11703_v60 = vand.u32 4294901760, %v11072_v40  ;;  %v5089_v37 = vsub.f32 %v11068_v39, %v5088_v41  ;;  %v11098_v12 = vcombine.high %v10959_v1, %v10971_v0 }
 0x618   :  { %v6208_v24 = vpop.f32.mrb[95].mxu0  ;;  %7235 = vmatprep.subr.bf16.mxu1 %v11080_v38  ;;  %7265 = vmatpush1.bf16.msra.mxu0 %v7264_v16  ;;  %v5099_v18 = vsub.f32 %v11070_v31, %v11704_v27  ;;  %v11121_v62 = vcombine.high %v11036_v57, %v11041_v19 }
 0x619   :  { %v11090_v51 = vadd.f32 %v10777_v8, %v3887_v32  ;;  %v5094_v8 = vsub.f32 %v11072_v40, %v11703_v60  ;;  %v5104_v32 = vsub.f32 %v11074_v50, %v11702_v9  ;;  %7237 = vmatpush1.bf16.msra.mxu1 %v11084_v55  ;;  %v5090_v20 = vand.u32 4294901760, %v5089_v37 }
 0x61a   :  { %7239 = vmatprep.subr.bf16.mxu1 %v11098_v12  ;;  %v5100_v24 = vand.u32 4294901760, %v5099_v18  ;;  %v11127_v60 = vcombine.low %v11036_v57, %v11041_v19 }
 0x61b   :  { %v6210_v4 = vpop.f32.mrb[96].mxu0  ;;  %v5095_v16 = vand.u32 4294901760, %v5094_v8  ;;  %v5105_v46 = vand.u32 4294901760, %v5104_v32 }
 0x61c   :  { %v6211_v54 = vpop.f32.mrb[97].mxu0  ;;  %v7266_v25 = vpack.c.bf16 %v5100_v24, %v5090_v20 }
 0x61d   :  { %v6212_v9 = vadd.f32 %v6211_v54, %v6210_v4  ;;  %v7268_v27 = vpack.c.bf16 %v5105_v46, %v5095_v16  ;;  %7241 = vmatpush1.bf16.msra.mxu1 %v11115_v30 }
 0x61e   :  { %7243 = vmatprep.subr.bf16.mxu1 %v11121_v62  ;;  %7267 = vmatprep.subr.bf16.mxu0 %v7266_v25 }
 0x61f   :  { %v3916_v32 = vadd.f32 %v6212_v9, %v10908_v2  ;;  %v6213_v57 = vpop.f32.mrb[98].mxu0  ;;  %7269 = vmatpush1.bf16.msra.mxu0 %v7268_v27  ;;  %v12251_v9 = vpack.c.bf16 %v10825_v11, %v10823_v58 }
 0x620   :  { %v6214_v20 = vpop.f32.mrb[99].mxu0 }
 0x621   :  { %v6215_v24 = vadd.f32 %v6214_v20, %v6213_v57  ;;  %v4187_v2 = vadd.f32 %v10779_v59, %v3916_v32  ;;  %7271 = vmatprep.subr.bf16.mxu0 %v12251_v9  ;;  %7245 = vmatpush1.bf16.msra.mxu1 %v11127_v60 }
 0x623   :  { %v3931_v16 = vadd.f32 %v6215_v24, %v10944_v29  ;;  %v6216_v4 = vpop.f32.mrb[100].mxu0  ;;  %v12252_v29 = vand.u32 4294901760, %v10823_v58  ;;  %v12253_v24 = vand.u32 4294901760, %v10825_v11  ;;  %v12258_v58 = vand.u32 4294901760, %v10896_v7 }
 0x624   :  { %v6217_v19 = vpop.f32.mrb[101].mxu0  ;;  %v12259_v11 = vand.u32 4294901760, %v10899_v10 }
 0x625   :  { %v6218_v46 = vadd.f32 %v6217_v19, %v6216_v4  ;;  %v4194_v25 = vadd.f32 %v10781_v42, %v3931_v16  ;;  %v11162_v19 = vpack.c.bf16 %v12253_v24, %v12252_v29  ;;  %v12254_v42 = vand.u32 4294901760, %v10827_v44 }
 0x626   :  { %v11181_v16 = vpack.c.bf16 %v12259_v11, %v12258_v58  ;;  %v12262_v29 = vand.u32 4294901760, %v10905_v35  ;;  %v12263_v24 = vand.u32 4294901760, %v10951_v17  ;;  %v12266_v11 = vand.u32 4294901760, %v10975_v52 }
 0x627   :  { %v3946_v8 = vadd.f32 %v6218_v46, %v10962_v43  ;;  %v6219_v54 = vpop.f32.mrb[102].mxu0  ;;  %v12255_v43 = vand.u32 4294901760, %v10829_v21  ;;  %v12256_v46 = vand.u32 4294901760, %v10892_v5 }
 0x628   :  { %v6220_v57 = vpop.f32.mrb[103].mxu0 }
 0x629   :  { %v4201_v59 = vadd.f32 %v10783_v56, %v3946_v8  ;;  %v11168_v4 = vpack.c.bf16 %v12255_v43, %v12254_v42  ;;  %v11195_v42 = vpack.c.bf16 %v12263_v24, %v12262_v29  ;;  %v12272_v29 = vand.u32 4294901760, %v11019_v33 }
 0x62a   :  { %v12273_v24 = vand.u32 4294901760, %v11021_v23 }
 0x62b   :  { %v6310_v27 = vpop.f32.mrb[104].mxu0 }
 0x62c   :  { %v6311_v32 = vpop.f32.mrb[105].mxu0 }
 0x62d   :  { %v6312_v20 = vadd.f32 %v6311_v32, %v6310_v27 }
 0x62f   :  { %v4313_v9 = vadd.f32 %v6312_v20, %v11044_v48  ;;  %v6313_v18 = vpop.f32.mrb[106].mxu0  ;;  %v12257_v48 = vand.u32 4294901760, %v10894_v28 }
 0x630   :  { %v6314_v0 = vpop.f32.mrb[107].mxu0 }
 0x631   :  { %v6315_v56 = vadd.f32 %v6314_v0, %v6313_v18  ;;  %v4450_v8 = vadd.f32 %v10785_v61, %v4313_v9  ;;  %v11175_v54 = vpack.c.bf16 %v12257_v48, %v12256_v46  ;;  %v12260_v61 = vand.u32 4294901760, %v10901_v45 }
 0x632   :  { %v12261_v18 = vand.u32 4294901760, %v10903_v6  ;;  %v12265_v48 = vand.u32 4294901760, %v10973_v26 }
 0x633   :  { %v4322_v57 = vadd.f32 %v6315_v56, %v11066_v53  ;;  %v6316_v27 = vpop.f32.mrb[108].mxu0 }
 0x634   :  { %v6317_v32 = vpop.f32.mrb[109].mxu0  ;;  %v11189_v9 = vpack.c.bf16 %v12261_v18, %v12260_v61 }
 0x635   :  { %v6318_v20 = vadd.f32 %v6317_v32, %v6316_v27  ;;  %v4461_v0 = vadd.f32 %v10787_v34, %v4322_v57  ;;  %v12264_v34 = vand.u32 4294901760, %v10965_v49  ;;  %v12267_v57 = vand.u32 4294901760, %v10989_v36 }
 0x637   :  { %v4331_v43 = vadd.f32 %v6318_v20, %v11090_v51  ;;  %v6319_v53 = vpop.f32.mrb[110].mxu0  ;;  %v11203_v58 = vpack.c.bf16 %v12265_v48, %v12264_v34  ;;  %v11209_v27 = vpack.c.bf16 %v12267_v57, %v12266_v11  ;;  %v12269_v51 = vand.u32 4294901760, %v11002_v13 }
 0x638   :  { %v6320_v56 = vpop.f32.mrb[111].mxu0  ;;  %v12270_v20 = vand.u32 4294901760, %v11010_v15  ;;  %v12275_v57 = vand.u32 4294901760, %v11070_v31 }
 0x639   :  { %v4472_v46 = vadd.f32 %v10789_v22, %v4331_v43  ;;  %12268 = vst [vmem:[#allocation11_spill] sm:$0xff] %v11209_v27  ;;  %v11221_v43 = vpack.c.bf16 %v12273_v24, %v12272_v29  ;;  %v12280_v27 = vld [vmem:[#allocation63_spill] sm:$0xff] }
 0x63a   :  { %v11215_v22 = vpack.c.bf16 %v12270_v20, %v12269_v51  ;;  %v12278_v51 = vand.u32 4294901760, %v11074_v50 }
 0x63b   :  { %v6322_v32 = vpop.f32.mrb[112].mxu0  ;;  %12274 = vst [vmem:[#allocation16_spill] sm:$0xff] %v11221_v43 }
 0x63c   :  { %v6323_v61 = vpop.f32.mrb[113].mxu0  ;;  %12271 = vst [vmem:[#allocation23_spill] sm:$0xff] %v11215_v22 }
 0x63d   :  { %v6324_v18 = vadd.f32 %v6323_v61, %v6322_v32  ;;  %v11228_v32 = vpack.c.bf16 %v12275_v57, %v5088_v41  ;;  %v12277_v61 = vand.u32 4294901760, %v11072_v40 }
 0x63f   :  { %v4348_v53 = vadd.f32 %v6324_v18, %v4187_v2  ;;  %v6325_v56 = vpop.f32.mrb[114].mxu0  ;;  %12276 = vst [vmem:[#allocation25_spill] sm:$0xff] %v11228_v32  ;;  %v11234_v20 = vpack.c.bf16 %v12278_v51, %v12277_v61 }
 0x640   :  { %v6326_v34 = vpop.f32.mrb[115].mxu0 }
 0x641   :  { %v6327_v48 = vadd.f32 %v6326_v34, %v6325_v56  ;;  %v4493_v11 = vadd.f32 %v10791_v47, %v4348_v53  ;;  %12279 = vst [vmem:[#allocation26_spill] sm:$0xff] %v11234_v20 }
 0x643   :  { %v4357_v29 = vadd.f32 %v6327_v48, %v4194_v25  ;;  %v6328_v24 = vpop.f32.mrb[116].mxu0 }
 0x644   :  { %v6329_v2 = vpop.f32.mrb[117].mxu0 }
 0x645   :  { %v6330_v18 = vadd.f32 %v6329_v2, %v6328_v24  ;;  %v4504_v56 = vadd.f32 %v10793_v14, %v4357_v29  ;;  %v12281_v2 = vld [vmem:[#allocation72_spill] sm:$0xff] }
 0x647   :  { %v4366_v34 = vadd.f32 %v6330_v18, %v4201_v59  ;;  %v6331_v47 = vpop.f32.mrb[118].mxu0 }
 0x648   :  { %v6332_v53 = vpop.f32.mrb[119].mxu0 }
 0x649   :  { %v4515_v1 = vadd.f32 %v10795_v63, %v4366_v34 }
 0x64b   :  { %v6422_v37 = vpop.f32.mrb[120].mxu0 }
 0x64c   :  { %v6423_v41 = vpop.f32.mrb[121].mxu0 }
 0x64d   :  { %v6424_v57 = vadd.f32 %v6423_v41, %v6422_v37 }
 0x64f   :  { %v4661_v32 = vadd.f32 %v6424_v57, %v4450_v8  ;;  %v6425_v43 = vpop.f32.mrb[122].mxu0  ;;  %v12282_v8 = vld [vmem:[#allocation6_spill] sm:$0xff] }
 0x650   :  { %v6426_v22 = vpop.f32.mrb[123].mxu0 }
 0x651   :  { %v4780_v61 = vadd.f32 %v12280_v27, %v4661_v32  ;;  %v6427_v51 = vadd.f32 %v6426_v22, %v6425_v43 }
 0x653   :  { %v4668_v25 = vadd.f32 %v6427_v51, %v4461_v0  ;;  %v6428_v48 = vpop.f32.mrb[124].mxu0  ;;  %v4830_v24 = vmax.f32 %v4780_v61, 0.0  ;;  %v12283_v51 = vld [vmem:[#allocation9_spill] sm:$0xff] }
 0x654   :  { %v6429_v20 = vpop.f32.mrb[125].mxu0 }
 0x655   :  { %v4787_v14 = vadd.f32 %v12281_v2, %v4668_v25  ;;  %v6430_v59 = vadd.f32 %v6429_v20, %v6428_v48  ;;  %v4836_v34 = vsel %vm1209_vm11, %v4830_v24, -inf }
 0x657   :  { %v4831_v29 = vmax.f32 %v4787_v14, 0.0  ;;  %v4675_v18 = vadd.f32 %v6430_v59, %v4472_v46  ;;  %v6431_v47 = vpop.f32.mrb[126].mxu0 }
 0x658   :  { %v6432_v63 = vpop.f32.mrb[127].mxu0 }
 0x659   :  { %v4837_v37 = vsel %vm1209_vm11, %v4831_v29, -inf  ;;  %v4794_v53 = vadd.f32 %v12282_v8, %v4675_v18  ;;  %v12284_v29 = vld [vmem:[#allocation81_spill] sm:$0xff] }
 0x65a   :  { %v4840_v41 = vmax.f32 %v4836_v34, %v4837_v37 }
 0x65b   :  { %v4832_v27 = vmax.f32 %v4794_v53, 0.0  ;;  %v6434_v0 = vpop.f32.mrb[128].mxu0 }
 0x65c   :  { %v6435_v22 = vpop.f32.mrb[129].mxu0 }
 0x65d   :  { %v4839_v43 = vsel %vm4838_vm14, %v4832_v27, -inf  ;;  %v6436_v32 = vadd.f32 %v6435_v22, %v6434_v0  ;;  %v12285_v27 = vld [vmem:[#allocation19_spill] sm:$0xff] }
 0x65e   :  { %v4841_v57 = vmax.f32 %v4840_v41, %v4839_v43 }
 0x65f   :  { %v4688_v20 = vadd.f32 %v6436_v32, %v4493_v11  ;;  %v6437_v61 = vpop.f32.mrb[130].mxu0 }
 0x660   :  { %v6438_v46 = vpop.f32.mrb[131].mxu0  ;;  %v4842_v63 = vrot.slane %v4841_v57, 4 }
 0x661   :  { %v4807_v25 = vadd.f32 %v12283_v51, %v4688_v20  ;;  %v6439_v48 = vadd.f32 %v6438_v46, %v6437_v61 }
 0x662   :  { %v4843_v22 = vmax.f32 %v4841_v57, %v4842_v63  ;;  %v12286_v63 = vpack.c.bf16 %v10829_v21, %v10827_v44  ;;  %v12291_v44 = vpack.c.bf16 %v10951_v17, %v10905_v35  ;;  %v12292_v21 = vpack.c.bf16 %v10973_v26, %v10965_v49  ;;  %v12300_v35 = vld [vmem:[#allocation82_spill] sm:$0xff]  ;;  %v12303_v26 = vld [vmem:[#allocation11_spill] sm:$0xff] }
 0x663   :  { %v4695_v24 = vadd.f32 %v6439_v48, %v4504_v56  ;;  %v6440_v2 = vpop.f32.mrb[132].mxu0  ;;  %v4833_v59 = vmax.f32 %v4807_v25, 0.0  ;;  %v12296_v17 = vpack.c.bf16 %v11070_v31, %v11068_v39  ;;  %v12301_v49 = vld [vmem:[#allocation22_spill] sm:$0xff]  ;;  %v4898_v39 = vlaneseq }
 0x664   :  { %v6441_v14 = vpop.f32.mrb[133].mxu0  ;;  %v4844_v20 = vrot.slane %v4843_v22, 2 }
 0x665   :  { %v4814_v18 = vadd.f32 %v12284_v29, %v4695_v24  ;;  %v6442_v47 = vadd.f32 %v6441_v14, %v6440_v2  ;;  %v4848_v41 = vsel %vm1209_vm11, %v4833_v59, -inf  ;;  %v4899_v31 = vshrl.u32 %v4898_v39, 7 }
 0x666   :  { %v4845_v51 = vmax.f32 %v4843_v22, %v4844_v20 }
 0x667   :  { %v4834_v34 = vmax.f32 %v4814_v18, 0.0  ;;  %v4702_v37 = vadd.f32 %v6442_v47, %v4515_v1  ;;  %v6443_v8 = vpop.f32.mrb[134].mxu0 }
 0x668   :  { %v6444_v53 = vpop.f32.mrb[135].mxu0  ;;  %v4846_v1 = vrot.slane %v4845_v51, 1 }
 0x669   :  { %v4849_v11 = vsel %vm1209_vm11, %v4834_v34, -inf  ;;  %v4821_v0 = vadd.f32 %v12285_v27, %v4702_v37  ;;  %v12287_v34 = vmov 0.0   ;;  %v12288_v37 = vpack.c.bf16 %v10894_v28, %v10892_v5 }
 0x66a   :  { %v4851_v43 = vmax.f32 %v4848_v41, %v4849_v11  ;;  %v4847_v14 = vmax.f32 %v4845_v51, %v4846_v1  ;;  %v12289_v41 = vpack.c.bf16 %v10899_v10, %v10896_v7  ;;  %v12290_v11 = vpack.c.bf16 %v10903_v6, %v10901_v45  ;;  %v12298_v45 = vld [vmem:[#allocation21_spill] sm:$0xff]  ;;  %v12299_v6 = vld [vmem:[#allocation10_spill] sm:$0xff] }
 0x66b   :  { %v4835_v56 = vmax.f32 %v4821_v0, 0.0  ;;  %v12293_v5 = vpack.c.bf16 %v10989_v36, %v10975_v52  ;;  %v12294_v28 = vpack.c.bf16 %v11010_v15, %v11002_v13  ;;  %v12295_v7 = vpack.c.bf16 %v11021_v23, %v11019_v33  ;;  %v12302_v33 = vld [vmem:[#allocation20_spill] sm:$0xff]  ;;  %v12304_v52 = vld [vmem:[#allocation23_spill] sm:$0xff]  ;;  %v12306_v13 = vld [vmem:[#allocation25_spill] sm:$0xff] }
 0x66c   :  { %v12297_v10 = vpack.c.bf16 %v11074_v50, %v11072_v40  ;;  %v12305_v36 = vld [vmem:[#allocation16_spill] sm:$0xff]  ;;  %v12307_v15 = vld [vmem:[#allocation26_spill] sm:$0xff] }
 0x66d   :  { %v4850_v32 = vsel %vm4838_vm14, %v4835_v56, -inf  ;;  %v4896_v40 = vld [vmem:[%s11348_s8] sm:$0x3] }
 0x66e   :  { %v4852_v61 = vmax.f32 %v4851_v43, %v4850_v32 }
 0x670   :  { %v4853_v46 = vrot.slane %v4852_v61, 4 }
 0x672   :  { %v4854_v25 = vmax.f32 %v4852_v61, %v4853_v46 }
 0x674   :  { %v4855_v48 = vrot.slane %v4854_v25, 2 }
 0x676   :  { %v4856_v24 = vmax.f32 %v4854_v25, %v4855_v48 }
 0x678   :  { %v4857_v2 = vrot.slane %v4856_v24, 1 }
 0x67a   :  { %v4858_v59 = vmax.f32 %v4856_v24, %v4857_v2 }
 0x67c   :  { %v4859_v29 = vsel %vm2521_vm12, %v4847_v14, %v4858_v59 }
 0x67d   :  { %v4909_v18 = vsel %vm1209_vm11, %v4859_v29, 0 }
 0x67e   :  { %v4976_v57 = vand.u32 4294901760, %v4909_v18 }
 0x680   :  { %v4977_v47 = vsub.f32 %v4909_v18, %v4976_v57  ;;  %5149 = vmatmul.mubr.f32.vlgmr.msra.gmra.mrb[136].mxu0 %v4976_v57 }
 0x681   :  { %7273 = vmatpush1.bf16.msra.mxu0 %v12286_v63  ;;  %5243 = vmatprep.mubr.f32.mxu0 %v12287_v34 }
 0x682   :  { %7275 = vmatprep.subr.bf16.mxu0 %v12288_v37  ;;  %v4978_v8 = vand.u32 4294901760, %v4977_v47 }
 0x684   :  { %v4979_v53 = vsub.f32 %v4977_v47, %v4978_v8 }
 0x685   :  { %7277 = vmatpush1.bf16.msra.mxu0 %v12289_v41 }
 0x686   :  { %7279 = vmatprep.subr.bf16.mxu0 %v12290_v11  ;;  %v4980_v27 = vand.u32 4294901760, %v4979_v53 }
 0x688   :  { %4981 = vmatmul.mubr.f32.vlgmr.msra.gmra.mrb[88].mxu1 %v4980_v27 }
 0x689   :  { %7281 = vmatpush1.bf16.msra.mxu0 %v12291_v44 }
 0x68a   :  { %7283 = vmatprep.subr.bf16.mxu0 %v12292_v21 }
 0x68d   :  { %7285 = vmatpush1.bf16.msra.mxu0 %v12293_v5 }
 0x68e   :  { %7287 = vmatprep.subr.bf16.mxu0 %v12294_v28 }
 0x691   :  { %7289 = vmatpush1.bf16.msra.mxu0 %v12295_v7 }
 0x692   :  { %7291 = vmatprep.subr.bf16.mxu0 %v12296_v17 }
 0x695   :  { %7293 = vmatpush1.bf16.msra.mxu0 %v12297_v10 }
 0x696   :  { %7295 = vmatprep.subr.bf16.mxu0 %v12298_v45 }
 0x698   :  { %5246 = vmatmul.mubr.f32.vlgmr.msra.gmra.mrb[136].mxu0 %v4977_v47 }
 0x699   :  { %7297 = vmatpush1.bf16.msra.mxu0 %v12299_v6  ;;  %5316 = vmatprep.mubr.f32.mxu0 %v12287_v34 }
 0x69a   :  { %7299 = vmatprep.subr.bf16.mxu0 %v12300_v35 }
 0x69d   :  { %7301 = vmatpush1.bf16.msra.mxu0 %v12301_v49 }
 0x69e   :  { %7303 = vmatprep.subr.bf16.mxu0 %v11031_v3 }
 0x6a1   :  { %7305 = vmatpush1.bf16.msra.mxu0 %v12302_v33 }
 0x6a2   :  { %7307 = vmatprep.subr.bf16.mxu0 %v11080_v38 }
 0x6a5   :  { %7309 = vmatpush1.bf16.msra.mxu0 %v11084_v55 }
 0x6a6   :  { %7311 = vmatprep.subr.bf16.mxu0 %v11098_v12 }
 0x6a9   :  { %7313 = vmatpush1.bf16.msra.mxu0 %v11115_v30 }
 0x6aa   :  { %7315 = vmatprep.subr.bf16.mxu0 %v11121_v62 }
 0x6ad   :  { %7317 = vmatpush1.bf16.msra.mxu0 %v11127_v60 }
 0x6ae   :  { %7319 = vmatprep.subr.bf16.mxu0 %v11162_v19 }
 0x6b0   :  { %5320 = vmatmul.mubr.f32.vlgmr.msra.gmra.mrb[136].mxu0 %v4978_v8 }
 0x6b1   :  { %7321 = vmatpush1.bf16.msra.mxu0 %v11168_v4  ;;  %5438 = vmatprep.mubr.f32.mxu0 %v12287_v34 }
 0x6b2   :  { %7323 = vmatprep.subr.bf16.mxu0 %v11175_v54 }
 0x6b5   :  { %7325 = vmatpush1.bf16.msra.mxu0 %v11181_v16 }
 0x6b6   :  { %7327 = vmatprep.subr.bf16.mxu0 %v11189_v9 }
 0x6b9   :  { %7329 = vmatpush1.bf16.msra.mxu0 %v11195_v42 }
 0x6ba   :  { %7331 = vmatprep.subr.bf16.mxu0 %v11203_v58 }
 0x6bd   :  { %7333 = vmatpush1.bf16.msra.mxu0 %v12303_v26 }
 0x6be   :  { %7335 = vmatprep.subr.bf16.mxu0 %v12304_v52 }
 0x6c1   :  { %7337 = vmatpush1.bf16.msra.mxu0 %v12305_v36 }
 0x6c2   :  { %7339 = vmatprep.subr.bf16.mxu0 %v12306_v13 }
 0x6c5   :  { %7341 = vmatpush1.bf16.msra.mxu0 %v12307_v15 }
 0x6c6   :  { %7343 = vmatprep.subr.bf16.mxu0 %v12298_v45 }
 0x6c8   :  { %5440 = vmatmul.mubr.f32.vlgmr.msra.gmra.mrb[136].mxu0 %v4976_v57 }
 0x6c9   :  { %7345 = vmatpush1.bf16.msra.mxu0 %v12299_v6  ;;  %5510 = vmatprep.mubr.f32.mxu0 %v12287_v34 }
 0x6ca   :  { %7347 = vmatprep.subr.bf16.mxu0 %v12300_v35 }
 0x6cd   :  { %7349 = vmatpush1.bf16.msra.mxu0 %v12301_v49 }
 0x6ce   :  { %7351 = vmatprep.subr.bf16.mxu0 %v11031_v3  ;;  %v4900_v3 = vsub.s32 0, %v4899_v31 }
 0x6d1   :  { %7353 = vmatpush1.bf16.msra.mxu0 %v12302_v33 }
 0x6d2   :  { %7355 = vmatprep.subr.bf16.mxu0 %v11080_v38  ;;  %v4904_v38 = vsub.s32 1, %v4899_v31 }
 0x6d4   :  { %v4905_v19 = vrot.slane %v4896_v40, %v4904_v38 }
 0x6d5   :  { %7357 = vmatpush1.bf16.msra.mxu0 %v11084_v55  ;;  %v4901_v55 = vrot.slane %v4896_v40, %v4900_v3 }
 0x6d6   :  { %7359 = vmatprep.subr.bf16.mxu0 %v11098_v12 }
 0x6d9   :  { %7361 = vmatpush1.bf16.msra.mxu0 %v11115_v30 }
 0x6da   :  { %7363 = vmatprep.subr.bf16.mxu0 %v11121_v62 }
 0x6dd   :  { %7365 = vmatpush1.bf16.msra.mxu0 %v11127_v60 }
 0x6e0   :  { %5512 = vmatmul.mubr.f32.vlgmr.msra.gmra.mrb[136].mxu0 %v4976_v57 }
 0x75b   :  { %v4982_v23 = vpop.f32.mrb[88].mxu1 }
 0x75c   :  { %v4984_v50 = vpop.f32.mrb[89].mxu1  ;;  %v4983_v12 = vadd.f32 %v4982_v23, %v4901_v55 }
 0x75d   :  { %v4985_v4 = vadd.f32 %v4984_v50, %v4905_v19 }
 0x7b3   :  { %v5513_v30 = vpop.f32.mrb[136].mxu0 }
 0x7b4   :  { %v7391_v54 = vadd.f32 %v5513_v30, %v4983_v12  ;;  %v5515_v62 = vpop.f32.mrb[137].mxu0 }
 0x7b5   :  { %v7393_v60 = vadd.f32 %v5515_v62, %v4985_v4 }
 0x7b7   :  { %v5520_v16 = vcombine.low %v7391_v54, %v7393_v60 }
 0x7b9   :  { %5547 = vst.sshfl [vmem:[#allocation2] sm:$0x33 pattern:$0x76325410] %v5520_v16 }
 0x7ba   :  { %7626 = shalt.err (!%p7623_p4)
}
 0x7bb   :  { %s7627_s15 = scalar_lea.hbm %s11349_s9, 64 }
 0x7bc   :  { %p7628_p5 = scmp.ne.s32.totalorder %s11349_s9, %s7627_s15  ;;  %p7631_p6 = scmp.lt.u32.totalorder %s7627_s15, %s11349_s9 }
 0x7be   :  { %p7633_p7 = pnand %p7631_p6, %p7628_p5 }
 0x7c0   :  { %7636 = shalt.err (!%p7633_p7)
}
 0x7c1   :  { %5539 = dma.vmem_to_hbm [thread:$0]  %s5537_s5, 64, %s11349_s9, [#allocation3]  }
 0x7c2   :  { %7637 = dma.done.wait [#allocation3], 64  }
 0x7c3   :  { %7638 = vsyncadd [#allocation3], 4294967232 }
 0x7c4   :  { %5543 = vsyncpa [#allocation3], 1 }

</bundles_post_ra>
